<compile_context>
chip_gen: v6e
topology: v6e:2x2x1
jax: 0.10.0
libtpu: 0.0.40
codegen_flags: <defaults>
</compile_context>

<pallas_src>
import functools

import jax
import jax.numpy as jnp
from jax.experimental import pallas as pl
from jax.experimental.pallas import tpu as pltpu


_VMEM_LIMIT = 32 * 1024 * 1024  # explicit, conservative for v7x's 64 MiB / TC


def _pick_row_tile(H, W, cin_k, cout, pool):
    """Largest row tile whose per-step working set stays ~2 MiB; prefer >=2 tiles."""
    budget = 2 << 20
    best = None
    for th in range(1, H + 1):
        if H % th or (pool and th % 2):
            continue
        step = ((th + 2) * W * 3 * cin_k * 2      # staged halo slab (bf16)
                + 2 * th * W * cin_k * 2          # double-buffered input block (bf16)
                + 2 * th * W * cout * 2           # double-buffered output block (bf16)
                + th * W * cout * 4)              # f32 accumulator
        if step <= budget:
            best = th
    if best is None:
        best = 2 if pool else 1
    if best == H and H >= 8:                      # keep >=2 row tiles: pipelining + 2 TCs (v7x)
        half = H // 2
        if H % half == 0 and (not pool or half % 2 == 0):
            best = half
    return best


# ----------------------------------------------------------------------------
# Generic fused 3x3 conv (pad=1, stride=1) + bias + ReLU (+ optional 2x2 maxpool)
# on one (image, row-tile) per grid step.  Conv = 3 MXU matmuls with K = 3*Cin.
# ----------------------------------------------------------------------------
def _conv3x3_kernel(xt_ref, x_ref, xb_ref, w_ref, b_ref, o_ref, *, pool):
    # xt_ref: (1, 1, W, Cin)   halo row above the tile (zeroed at the top edge)
    # x_ref : (1, TH, W, Cin)  current row tile                      (bf16)
    # xb_ref: (1, 1, W, Cin)   halo row below the tile (zeroed at bottom edge)
    # w_ref : (3, 3*Cin, Cout) weights, layout [dy][dx*Cin + ci, co] (bf16)
    # b_ref : (1, Cout)        bias                                  (f32)
    # o_ref : (1, TH, W, Cout) or (1, TH//2, W//2, Cout) if pool
    j = pl.program_id(1)
    n_j = pl.num_programs(1)
    _, TH, W, Cin = x_ref.shape
    Cout = o_ref.shape[-1]

    # Row halo: zero the clamped halo rows at the image top / bottom edges.
    top_keep = jnp.where(j > 0, 1.0, 0.0).astype(x_ref.dtype)
    bot_keep = jnp.where(j < n_j - 1, 1.0, 0.0).astype(x_ref.dtype)
    rows = jnp.concatenate(
        [xt_ref[0] * top_keep, x_ref[0], xb_ref[0] * bot_keep], axis=0)  # (TH+2, W, Cin)

    # Width halo: build the three dx-shifted slabs once and stack them on the
    # channel (lane) axis -> one fat contraction of width 3*Cin per dy tap.
    zcol = jnp.zeros((TH + 2, 1, Cin), rows.dtype)
    left = jnp.concatenate([zcol, rows[:, :W - 1, :]], axis=1)   # input col w-1
    right = jnp.concatenate([rows[:, 1:, :], zcol], axis=1)      # input col w+1
    slab = jnp.concatenate([left, rows, right], axis=-1)         # (TH+2, W, 3*Cin)

    acc = jnp.zeros((TH * W, Cout), jnp.float32)
    for dy in range(3):                                          # 3 matmuls, K = 3*Cin
        acc += jnp.dot(slab[dy:dy + TH].reshape(TH * W, 3 * Cin), w_ref[dy],
                       preferred_element_type=jnp.float32)

    acc = jnp.maximum(acc + b_ref[...], 0.0)                     # f32 bias + ReLU

    if pool:                                                     # fused 2x2 max-pool
        p = acc.reshape(TH, W // 2, 2, Cout).max(axis=2)
        p = p.reshape(TH // 2, 2, W // 2, Cout).max(axis=1)
        o_ref[0] = p.astype(o_ref.dtype)
    else:
        o_ref[0] = acc.reshape(TH, W, Cout).astype(o_ref.dtype)


def conv3x3_relu(x, w, b, *, pool=False, out_dtype=jnp.bfloat16):
    # x: (N,H,W,Cin) bf16 ; w: (3,3,Cin,Cout) f32 (HWIO) ; b: (Cout,) f32
    N, H, W, Cin = x.shape
    Cout = w.shape[-1]
    if pool:
        assert H % 2 == 0 and W % 2 == 0
    wk = w.reshape(3, 3 * Cin, Cout).astype(jnp.bfloat16)
    bk = b.reshape(1, Cout).astype(jnp.float32)
    TH = _pick_row_tile(H, W, Cin, Cout, pool)
    HT = H // TH
    Ho, Wo = (H // 2, W // 2) if pool else (H, W)
    THo = TH // 2 if pool else TH

    return pl.pallas_call(
        functools.partial(_conv3x3_kernel, pool=pool),
        out_shape=jax.ShapeDtypeStruct((N, Ho, Wo, Cout), out_dtype),
        grid=(N, HT),
        in_specs=[
            # halo row above (row-block of size 1 => index_map returns a row index)
            pl.BlockSpec((1, 1, W, Cin),
                         lambda n, j: (n, jnp.maximum(j * TH - 1, 0), 0, 0)),
            # main row tile
            pl.BlockSpec((1, TH, W, Cin), lambda n, j: (n, j, 0, 0)),
            # halo row below
            pl.BlockSpec((1, 1, W, Cin),
                         lambda n, j: (n, jnp.minimum((j + 1) * TH, H - 1), 0, 0)),
            pl.BlockSpec((3, 3 * Cin, Cout), lambda n, j: (0, 0, 0)),
            pl.BlockSpec((1, Cout), lambda n, j: (0, 0)),
        ],
        out_specs=pl.BlockSpec((1, THo, Wo, Cout), lambda n, j: (n, j, 0, 0)),
        compiler_params=pltpu.CompilerParams(
            dimension_semantics=("parallel", "parallel"),
            vmem_limit_bytes=_VMEM_LIMIT),
    )(x, x, x, wk, bk)


# ----------------------------------------------------------------------------
# First layer (Cin=3): im2col in the wrapper (tiny), one K=27 matmul in Pallas.
# Avoids padding 3 channels up to 128 lanes in the generic kernel.
# ----------------------------------------------------------------------------
def _im2col_matmul_kernel(x_ref, w_ref, b_ref, o_ref):
    # x: (1, TH, W, K) patches (bf16); w: (K, Cout) bf16; b: (1, Cout) f32
    _, TH, W, K = x_ref.shape
    Cout = o_ref.shape[-1]
    acc = jnp.dot(x_ref[0].reshape(TH * W, K), w_ref[...],
                  preferred_element_type=jnp.float32)
    acc = jnp.maximum(acc + b_ref[...], 0.0)
    o_ref[0] = acc.reshape(TH, W, Cout).astype(o_ref.dtype)


def conv3x3_relu_small_cin(x, w, b):
    N, H, W, Cin = x.shape
    Cout = w.shape[-1]
    xp = jnp.pad(x, ((0, 0), (1, 1), (1, 1), (0, 0)))        # Cin=3: negligible traffic
    patches = jnp.concatenate(
        [xp[:, dy:dy + H, dx:dx + W, :] for dy in range(3) for dx in range(3)],
        axis=-1)                                              # (N, H, W, 9*Cin)
    K = 9 * Cin
    wk = w.reshape(K, Cout).astype(jnp.bfloat16)
    bk = b.reshape(1, Cout).astype(jnp.float32)
    TH = _pick_row_tile(H, W, 3 * Cin, Cout, pool=False)

    return pl.pallas_call(
        _im2col_matmul_kernel,
        out_shape=jax.ShapeDtypeStruct((N, H, W, Cout), jnp.bfloat16),
        grid=(N, H // TH),
        in_specs=[
            pl.BlockSpec((1, TH, W, K), lambda n, j: (n, j, 0, 0)),
            pl.BlockSpec((K, Cout), lambda n, j: (0, 0)),
            pl.BlockSpec((1, Cout), lambda n, j: (0, 0)),
        ],
        out_specs=pl.BlockSpec((1, TH, W, Cout), lambda n, j: (n, j, 0, 0)),
        compiler_params=pltpu.CompilerParams(
            dimension_semantics=("parallel", "parallel"),
            vmem_limit_bytes=_VMEM_LIMIT),
    )(patches, wk, bk)


# ----------------------------------------------------------------------------
# Parameters (deterministic synthetic init, HWIO layout).
# ----------------------------------------------------------------------------
_VGG_CFG = [(3, 64), (64, 64), (64, 128), (128, 128), (128, 256)]


def init_params(key):
    # Real VGG19 weights would need a (Cout,Cin,kH,kW) -> (kH,kW,Cin,Cout) transpose.
    # TODO(synk): loading a pretrained torchvision VGG19 checkpoint is out of scope.
    params = []
    for cin, cout in _VGG_CFG:
        key, kw, kb = jax.random.split(key, 3)
        w = jax.random.normal(kw, (3, 3, cin, cout), jnp.float32) / (9.0 * cin) ** 0.5
        b = 0.01 * jax.random.normal(kb, (cout,), jnp.float32)
        params.append((w, b))
    return params


# ----------------------------------------------------------------------------
# Forward pass, mirrors FeatureExtractor.forward (NCHW in / NCHW f32 out).
# ----------------------------------------------------------------------------
def feature_extractor(img_nchw, params):
    if img_nchw.shape[1] == 1:
        img_nchw = jnp.concatenate([img_nchw, img_nchw, img_nchw], axis=1)
    x = jnp.transpose(img_nchw, (0, 2, 3, 1)).astype(jnp.bfloat16)   # NHWC, bf16
    x = conv3x3_relu_small_cin(x, *params[0])                # conv1_1 + relu
    x = conv3x3_relu(x, *params[1], pool=True)               # conv1_2 + relu + pool1
    x = conv3x3_relu(x, *params[2])                          # conv2_1 + relu
    x = conv3x3_relu(x, *params[3], pool=True)               # conv2_2 + relu + pool2
    x = conv3x3_relu(x, *params[4], out_dtype=jnp.float32)   # conv3_1 + relu
    return jnp.transpose(x, (0, 3, 1, 2))                    # -> NCHW


# ----------------------------------------------------------------------------
# Pure-JAX f32 reference for correctness checking.
# ----------------------------------------------------------------------------
def _reference(img_nchw, params):
    if img_nchw.shape[1] == 1:
        img_nchw = jnp.concatenate([img_nchw, img_nchw, img_nchw], axis=1)
    x = jnp.transpose(img_nchw, (0, 2, 3, 1)).astype(jnp.float32)

    def conv(x, w, b):
        y = jax.lax.conv_general_dilated(
            x, w, (1, 1), "SAME", dimension_numbers=("NHWC", "HWIO", "NHWC"))
        return jax.nn.relu(y + b)

    def pool(x):
        return jax.lax.reduce_window(x, -jnp.inf, jax.lax.max,
                                     (1, 2, 2, 1), (1, 2, 2, 1), "VALID")

    x = conv(x, *params[0]); x = conv(x, *params[1]); x = pool(x)
    x = conv(x, *params[2]); x = conv(x, *params[3]); x = pool(x)
    x = conv(x, *params[4])
    return jnp.transpose(x, (0, 3, 1, 2))


if __name__ == "__main__":
    key = jax.random.PRNGKey(0)
    key, kp, kx = jax.random.split(key, 3)
    params = init_params(kp)
    # Grayscale input exercises the 1->3 channel concat branch.
    img = jax.random.normal(kx, (2, 1, 16, 16), jnp.float32)

    out = jax.block_until_ready(jax.jit(feature_extractor)(img, params))

    assert out.shape == (2, 256, 4, 4), out.shape
    assert out.dtype == jnp.float32
    assert bool(jnp.all(jnp.isfinite(out)))
    assert bool(jnp.all(out >= 0.0))            # final layer is a ReLU

    ref = _reference(img, params)
    scale = float(jnp.max(jnp.abs(ref))) + 1e-6
    err = float(jnp.max(jnp.abs(out - ref)))
    assert err <= 0.1 * scale, (err, scale)     # bf16-matmul tolerance

    print("KERNEL_OK")
</pallas_src>

<mosaic_0001>
module attributes {stable_mosaic.version = 11 : i64} {
  func.func @_im2col_matmul_kernel(%arg0: i32, %arg1: i32, %arg2: memref<1x8x16x27xbf16, #tpu.memory_space<vmem>>, %arg3: memref<27x64xbf16, #tpu.memory_space<vmem>>, %arg4: memref<1x64xf32, #tpu.memory_space<vmem>>, %arg5: memref<1x8x16x64xbf16, #tpu.memory_space<vmem>>) attributes {dimension_semantics = [#tpu.dimension_semantics<parallel>, #tpu.dimension_semantics<parallel>], iteration_bounds = array<i64: 2, 2>, scalar_prefetch = 0 : i64, scratch_operands = 0 : i64, tpu.core_type = #tpu.core_type<tc>, window_params = [{transform_indices = @transform_0, window_bounds = array<i64: 1, 8, 16, 27>}, {pipeline_mode = #tpu.pipeline_mode<synchronous>, transform_indices = @transform_1, window_bounds = array<i64: 27, 64>}, {pipeline_mode = #tpu.pipeline_mode<synchronous>, transform_indices = @transform_2, window_bounds = array<i64: 1, 64>}, {transform_indices = @transform_3, window_bounds = array<i64: 1, 8, 16, 64>}]} {
    %c0 = arith.constant 0 : index
    %c0_0 = arith.constant 0 : index
    %c0_1 = arith.constant 0 : index
    %c0_2 = arith.constant 0 : index
    %0 = vector.load %arg2[%c0, %c0_0, %c0_1, %c0_2] : memref<1x8x16x27xbf16, #tpu.memory_space<vmem>>, vector<1x8x16x27xbf16>
    %1 = vector.shape_cast %0 : vector<1x8x16x27xbf16> to vector<8x16x27xbf16>
    %2 = vector.shape_cast %1 : vector<8x16x27xbf16> to vector<128x27xbf16>
    %c0_3 = arith.constant 0 : index
    %c0_4 = arith.constant 0 : index
    %3 = vector.load %arg3[%c0_3, %c0_4] : memref<27x64xbf16, #tpu.memory_space<vmem>>, vector<27x64xbf16>
    %cst = arith.constant dense<0.000000e+00> : vector<128x64xf32>
    %4 = tpu.matmul %2, %3, %cst {dimension_numbers = #tpu.dot_dimension_numbers<[1], [0], [0], [1], [0, 0, 1, 1], [], []>} : vector<128x27xbf16>, vector<27x64xbf16>, vector<128x64xf32> -> vector<128x64xf32>
    %c0_5 = arith.constant 0 : index
    %c0_6 = arith.constant 0 : index
    %5 = vector.load %arg4[%c0_5, %c0_6] : memref<1x64xf32, #tpu.memory_space<vmem>>, vector<1x64xf32>
    %6 = vector.broadcast %5 : vector<1x64xf32> to vector<128x64xf32>
    %7 = arith.addf %4, %6 : vector<128x64xf32>
    %cst_7 = arith.constant 0.000000e+00 : f32
    %8 = vector.broadcast %cst_7 : f32 to vector<128x64xf32>
    %9 = arith.maximumf %7, %8 : vector<128x64xf32>
    %10 = vector.shape_cast %9 : vector<128x64xf32> to vector<8x16x64xf32>
    %11 = arith.truncf %10 : vector<8x16x64xf32> to vector<8x16x64xbf16>
    %c0_8 = arith.constant 0 : index
    %c0_9 = arith.constant 0 : index
    %c0_10 = arith.constant 0 : index
    %c0_11 = arith.constant 0 : index
    %12 = vector.load %arg5[%c0_8, %c0_9, %c0_10, %c0_11] : memref<1x8x16x64xbf16, #tpu.memory_space<vmem>>, vector<1x8x16x64xbf16>
    %13 = vector.shape_cast %12 : vector<1x8x16x64xbf16> to vector<8x16x64xbf16>
    %14 = vector.shape_cast %11 : vector<8x16x64xbf16> to vector<1x8x16x64xbf16>
    tpu.vector_store %arg5[%c0_8, %c0_9, %c0_10, %c0_11], %14 {strides = array<i32>} : memref<1x8x16x64xbf16, #tpu.memory_space<vmem>>, vector<1x8x16x64xbf16>,
    return
  }
  func.func @transform_0(%arg0: i32, %arg1: i32) -> (i32, i32, i32, i32) {
    %c0_i32 = arith.constant 0 : i32
    %c0_i32_0 = arith.constant 0 : i32
    %c0_i32_1 = arith.constant 0 : i32
    return %arg0, %arg1, %c0_i32, %c0_i32_0 : i32, i32, i32, i32
  }
  func.func @transform_1(%arg0: i32, %arg1: i32) -> (i32, i32) {
    %c0_i32 = arith.constant 0 : i32
    %c0_i32_0 = arith.constant 0 : i32
    %c0_i32_1 = arith.constant 0 : i32
    return %c0_i32, %c0_i32_0 : i32, i32
  }
  func.func @transform_2(%arg0: i32, %arg1: i32) -> (i32, i32) {
    %c0_i32 = arith.constant 0 : i32
    %c0_i32_0 = arith.constant 0 : i32
    %c0_i32_1 = arith.constant 0 : i32
    return %c0_i32, %c0_i32_0 : i32, i32
  }
  func.func @transform_3(%arg0: i32, %arg1: i32) -> (i32, i32, i32, i32) {
    %c0_i32 = arith.constant 0 : i32
    %c0_i32_0 = arith.constant 0 : i32
    %c0_i32_1 = arith.constant 0 : i32
    return %arg0, %arg1, %c0_i32, %c0_i32_0 : i32, i32, i32, i32
  }
}

module attributes {stable_mosaic.version = 11 : i64} {
  func.func @_conv3x3_kernel(%arg0: i32, %arg1: i32, %arg2: memref<1x1x16x64xbf16, #tpu.memory_space<vmem>>, %arg3: memref<1x8x16x64xbf16, #tpu.memory_space<vmem>>, %arg4: memref<1x1x16x64xbf16, #tpu.memory_space<vmem>>, %arg5: memref<3x192x64xbf16, #tpu.memory_space<vmem>>, %arg6: memref<1x64xf32, #tpu.memory_space<vmem>>, %arg7: memref<1x4x8x64xbf16, #tpu.memory_space<vmem>>) attributes {dimension_semantics = [#tpu.dimension_semantics<parallel>, #tpu.dimension_semantics<parallel>], iteration_bounds = array<i64: 2, 2>, scalar_prefetch = 0 : i64, scratch_operands = 0 : i64, tpu.core_type = #tpu.core_type<tc>, window_params = [{transform_indices = @transform_0, window_bounds = array<i64: 1, 1, 16, 64>}, {transform_indices = @transform_1, window_bounds = array<i64: 1, 8, 16, 64>}, {transform_indices = @transform_2, window_bounds = array<i64: 1, 1, 16, 64>}, {pipeline_mode = #tpu.pipeline_mode<synchronous>, transform_indices = @transform_3, window_bounds = array<i64: 3, 192, 64>}, {pipeline_mode = #tpu.pipeline_mode<synchronous>, transform_indices = @transform_4, window_bounds = array<i64: 1, 64>}, {transform_indices = @transform_5, window_bounds = array<i64: 1, 4, 8, 64>}]} {
    %c0_i32 = arith.constant 0 : i32
    %0 = arith.cmpi sgt, %arg1, %c0_i32 : i32
    %cst = arith.constant 1.000000e+00 : f32
    %cst_0 = arith.constant 0.000000e+00 : f32
    %1 = arith.select %0, %cst, %cst_0 : f32
    %2 = arith.truncf %1 : f32 to bf16
    %c1_i32 = arith.constant 1 : i32
    %3 = arith.cmpi slt, %arg1, %c1_i32 : i32
    %cst_1 = arith.constant 1.000000e+00 : f32
    %cst_2 = arith.constant 0.000000e+00 : f32
    %4 = arith.select %3, %cst_1, %cst_2 : f32
    %5 = arith.truncf %4 : f32 to bf16
    %c0 = arith.constant 0 : index
    %c0_3 = arith.constant 0 : index
    %c0_4 = arith.constant 0 : index
    %c0_5 = arith.constant 0 : index
    %6 = vector.load %arg2[%c0, %c0_3, %c0_4, %c0_5] : memref<1x1x16x64xbf16, #tpu.memory_space<vmem>>, vector<1x1x16x64xbf16>
    %7 = vector.shape_cast %6 : vector<1x1x16x64xbf16> to vector<1x16x64xbf16>
    %8 = vector.broadcast %2 : bf16 to vector<1x16x64xbf16>
    %9 = arith.mulf %7, %8 : vector<1x16x64xbf16>
    %c0_6 = arith.constant 0 : index
    %c0_7 = arith.constant 0 : index
    %c0_8 = arith.constant 0 : index
    %c0_9 = arith.constant 0 : index
    %10 = vector.load %arg3[%c0_6, %c0_7, %c0_8, %c0_9] : memref<1x8x16x64xbf16, #tpu.memory_space<vmem>>, vector<1x8x16x64xbf16>
    %11 = vector.shape_cast %10 : vector<1x8x16x64xbf16> to vector<8x16x64xbf16>
    %c0_10 = arith.constant 0 : index
    %c0_11 = arith.constant 0 : index
    %c0_12 = arith.constant 0 : index
    %c0_13 = arith.constant 0 : index
    %12 = vector.load %arg4[%c0_10, %c0_11, %c0_12, %c0_13] : memref<1x1x16x64xbf16, #tpu.memory_space<vmem>>, vector<1x1x16x64xbf16>
    %13 = vector.shape_cast %12 : vector<1x1x16x64xbf16> to vector<1x16x64xbf16>
    %14 = vector.broadcast %5 : bf16 to vector<1x16x64xbf16>
    %15 = arith.mulf %13, %14 : vector<1x16x64xbf16>
    %16 = tpu.concatenate %9, %11, %15 in 0 : vector<1x16x64xbf16>, vector<8x16x64xbf16>, vector<1x16x64xbf16> -> vector<10x16x64xbf16>
    %cst_14 = arith.constant 0.000000e+00 : bf16
    %17 = vector.broadcast %cst_14 : bf16 to vector<10x1x64xbf16>
    %18 = vector.extract_strided_slice %16 {offsets = [0, 0, 0], sizes = [10, 15, 64], strides = [1, 1, 1]} : vector<10x16x64xbf16> to vector<10x15x64xbf16>
    %19 = tpu.concatenate %17, %18 in 1 : vector<10x1x64xbf16>, vector<10x15x64xbf16> -> vector<10x16x64xbf16>
    %20 = vector.extract_strided_slice %16 {offsets = [0, 1, 0], sizes = [10, 15, 64], strides = [1, 1, 1]} : vector<10x16x64xbf16> to vector<10x15x64xbf16>
    %21 = tpu.concatenate %20, %17 in 1 : vector<10x15x64xbf16>, vector<10x1x64xbf16> -> vector<10x16x64xbf16>
    %22 = tpu.concatenate %19, %16, %21 in 2 : vector<10x16x64xbf16>, vector<10x16x64xbf16>, vector<10x16x64xbf16> -> vector<10x16x192xbf16>
    %cst_15 = arith.constant 0.000000e+00 : f32
    %23 = vector.broadcast %cst_15 : f32 to vector<128x64xf32>
    %24 = vector.extract_strided_slice %22 {offsets = [0, 0, 0], sizes = [8, 16, 192], strides = [1, 1, 1]} : vector<10x16x192xbf16> to vector<8x16x192xbf16>
    %25 = vector.shape_cast %24 : vector<8x16x192xbf16> to vector<128x192xbf16>
    %c0_16 = arith.constant 0 : index
    %c0_17 = arith.constant 0 : index
    %c0_18 = arith.constant 0 : index
    %26 = vector.load %arg5[%c0_16, %c0_17, %c0_18] : memref<3x192x64xbf16, #tpu.memory_space<vmem>>, vector<1x192x64xbf16>
    %27 = vector.shape_cast %26 : vector<1x192x64xbf16> to vector<192x64xbf16>
    %cst_19 = arith.constant dense<0.000000e+00> : vector<128x64xf32>
    %28 = tpu.matmul %25, %27, %cst_19 {dimension_numbers = #tpu.dot_dimension_numbers<[1], [0], [0], [1], [0, 0, 1, 1], [], []>} : vector<128x192xbf16>, vector<192x64xbf16>, vector<128x64xf32> -> vector<128x64xf32>
    %29 = arith.addf %23, %28 : vector<128x64xf32>
    %30 = vector.extract_strided_slice %22 {offsets = [1, 0, 0], sizes = [8, 16, 192], strides = [1, 1, 1]} : vector<10x16x192xbf16> to vector<8x16x192xbf16>
    %31 = vector.shape_cast %30 : vector<8x16x192xbf16> to vector<128x192xbf16>
    %c1 = arith.constant 1 : index
    %c0_20 = arith.constant 0 : index
    %c0_21 = arith.constant 0 : index
    %32 = vector.load %arg5[%c1, %c0_20, %c0_21] : memref<3x192x64xbf16, #tpu.memory_space<vmem>>, vector<1x192x64xbf16>
    %33 = vector.shape_cast %32 : vector<1x192x64xbf16> to vector<192x64xbf16>
    %cst_22 = arith.constant dense<0.000000e+00> : vector<128x64xf32>
    %34 = tpu.matmul %31, %33, %cst_22 {dimension_numbers = #tpu.dot_dimension_numbers<[1], [0], [0], [1], [0, 0, 1, 1], [], []>} : vector<128x192xbf16>, vector<192x64xbf16>, vector<128x64xf32> -> vector<128x64xf32>
    %35 = arith.addf %29, %34 : vector<128x64xf32>
    %36 = vector.extract_strided_slice %22 {offsets = [2, 0, 0], sizes = [8, 16, 192], strides = [1, 1, 1]} : vector<10x16x192xbf16> to vector<8x16x192xbf16>
    %37 = vector.shape_cast %36 : vector<8x16x192xbf16> to vector<128x192xbf16>
    %c2 = arith.constant 2 : index
    %c0_23 = arith.constant 0 : index
    %c0_24 = arith.constant 0 : index
    %38 = vector.load %arg5[%c2, %c0_23, %c0_24] : memref<3x192x64xbf16, #tpu.memory_space<vmem>>, vector<1x192x64xbf16>
    %39 = vector.shape_cast %38 : vector<1x192x64xbf16> to vector<192x64xbf16>
    %cst_25 = arith.constant dense<0.000000e+00> : vector<128x64xf32>
    %40 = tpu.matmul %37, %39, %cst_25 {dimension_numbers = #tpu.dot_dimension_numbers<[1], [0], [0], [1], [0, 0, 1, 1], [], []>} : vector<128x192xbf16>, vector<192x64xbf16>, vector<128x64xf32> -> vector<128x64xf32>
    %41 = arith.addf %35, %40 : vector<128x64xf32>
    %c0_26 = arith.constant 0 : index
    %c0_27 = arith.constant 0 : index
    %42 = vector.load %arg6[%c0_26, %c0_27] : memref<1x64xf32, #tpu.memory_space<vmem>>, vector<1x64xf32>
    %43 = vector.broadcast %42 : vector<1x64xf32> to vector<128x64xf32>
    %44 = arith.addf %41, %43 : vector<128x64xf32>
    %cst_28 = arith.constant 0.000000e+00 : f32
    %45 = vector.broadcast %cst_28 : f32 to vector<128x64xf32>
    %46 = arith.maximumf %44, %45 : vector<128x64xf32>
    %47 = vector.shape_cast %46 : vector<128x64xf32> to vector<8x8x2x64xf32>
    %cst_29 = arith.constant dense<0xFF800000> : vector<8x8x64xf32>
    %48 = vector.multi_reduction <maximumf>, %47, %cst_29 [2] : vector<8x8x2x64xf32> to vector<8x8x64xf32>
    %49 = vector.shape_cast %48 : vector<8x8x64xf32> to vector<4x2x8x64xf32>
    %cst_30 = arith.constant dense<0xFF800000> : vector<4x8x64xf32>
    %50 = vector.multi_reduction <maximumf>, %49, %cst_30 [1] : vector<4x2x8x64xf32> to vector<4x8x64xf32>
    %51 = arith.truncf %50 : vector<4x8x64xf32> to vector<4x8x64xbf16>
    %c0_31 = arith.constant 0 : index
    %c0_32 = arith.constant 0 : index
    %c0_33 = arith.constant 0 : index
    %c0_34 = arith.constant 0 : index
    %52 = vector.load %arg7[%c0_31, %c0_32, %c0_33, %c0_34] : memref<1x4x8x64xbf16, #tpu.memory_space<vmem>>, vector<1x4x8x64xbf16>
    %53 = vector.shape_cast %52 : vector<1x4x8x64xbf16> to vector<4x8x64xbf16>
    %54 = vector.shape_cast %51 : vector<4x8x64xbf16> to vector<1x4x8x64xbf16>
    tpu.vector_store %arg7[%c0_31, %c0_32, %c0_33, %c0_34], %54 {strides = array<i32>} : memref<1x4x8x64xbf16, #tpu.memory_space<vmem>>, vector<1x4x8x64xbf16>,
    return
  }
  func.func @transform_0(%arg0: i32, %arg1: i32) -> (i32, i32, i32, i32) {
    %c8_i32 = arith.constant 8 : i32
    %0 = arith.muli %arg1, %c8_i32 : i32
    %c1_i32 = arith.constant 1 : i32
    %1 = arith.subi %0, %c1_i32 : i32
    %c0_i32 = arith.constant 0 : i32
    %2 = arith.maxsi %1, %c0_i32 : i32
    %c0_i32_0 = arith.constant 0 : i32
    %c0_i32_1 = arith.constant 0 : i32
    %c0_i32_2 = arith.constant 0 : i32
    return %arg0, %2, %c0_i32_0, %c0_i32_1 : i32, i32, i32, i32
  }
  func.func @transform_1(%arg0: i32, %arg1: i32) -> (i32, i32, i32, i32) {
    %c0_i32 = arith.constant 0 : i32
    %c0_i32_0 = arith.constant 0 : i32
    %c0_i32_1 = arith.constant 0 : i32
    return %arg0, %arg1, %c0_i32, %c0_i32_0 : i32, i32, i32, i32
  }
  func.func @transform_2(%arg0: i32, %arg1: i32) -> (i32, i32, i32, i32) {
    %c1_i32 = arith.constant 1 : i32
    %0 = arith.addi %arg1, %c1_i32 : i32
    %c8_i32 = arith.constant 8 : i32
    %1 = arith.muli %0, %c8_i32 : i32
    %c15_i32 = arith.constant 15 : i32
    %2 = arith.minsi %1, %c15_i32 : i32
    %c0_i32 = arith.constant 0 : i32
    %c0_i32_0 = arith.constant 0 : i32
    %c0_i32_1 = arith.constant 0 : i32
    return %arg0, %2, %c0_i32, %c0_i32_0 : i32, i32, i32, i32
  }
  func.func @transform_3(%arg0: i32, %arg1: i32) -> (i32, i32, i32) {
    %c0_i32 = arith.constant 0 : i32
    %c0_i32_0 = arith.constant 0 : i32
    %c0_i32_1 = arith.constant 0 : i32
    %c0_i32_2 = arith.constant 0 : i32
    return %c0_i32, %c0_i32_0, %c0_i32_1 : i32, i32, i32
  }
  func.func @transform_4(%arg0: i32, %arg1: i32) -> (i32, i32) {
    %c0_i32 = arith.constant 0 : i32
    %c0_i32_0 = arith.constant 0 : i32
    %c0_i32_1 = arith.constant 0 : i32
    return %c0_i32, %c0_i32_0 : i32, i32
  }
  func.func @transform_5(%arg0: i32, %arg1: i32) -> (i32, i32, i32, i32) {
    %c0_i32 = arith.constant 0 : i32
    %c0_i32_0 = arith.constant 0 : i32
    %c0_i32_1 = arith.constant 0 : i32
    return %arg0, %arg1, %c0_i32, %c0_i32_0 : i32, i32, i32, i32
  }
}

module attributes {stable_mosaic.version = 11 : i64} {
  func.func @_conv3x3_kernel(%arg0: i32, %arg1: i32, %arg2: memref<1x1x8x64xbf16, #tpu.memory_space<vmem>>, %arg3: memref<1x4x8x64xbf16, #tpu.memory_space<vmem>>, %arg4: memref<1x1x8x64xbf16, #tpu.memory_space<vmem>>, %arg5: memref<3x192x128xbf16, #tpu.memory_space<vmem>>, %arg6: memref<1x128xf32, #tpu.memory_space<vmem>>, %arg7: memref<1x4x8x128xbf16, #tpu.memory_space<vmem>>) attributes {dimension_semantics = [#tpu.dimension_semantics<parallel>, #tpu.dimension_semantics<parallel>], iteration_bounds = array<i64: 2, 2>, scalar_prefetch = 0 : i64, scratch_operands = 0 : i64, tpu.core_type = #tpu.core_type<tc>, window_params = [{transform_indices = @transform_0, window_bounds = array<i64: 1, 1, 8, 64>}, {transform_indices = @transform_1, window_bounds = array<i64: 1, 4, 8, 64>}, {transform_indices = @transform_2, window_bounds = array<i64: 1, 1, 8, 64>}, {pipeline_mode = #tpu.pipeline_mode<synchronous>, transform_indices = @transform_3, window_bounds = array<i64: 3, 192, 128>}, {pipeline_mode = #tpu.pipeline_mode<synchronous>, transform_indices = @transform_4, window_bounds = array<i64: 1, 128>}, {transform_indices = @transform_5, window_bounds = array<i64: 1, 4, 8, 128>}]} {
    %c0_i32 = arith.constant 0 : i32
    %0 = arith.cmpi sgt, %arg1, %c0_i32 : i32
    %cst = arith.constant 1.000000e+00 : f32
    %cst_0 = arith.constant 0.000000e+00 : f32
    %1 = arith.select %0, %cst, %cst_0 : f32
    %2 = arith.truncf %1 : f32 to bf16
    %c1_i32 = arith.constant 1 : i32
    %3 = arith.cmpi slt, %arg1, %c1_i32 : i32
    %cst_1 = arith.constant 1.000000e+00 : f32
    %cst_2 = arith.constant 0.000000e+00 : f32
    %4 = arith.select %3, %cst_1, %cst_2 : f32
    %5 = arith.truncf %4 : f32 to bf16
    %c0 = arith.constant 0 : index
    %c0_3 = arith.constant 0 : index
    %c0_4 = arith.constant 0 : index
    %c0_5 = arith.constant 0 : index
    %6 = vector.load %arg2[%c0, %c0_3, %c0_4, %c0_5] : memref<1x1x8x64xbf16, #tpu.memory_space<vmem>>, vector<1x1x8x64xbf16>
    %7 = vector.shape_cast %6 : vector<1x1x8x64xbf16> to vector<1x8x64xbf16>
    %8 = vector.broadcast %2 : bf16 to vector<1x8x64xbf16>
    %9 = arith.mulf %7, %8 : vector<1x8x64xbf16>
    %c0_6 = arith.constant 0 : index
    %c0_7 = arith.constant 0 : index
    %c0_8 = arith.constant 0 : index
    %c0_9 = arith.constant 0 : index
    %10 = vector.load %arg3[%c0_6, %c0_7, %c0_8, %c0_9] : memref<1x4x8x64xbf16, #tpu.memory_space<vmem>>, vector<1x4x8x64xbf16>
    %11 = vector.shape_cast %10 : vector<1x4x8x64xbf16> to vector<4x8x64xbf16>
    %c0_10 = arith.constant 0 : index
    %c0_11 = arith.constant 0 : index
    %c0_12 = arith.constant 0 : index
    %c0_13 = arith.constant 0 : index
    %12 = vector.load %arg4[%c0_10, %c0_11, %c0_12, %c0_13] : memref<1x1x8x64xbf16, #tpu.memory_space<vmem>>, vector<1x1x8x64xbf16>
    %13 = vector.shape_cast %12 : vector<1x1x8x64xbf16> to vector<1x8x64xbf16>
    %14 = vector.broadcast %5 : bf16 to vector<1x8x64xbf16>
    %15 = arith.mulf %13, %14 : vector<1x8x64xbf16>
    %16 = tpu.concatenate %9, %11, %15 in 0 : vector<1x8x64xbf16>, vector<4x8x64xbf16>, vector<1x8x64xbf16> -> vector<6x8x64xbf16>
    %cst_14 = arith.constant 0.000000e+00 : bf16
    %17 = vector.broadcast %cst_14 : bf16 to vector<6x1x64xbf16>
    %18 = vector.extract_strided_slice %16 {offsets = [0, 0, 0], sizes = [6, 7, 64], strides = [1, 1, 1]} : vector<6x8x64xbf16> to vector<6x7x64xbf16>
    %19 = tpu.concatenate %17, %18 in 1 : vector<6x1x64xbf16>, vector<6x7x64xbf16> -> vector<6x8x64xbf16>
    %20 = vector.extract_strided_slice %16 {offsets = [0, 1, 0], sizes = [6, 7, 64], strides = [1, 1, 1]} : vector<6x8x64xbf16> to vector<6x7x64xbf16>
    %21 = tpu.concatenate %20, %17 in 1 : vector<6x7x64xbf16>, vector<6x1x64xbf16> -> vector<6x8x64xbf16>
    %22 = tpu.concatenate %19, %16, %21 in 2 : vector<6x8x64xbf16>, vector<6x8x64xbf16>, vector<6x8x64xbf16> -> vector<6x8x192xbf16>
    %cst_15 = arith.constant 0.000000e+00 : f32
    %23 = vector.broadcast %cst_15 : f32 to vector<32x128xf32>
    %24 = vector.extract_strided_slice %22 {offsets = [0, 0, 0], sizes = [4, 8, 192], strides = [1, 1, 1]} : vector<6x8x192xbf16> to vector<4x8x192xbf16>
    %25 = vector.shape_cast %24 : vector<4x8x192xbf16> to vector<32x192xbf16>
    %c0_16 = arith.constant 0 : index
    %c0_17 = arith.constant 0 : index
    %c0_18 = arith.constant 0 : index
    %26 = vector.load %arg5[%c0_16, %c0_17, %c0_18] : memref<3x192x128xbf16, #tpu.memory_space<vmem>>, vector<1x192x128xbf16>
    %27 = vector.shape_cast %26 : vector<1x192x128xbf16> to vector<192x128xbf16>
    %cst_19 = arith.constant dense<0.000000e+00> : vector<32x128xf32>
    %28 = tpu.matmul %25, %27, %cst_19 {dimension_numbers = #tpu.dot_dimension_numbers<[1], [0], [0], [1], [0, 0, 1, 1], [], []>} : vector<32x192xbf16>, vector<192x128xbf16>, vector<32x128xf32> -> vector<32x128xf32>
    %29 = arith.addf %23, %28 : vector<32x128xf32>
    %30 = vector.extract_strided_slice %22 {offsets = [1, 0, 0], sizes = [4, 8, 192], strides = [1, 1, 1]} : vector<6x8x192xbf16> to vector<4x8x192xbf16>
    %31 = vector.shape_cast %30 : vector<4x8x192xbf16> to vector<32x192xbf16>
    %c1 = arith.constant 1 : index
    %c0_20 = arith.constant 0 : index
    %c0_21 = arith.constant 0 : index
    %32 = vector.load %arg5[%c1, %c0_20, %c0_21] : memref<3x192x128xbf16, #tpu.memory_space<vmem>>, vector<1x192x128xbf16>
    %33 = vector.shape_cast %32 : vector<1x192x128xbf16> to vector<192x128xbf16>
    %cst_22 = arith.constant dense<0.000000e+00> : vector<32x128xf32>
    %34 = tpu.matmul %31, %33, %cst_22 {dimension_numbers = #tpu.dot_dimension_numbers<[1], [0], [0], [1], [0, 0, 1, 1], [], []>} : vector<32x192xbf16>, vector<192x128xbf16>, vector<32x128xf32> -> vector<32x128xf32>
    %35 = arith.addf %29, %34 : vector<32x128xf32>
    %36 = vector.extract_strided_slice %22 {offsets = [2, 0, 0], sizes = [4, 8, 192], strides = [1, 1, 1]} : vector<6x8x192xbf16> to vector<4x8x192xbf16>
    %37 = vector.shape_cast %36 : vector<4x8x192xbf16> to vector<32x192xbf16>
    %c2 = arith.constant 2 : index
    %c0_23 = arith.constant 0 : index
    %c0_24 = arith.constant 0 : index
    %38 = vector.load %arg5[%c2, %c0_23, %c0_24] : memref<3x192x128xbf16, #tpu.memory_space<vmem>>, vector<1x192x128xbf16>
    %39 = vector.shape_cast %38 : vector<1x192x128xbf16> to vector<192x128xbf16>
    %cst_25 = arith.constant dense<0.000000e+00> : vector<32x128xf32>
    %40 = tpu.matmul %37, %39, %cst_25 {dimension_numbers = #tpu.dot_dimension_numbers<[1], [0], [0], [1], [0, 0, 1, 1], [], []>} : vector<32x192xbf16>, vector<192x128xbf16>, vector<32x128xf32> -> vector<32x128xf32>
    %41 = arith.addf %35, %40 : vector<32x128xf32>
    %c0_26 = arith.constant 0 : index
    %c0_27 = arith.constant 0 : index
    %42 = vector.load %arg6[%c0_26, %c0_27] : memref<1x128xf32, #tpu.memory_space<vmem>>, vector<1x128xf32>
    %43 = vector.broadcast %42 : vector<1x128xf32> to vector<32x128xf32>
    %44 = arith.addf %41, %43 : vector<32x128xf32>
    %cst_28 = arith.constant 0.000000e+00 : f32
    %45 = vector.broadcast %cst_28 : f32 to vector<32x128xf32>
    %46 = arith.maximumf %44, %45 : vector<32x128xf32>
    %47 = vector.shape_cast %46 : vector<32x128xf32> to vector<4x8x128xf32>
    %48 = arith.truncf %47 : vector<4x8x128xf32> to vector<4x8x128xbf16>
    %c0_29 = arith.constant 0 : index
    %c0_30 = arith.constant 0 : index
    %c0_31 = arith.constant 0 : index
    %c0_32 = arith.constant 0 : index
    %49 = vector.load %arg7[%c0_29, %c0_30, %c0_31, %c0_32] : memref<1x4x8x128xbf16, #tpu.memory_space<vmem>>, vector<1x4x8x128xbf16>
    %50 = vector.shape_cast %49 : vector<1x4x8x128xbf16> to vector<4x8x128xbf16>
    %51 = vector.shape_cast %48 : vector<4x8x128xbf16> to vector<1x4x8x128xbf16>
    tpu.vector_store %arg7[%c0_29, %c0_30, %c0_31, %c0_32], %51 {strides = array<i32>} : memref<1x4x8x128xbf16, #tpu.memory_space<vmem>>, vector<1x4x8x128xbf16>,
    return
  }
  func.func @transform_0(%arg0: i32, %arg1: i32) -> (i32, i32, i32, i32) {
    %c4_i32 = arith.constant 4 : i32
    %0 = arith.muli %arg1, %c4_i32 : i32
    %c1_i32 = arith.constant 1 : i32
    %1 = arith.subi %0, %c1_i32 : i32
    %c0_i32 = arith.constant 0 : i32
    %2 = arith.maxsi %1, %c0_i32 : i32
    %c0_i32_0 = arith.constant 0 : i32
    %c0_i32_1 = arith.constant 0 : i32
    %c0_i32_2 = arith.constant 0 : i32
    return %arg0, %2, %c0_i32_0, %c0_i32_1 : i32, i32, i32, i32
  }
  func.func @transform_1(%arg0: i32, %arg1: i32) -> (i32, i32, i32, i32) {
    %c0_i32 = arith.constant 0 : i32
    %c0_i32_0 = arith.constant 0 : i32
    %c0_i32_1 = arith.constant 0 : i32
    return %arg0, %arg1, %c0_i32, %c0_i32_0 : i32, i32, i32, i32
  }
  func.func @transform_2(%arg0: i32, %arg1: i32) -> (i32, i32, i32, i32) {
    %c1_i32 = arith.constant 1 : i32
    %0 = arith.addi %arg1, %c1_i32 : i32
    %c4_i32 = arith.constant 4 : i32
    %1 = arith.muli %0, %c4_i32 : i32
    %c7_i32 = arith.constant 7 : i32
    %2 = arith.minsi %1, %c7_i32 : i32
    %c0_i32 = arith.constant 0 : i32
    %c0_i32_0 = arith.constant 0 : i32
    %c0_i32_1 = arith.constant 0 : i32
    return %arg0, %2, %c0_i32, %c0_i32_0 : i32, i32, i32, i32
  }
  func.func @transform_3(%arg0: i32, %arg1: i32) -> (i32, i32, i32) {
    %c0_i32 = arith.constant 0 : i32
    %c0_i32_0 = arith.constant 0 : i32
    %c0_i32_1 = arith.constant 0 : i32
    %c0_i32_2 = arith.constant 0 : i32
    return %c0_i32, %c0_i32_0, %c0_i32_1 : i32, i32, i32
  }
  func.func @transform_4(%arg0: i32, %arg1: i32) -> (i32, i32) {
    %c0_i32 = arith.constant 0 : i32
    %c0_i32_0 = arith.constant 0 : i32
    %c0_i32_1 = arith.constant 0 : i32
    return %c0_i32, %c0_i32_0 : i32, i32
  }
  func.func @transform_5(%arg0: i32, %arg1: i32) -> (i32, i32, i32, i32) {
    %c0_i32 = arith.constant 0 : i32
    %c0_i32_0 = arith.constant 0 : i32
    %c0_i32_1 = arith.constant 0 : i32
    return %arg0, %arg1, %c0_i32, %c0_i32_0 : i32, i32, i32, i32
  }
}

module attributes {stable_mosaic.version = 11 : i64} {
  func.func @_conv3x3_kernel(%arg0: i32, %arg1: i32, %arg2: memref<1x1x8x128xbf16, #tpu.memory_space<vmem>>, %arg3: memref<1x4x8x128xbf16, #tpu.memory_space<vmem>>, %arg4: memref<1x1x8x128xbf16, #tpu.memory_space<vmem>>, %arg5: memref<3x384x128xbf16, #tpu.memory_space<vmem>>, %arg6: memref<1x128xf32, #tpu.memory_space<vmem>>, %arg7: memref<1x2x4x128xbf16, #tpu.memory_space<vmem>>) attributes {dimension_semantics = [#tpu.dimension_semantics<parallel>, #tpu.dimension_semantics<parallel>], iteration_bounds = array<i64: 2, 2>, scalar_prefetch = 0 : i64, scratch_operands = 0 : i64, tpu.core_type = #tpu.core_type<tc>, window_params = [{transform_indices = @transform_0, window_bounds = array<i64: 1, 1, 8, 128>}, {transform_indices = @transform_1, window_bounds = array<i64: 1, 4, 8, 128>}, {transform_indices = @transform_2, window_bounds = array<i64: 1, 1, 8, 128>}, {pipeline_mode = #tpu.pipeline_mode<synchronous>, transform_indices = @transform_3, window_bounds = array<i64: 3, 384, 128>}, {pipeline_mode = #tpu.pipeline_mode<synchronous>, transform_indices = @transform_4, window_bounds = array<i64: 1, 128>}, {transform_indices = @transform_5, window_bounds = array<i64: 1, 2, 4, 128>}]} {
    %c0_i32 = arith.constant 0 : i32
    %0 = arith.cmpi sgt, %arg1, %c0_i32 : i32
    %cst = arith.constant 1.000000e+00 : f32
    %cst_0 = arith.constant 0.000000e+00 : f32
    %1 = arith.select %0, %cst, %cst_0 : f32
    %2 = arith.truncf %1 : f32 to bf16
    %c1_i32 = arith.constant 1 : i32
    %3 = arith.cmpi slt, %arg1, %c1_i32 : i32
    %cst_1 = arith.constant 1.000000e+00 : f32
    %cst_2 = arith.constant 0.000000e+00 : f32
    %4 = arith.select %3, %cst_1, %cst_2 : f32
    %5 = arith.truncf %4 : f32 to bf16
    %c0 = arith.constant 0 : index
    %c0_3 = arith.constant 0 : index
    %c0_4 = arith.constant 0 : index
    %c0_5 = arith.constant 0 : index
    %6 = vector.load %arg2[%c0, %c0_3, %c0_4, %c0_5] : memref<1x1x8x128xbf16, #tpu.memory_space<vmem>>, vector<1x1x8x128xbf16>
    %7 = vector.shape_cast %6 : vector<1x1x8x128xbf16> to vector<1x8x128xbf16>
    %8 = vector.broadcast %2 : bf16 to vector<1x8x128xbf16>
    %9 = arith.mulf %7, %8 : vector<1x8x128xbf16>
    %c0_6 = arith.constant 0 : index
    %c0_7 = arith.constant 0 : index
    %c0_8 = arith.constant 0 : index
    %c0_9 = arith.constant 0 : index
    %10 = vector.load %arg3[%c0_6, %c0_7, %c0_8, %c0_9] : memref<1x4x8x128xbf16, #tpu.memory_space<vmem>>, vector<1x4x8x128xbf16>
    %11 = vector.shape_cast %10 : vector<1x4x8x128xbf16> to vector<4x8x128xbf16>
    %c0_10 = arith.constant 0 : index
    %c0_11 = arith.constant 0 : index
    %c0_12 = arith.constant 0 : index
    %c0_13 = arith.constant 0 : index
    %12 = vector.load %arg4[%c0_10, %c0_11, %c0_12, %c0_13] : memref<1x1x8x128xbf16, #tpu.memory_space<vmem>>, vector<1x1x8x128xbf16>
    %13 = vector.shape_cast %12 : vector<1x1x8x128xbf16> to vector<1x8x128xbf16>
    %14 = vector.broadcast %5 : bf16 to vector<1x8x128xbf16>
    %15 = arith.mulf %13, %14 : vector<1x8x128xbf16>
    %16 = tpu.concatenate %9, %11, %15 in 0 : vector<1x8x128xbf16>, vector<4x8x128xbf16>, vector<1x8x128xbf16> -> vector<6x8x128xbf16>
    %cst_14 = arith.constant 0.000000e+00 : bf16
    %17 = vector.broadcast %cst_14 : bf16 to vector<6x1x128xbf16>
    %18 = vector.extract_strided_slice %16 {offsets = [0, 0, 0], sizes = [6, 7, 128], strides = [1, 1, 1]} : vector<6x8x128xbf16> to vector<6x7x128xbf16>
    %19 = tpu.concatenate %17, %18 in 1 : vector<6x1x128xbf16>, vector<6x7x128xbf16> -> vector<6x8x128xbf16>
    %20 = vector.extract_strided_slice %16 {offsets = [0, 1, 0], sizes = [6, 7, 128], strides = [1, 1, 1]} : vector<6x8x128xbf16> to vector<6x7x128xbf16>
    %21 = tpu.concatenate %20, %17 in 1 : vector<6x7x128xbf16>, vector<6x1x128xbf16> -> vector<6x8x128xbf16>
    %22 = tpu.concatenate %19, %16, %21 in 2 : vector<6x8x128xbf16>, vector<6x8x128xbf16>, vector<6x8x128xbf16> -> vector<6x8x384xbf16>
    %cst_15 = arith.constant 0.000000e+00 : f32
    %23 = vector.broadcast %cst_15 : f32 to vector<32x128xf32>
    %24 = vector.extract_strided_slice %22 {offsets = [0, 0, 0], sizes = [4, 8, 384], strides = [1, 1, 1]} : vector<6x8x384xbf16> to vector<4x8x384xbf16>
    %25 = vector.shape_cast %24 : vector<4x8x384xbf16> to vector<32x384xbf16>
    %c0_16 = arith.constant 0 : index
    %c0_17 = arith.constant 0 : index
    %c0_18 = arith.constant 0 : index
    %26 = vector.load %arg5[%c0_16, %c0_17, %c0_18] : memref<3x384x128xbf16, #tpu.memory_space<vmem>>, vector<1x384x128xbf16>
    %27 = vector.shape_cast %26 : vector<1x384x128xbf16> to vector<384x128xbf16>
    %cst_19 = arith.constant dense<0.000000e+00> : vector<32x128xf32>
    %28 = tpu.matmul %25, %27, %cst_19 {dimension_numbers = #tpu.dot_dimension_numbers<[1], [0], [0], [1], [0, 0, 1, 1], [], []>} : vector<32x384xbf16>, vector<384x128xbf16>, vector<32x128xf32> -> vector<32x128xf32>
    %29 = arith.addf %23, %28 : vector<32x128xf32>
    %30 = vector.extract_strided_slice %22 {offsets = [1, 0, 0], sizes = [4, 8, 384], strides = [1, 1, 1]} : vector<6x8x384xbf16> to vector<4x8x384xbf16>
    %31 = vector.shape_cast %30 : vector<4x8x384xbf16> to vector<32x384xbf16>
    %c1 = arith.constant 1 : index
    %c0_20 = arith.constant 0 : index
    %c0_21 = arith.constant 0 : index
    %32 = vector.load %arg5[%c1, %c0_20, %c0_21] : memref<3x384x128xbf16, #tpu.memory_space<vmem>>, vector<1x384x128xbf16>
    %33 = vector.shape_cast %32 : vector<1x384x128xbf16> to vector<384x128xbf16>
    %cst_22 = arith.constant dense<0.000000e+00> : vector<32x128xf32>
    %34 = tpu.matmul %31, %33, %cst_22 {dimension_numbers = #tpu.dot_dimension_numbers<[1], [0], [0], [1], [0, 0, 1, 1], [], []>} : vector<32x384xbf16>, vector<384x128xbf16>, vector<32x128xf32> -> vector<32x128xf32>
    %35 = arith.addf %29, %34 : vector<32x128xf32>
    %36 = vector.extract_strided_slice %22 {offsets = [2, 0, 0], sizes = [4, 8, 384], strides = [1, 1, 1]} : vector<6x8x384xbf16> to vector<4x8x384xbf16>
    %37 = vector.shape_cast %36 : vector<4x8x384xbf16> to vector<32x384xbf16>
    %c2 = arith.constant 2 : index
    %c0_23 = arith.constant 0 : index
    %c0_24 = arith.constant 0 : index
    %38 = vector.load %arg5[%c2, %c0_23, %c0_24] : memref<3x384x128xbf16, #tpu.memory_space<vmem>>, vector<1x384x128xbf16>
    %39 = vector.shape_cast %38 : vector<1x384x128xbf16> to vector<384x128xbf16>
    %cst_25 = arith.constant dense<0.000000e+00> : vector<32x128xf32>
    %40 = tpu.matmul %37, %39, %cst_25 {dimension_numbers = #tpu.dot_dimension_numbers<[1], [0], [0], [1], [0, 0, 1, 1], [], []>} : vector<32x384xbf16>, vector<384x128xbf16>, vector<32x128xf32> -> vector<32x128xf32>
    %41 = arith.addf %35, %40 : vector<32x128xf32>
    %c0_26 = arith.constant 0 : index
    %c0_27 = arith.constant 0 : index
    %42 = vector.load %arg6[%c0_26, %c0_27] : memref<1x128xf32, #tpu.memory_space<vmem>>, vector<1x128xf32>
    %43 = vector.broadcast %42 : vector<1x128xf32> to vector<32x128xf32>
    %44 = arith.addf %41, %43 : vector<32x128xf32>
    %cst_28 = arith.constant 0.000000e+00 : f32
    %45 = vector.broadcast %cst_28 : f32 to vector<32x128xf32>
    %46 = arith.maximumf %44, %45 : vector<32x128xf32>
    %47 = vector.shape_cast %46 : vector<32x128xf32> to vector<4x4x2x128xf32>
    %cst_29 = arith.constant dense<0xFF800000> : vector<4x4x128xf32>
    %48 = vector.multi_reduction <maximumf>, %47, %cst_29 [2] : vector<4x4x2x128xf32> to vector<4x4x128xf32>
    %49 = vector.shape_cast %48 : vector<4x4x128xf32> to vector<2x2x4x128xf32>
    %cst_30 = arith.constant dense<0xFF800000> : vector<2x4x128xf32>
    %50 = vector.multi_reduction <maximumf>, %49, %cst_30 [1] : vector<2x2x4x128xf32> to vector<2x4x128xf32>
    %51 = arith.truncf %50 : vector<2x4x128xf32> to vector<2x4x128xbf16>
    %c0_31 = arith.constant 0 : index
    %c0_32 = arith.constant 0 : index
    %c0_33 = arith.constant 0 : index
    %c0_34 = arith.constant 0 : index
    %52 = vector.load %arg7[%c0_31, %c0_32, %c0_33, %c0_34] : memref<1x2x4x128xbf16, #tpu.memory_space<vmem>>, vector<1x2x4x128xbf16>
    %53 = vector.shape_cast %52 : vector<1x2x4x128xbf16> to vector<2x4x128xbf16>
    %54 = vector.shape_cast %51 : vector<2x4x128xbf16> to vector<1x2x4x128xbf16>
    tpu.vector_store %arg7[%c0_31, %c0_32, %c0_33, %c0_34], %54 {strides = array<i32>} : memref<1x2x4x128xbf16, #tpu.memory_space<vmem>>, vector<1x2x4x128xbf16>,
    return
  }
  func.func @transform_0(%arg0: i32, %arg1: i32) -> (i32, i32, i32, i32) {
    %c4_i32 = arith.constant 4 : i32
    %0 = arith.muli %arg1, %c4_i32 : i32
    %c1_i32 = arith.constant 1 : i32
    %1 = arith.subi %0, %c1_i32 : i32
    %c0_i32 = arith.constant 0 : i32
    %2 = arith.maxsi %1, %c0_i32 : i32
    %c0_i32_0 = arith.constant 0 : i32
    %c0_i32_1 = arith.constant 0 : i32
    %c0_i32_2 = arith.constant 0 : i32
    return %arg0, %2, %c0_i32_0, %c0_i32_1 : i32, i32, i32, i32
  }
  func.func @transform_1(%arg0: i32, %arg1: i32) -> (i32, i32, i32, i32) {
    %c0_i32 = arith.constant 0 : i32
    %c0_i32_0 = arith.constant 0 : i32
    %c0_i32_1 = arith.constant 0 : i32
    return %arg0, %arg1, %c0_i32, %c0_i32_0 : i32, i32, i32, i32
  }
  func.func @transform_2(%arg0: i32, %arg1: i32) -> (i32, i32, i32, i32) {
    %c1_i32 = arith.constant 1 : i32
    %0 = arith.addi %arg1, %c1_i32 : i32
    %c4_i32 = arith.constant 4 : i32
    %1 = arith.muli %0, %c4_i32 : i32
    %c7_i32 = arith.constant 7 : i32
    %2 = arith.minsi %1, %c7_i32 : i32
    %c0_i32 = arith.constant 0 : i32
    %c0_i32_0 = arith.constant 0 : i32
    %c0_i32_1 = arith.constant 0 : i32
    return %arg0, %2, %c0_i32, %c0_i32_0 : i32, i32, i32, i32
  }
  func.func @transform_3(%arg0: i32, %arg1: i32) -> (i32, i32, i32) {
    %c0_i32 = arith.constant 0 : i32
    %c0_i32_0 = arith.constant 0 : i32
    %c0_i32_1 = arith.constant 0 : i32
    %c0_i32_2 = arith.constant 0 : i32
    return %c0_i32, %c0_i32_0, %c0_i32_1 : i32, i32, i32
  }
  func.func @transform_4(%arg0: i32, %arg1: i32) -> (i32, i32) {
    %c0_i32 = arith.constant 0 : i32
    %c0_i32_0 = arith.constant 0 : i32
    %c0_i32_1 = arith.constant 0 : i32
    return %c0_i32, %c0_i32_0 : i32, i32
  }
  func.func @transform_5(%arg0: i32, %arg1: i32) -> (i32, i32, i32, i32) {
    %c0_i32 = arith.constant 0 : i32
    %c0_i32_0 = arith.constant 0 : i32
    %c0_i32_1 = arith.constant 0 : i32
    return %arg0, %arg1, %c0_i32, %c0_i32_0 : i32, i32, i32, i32
  }
}

module attributes {stable_mosaic.version = 11 : i64} {
  func.func @_conv3x3_kernel(%arg0: i32, %arg1: i32, %arg2: memref<1x1x4x128xbf16, #tpu.memory_space<vmem>>, %arg3: memref<1x4x4x128xbf16, #tpu.memory_space<vmem>>, %arg4: memref<1x1x4x128xbf16, #tpu.memory_space<vmem>>, %arg5: memref<3x384x256xbf16, #tpu.memory_space<vmem>>, %arg6: memref<1x256xf32, #tpu.memory_space<vmem>>, %arg7: memref<1x4x4x256xf32, #tpu.memory_space<vmem>>) attributes {dimension_semantics = [#tpu.dimension_semantics<parallel>, #tpu.dimension_semantics<parallel>], iteration_bounds = array<i64: 2, 1>, scalar_prefetch = 0 : i64, scratch_operands = 0 : i64, tpu.core_type = #tpu.core_type<tc>, window_params = [{transform_indices = @transform_0, window_bounds = array<i64: 1, 1, 4, 128>}, {transform_indices = @transform_1, window_bounds = array<i64: 1, 4, 4, 128>}, {transform_indices = @transform_2, window_bounds = array<i64: 1, 1, 4, 128>}, {pipeline_mode = #tpu.pipeline_mode<synchronous>, transform_indices = @transform_3, window_bounds = array<i64: 3, 384, 256>}, {pipeline_mode = #tpu.pipeline_mode<synchronous>, transform_indices = @transform_4, window_bounds = array<i64: 1, 256>}, {transform_indices = @transform_5, window_bounds = array<i64: 1, 4, 4, 256>}]} {
    %c0_i32 = arith.constant 0 : i32
    %0 = arith.cmpi sgt, %arg1, %c0_i32 : i32
    %cst = arith.constant 1.000000e+00 : f32
    %cst_0 = arith.constant 0.000000e+00 : f32
    %1 = arith.select %0, %cst, %cst_0 : f32
    %2 = arith.truncf %1 : f32 to bf16
    %c0_i32_1 = arith.constant 0 : i32
    %3 = arith.cmpi slt, %arg1, %c0_i32_1 : i32
    %cst_2 = arith.constant 1.000000e+00 : f32
    %cst_3 = arith.constant 0.000000e+00 : f32
    %4 = arith.select %3, %cst_2, %cst_3 : f32
    %5 = arith.truncf %4 : f32 to bf16
    %c0 = arith.constant 0 : index
    %c0_4 = arith.constant 0 : index
    %c0_5 = arith.constant 0 : index
    %c0_6 = arith.constant 0 : index
    %6 = vector.load %arg2[%c0, %c0_4, %c0_5, %c0_6] : memref<1x1x4x128xbf16, #tpu.memory_space<vmem>>, vector<1x1x4x128xbf16>
    %7 = vector.shape_cast %6 : vector<1x1x4x128xbf16> to vector<1x4x128xbf16>
    %8 = vector.broadcast %2 : bf16 to vector<1x4x128xbf16>
    %9 = arith.mulf %7, %8 : vector<1x4x128xbf16>
    %c0_7 = arith.constant 0 : index
    %c0_8 = arith.constant 0 : index
    %c0_9 = arith.constant 0 : index
    %c0_10 = arith.constant 0 : index
    %10 = vector.load %arg3[%c0_7, %c0_8, %c0_9, %c0_10] : memref<1x4x4x128xbf16, #tpu.memory_space<vmem>>, vector<1x4x4x128xbf16>
    %11 = vector.shape_cast %10 : vector<1x4x4x128xbf16> to vector<4x4x128xbf16>
    %c0_11 = arith.constant 0 : index
    %c0_12 = arith.constant 0 : index
    %c0_13 = arith.constant 0 : index
    %c0_14 = arith.constant 0 : index
    %12 = vector.load %arg4[%c0_11, %c0_12, %c0_13, %c0_14] : memref<1x1x4x128xbf16, #tpu.memory_space<vmem>>, vector<1x1x4x128xbf16>
    %13 = vector.shape_cast %12 : vector<1x1x4x128xbf16> to vector<1x4x128xbf16>
    %14 = vector.broadcast %5 : bf16 to vector<1x4x128xbf16>
    %15 = arith.mulf %13, %14 : vector<1x4x128xbf16>
    %16 = tpu.concatenate %9, %11, %15 in 0 : vector<1x4x128xbf16>, vector<4x4x128xbf16>, vector<1x4x128xbf16> -> vector<6x4x128xbf16>
    %cst_15 = arith.constant 0.000000e+00 : bf16
    %17 = vector.broadcast %cst_15 : bf16 to vector<6x1x128xbf16>
    %18 = vector.extract_strided_slice %16 {offsets = [0, 0, 0], sizes = [6, 3, 128], strides = [1, 1, 1]} : vector<6x4x128xbf16> to vector<6x3x128xbf16>
    %19 = tpu.concatenate %17, %18 in 1 : vector<6x1x128xbf16>, vector<6x3x128xbf16> -> vector<6x4x128xbf16>
    %20 = vector.extract_strided_slice %16 {offsets = [0, 1, 0], sizes = [6, 3, 128], strides = [1, 1, 1]} : vector<6x4x128xbf16> to vector<6x3x128xbf16>
    %21 = tpu.concatenate %20, %17 in 1 : vector<6x3x128xbf16>, vector<6x1x128xbf16> -> vector<6x4x128xbf16>
    %22 = tpu.concatenate %19, %16, %21 in 2 : vector<6x4x128xbf16>, vector<6x4x128xbf16>, vector<6x4x128xbf16> -> vector<6x4x384xbf16>
    %cst_16 = arith.constant 0.000000e+00 : f32
    %23 = vector.broadcast %cst_16 : f32 to vector<16x256xf32>
    %24 = vector.extract_strided_slice %22 {offsets = [0, 0, 0], sizes = [4, 4, 384], strides = [1, 1, 1]} : vector<6x4x384xbf16> to vector<4x4x384xbf16>
    %25 = vector.shape_cast %24 : vector<4x4x384xbf16> to vector<16x384xbf16>
    %c0_17 = arith.constant 0 : index
    %c0_18 = arith.constant 0 : index
    %c0_19 = arith.constant 0 : index
    %26 = vector.load %arg5[%c0_17, %c0_18, %c0_19] : memref<3x384x256xbf16, #tpu.memory_space<vmem>>, vector<1x384x256xbf16>
    %27 = vector.shape_cast %26 : vector<1x384x256xbf16> to vector<384x256xbf16>
    %cst_20 = arith.constant dense<0.000000e+00> : vector<16x256xf32>
    %28 = tpu.matmul %25, %27, %cst_20 {dimension_numbers = #tpu.dot_dimension_numbers<[1], [0], [0], [1], [0, 0, 1, 1], [], []>} : vector<16x384xbf16>, vector<384x256xbf16>, vector<16x256xf32> -> vector<16x256xf32>
    %29 = arith.addf %23, %28 : vector<16x256xf32>
    %30 = vector.extract_strided_slice %22 {offsets = [1, 0, 0], sizes = [4, 4, 384], strides = [1, 1, 1]} : vector<6x4x384xbf16> to vector<4x4x384xbf16>
    %31 = vector.shape_cast %30 : vector<4x4x384xbf16> to vector<16x384xbf16>
    %c1 = arith.constant 1 : index
    %c0_21 = arith.constant 0 : index
    %c0_22 = arith.constant 0 : index
    %32 = vector.load %arg5[%c1, %c0_21, %c0_22] : memref<3x384x256xbf16, #tpu.memory_space<vmem>>, vector<1x384x256xbf16>
    %33 = vector.shape_cast %32 : vector<1x384x256xbf16> to vector<384x256xbf16>
    %cst_23 = arith.constant dense<0.000000e+00> : vector<16x256xf32>
    %34 = tpu.matmul %31, %33, %cst_23 {dimension_numbers = #tpu.dot_dimension_numbers<[1], [0], [0], [1], [0, 0, 1, 1], [], []>} : vector<16x384xbf16>, vector<384x256xbf16>, vector<16x256xf32> -> vector<16x256xf32>
    %35 = arith.addf %29, %34 : vector<16x256xf32>
    %36 = vector.extract_strided_slice %22 {offsets = [2, 0, 0], sizes = [4, 4, 384], strides = [1, 1, 1]} : vector<6x4x384xbf16> to vector<4x4x384xbf16>
    %37 = vector.shape_cast %36 : vector<4x4x384xbf16> to vector<16x384xbf16>
    %c2 = arith.constant 2 : index
    %c0_24 = arith.constant 0 : index
    %c0_25 = arith.constant 0 : index
    %38 = vector.load %arg5[%c2, %c0_24, %c0_25] : memref<3x384x256xbf16, #tpu.memory_space<vmem>>, vector<1x384x256xbf16>
    %39 = vector.shape_cast %38 : vector<1x384x256xbf16> to vector<384x256xbf16>
    %cst_26 = arith.constant dense<0.000000e+00> : vector<16x256xf32>
    %40 = tpu.matmul %37, %39, %cst_26 {dimension_numbers = #tpu.dot_dimension_numbers<[1], [0], [0], [1], [0, 0, 1, 1], [], []>} : vector<16x384xbf16>, vector<384x256xbf16>, vector<16x256xf32> -> vector<16x256xf32>
    %41 = arith.addf %35, %40 : vector<16x256xf32>
    %c0_27 = arith.constant 0 : index
    %c0_28 = arith.constant 0 : index
    %42 = vector.load %arg6[%c0_27, %c0_28] : memref<1x256xf32, #tpu.memory_space<vmem>>, vector<1x256xf32>
    %43 = vector.broadcast %42 : vector<1x256xf32> to vector<16x256xf32>
    %44 = arith.addf %41, %43 : vector<16x256xf32>
    %cst_29 = arith.constant 0.000000e+00 : f32
    %45 = vector.broadcast %cst_29 : f32 to vector<16x256xf32>
    %46 = arith.maximumf %44, %45 : vector<16x256xf32>
    %47 = vector.shape_cast %46 : vector<16x256xf32> to vector<4x4x256xf32>
    %c0_30 = arith.constant 0 : index
    %c0_31 = arith.constant 0 : index
    %c0_32 = arith.constant 0 : index
    %c0_33 = arith.constant 0 : index
    %48 = vector.load %arg7[%c0_30, %c0_31, %c0_32, %c0_33] : memref<1x4x4x256xf32, #tpu.memory_space<vmem>>, vector<1x4x4x256xf32>
    %49 = vector.shape_cast %48 : vector<1x4x4x256xf32> to vector<4x4x256xf32>
    %50 = vector.shape_cast %47 : vector<4x4x256xf32> to vector<1x4x4x256xf32>
    tpu.vector_store %arg7[%c0_30, %c0_31, %c0_32, %c0_33], %50 {strides = array<i32>} : memref<1x4x4x256xf32, #tpu.memory_space<vmem>>, vector<1x4x4x256xf32>,
    return
  }
  func.func @transform_0(%arg0: i32, %arg1: i32) -> (i32, i32, i32, i32) {
    %c4_i32 = arith.constant 4 : i32
    %0 = arith.muli %arg1, %c4_i32 : i32
    %c1_i32 = arith.constant 1 : i32
    %1 = arith.subi %0, %c1_i32 : i32
    %c0_i32 = arith.constant 0 : i32
    %2 = arith.maxsi %1, %c0_i32 : i32
    %c0_i32_0 = arith.constant 0 : i32
    %c0_i32_1 = arith.constant 0 : i32
    %c0_i32_2 = arith.constant 0 : i32
    return %arg0, %2, %c0_i32_0, %c0_i32_1 : i32, i32, i32, i32
  }
  func.func @transform_1(%arg0: i32, %arg1: i32) -> (i32, i32, i32, i32) {
    %c0_i32 = arith.constant 0 : i32
    %c0_i32_0 = arith.constant 0 : i32
    %c0_i32_1 = arith.constant 0 : i32
    return %arg0, %arg1, %c0_i32, %c0_i32_0 : i32, i32, i32, i32
  }
  func.func @transform_2(%arg0: i32, %arg1: i32) -> (i32, i32, i32, i32) {
    %c1_i32 = arith.constant 1 : i32
    %0 = arith.addi %arg1, %c1_i32 : i32
    %c4_i32 = arith.constant 4 : i32
    %1 = arith.muli %0, %c4_i32 : i32
    %c3_i32 = arith.constant 3 : i32
    %2 = arith.minsi %1, %c3_i32 : i32
    %c0_i32 = arith.constant 0 : i32
    %c0_i32_0 = arith.constant 0 : i32
    %c0_i32_1 = arith.constant 0 : i32
    return %arg0, %2, %c0_i32, %c0_i32_0 : i32, i32, i32, i32
  }
  func.func @transform_3(%arg0: i32, %arg1: i32) -> (i32, i32, i32) {
    %c0_i32 = arith.constant 0 : i32
    %c0_i32_0 = arith.constant 0 : i32
    %c0_i32_1 = arith.constant 0 : i32
    %c0_i32_2 = arith.constant 0 : i32
    return %c0_i32, %c0_i32_0, %c0_i32_1 : i32, i32, i32
  }
  func.func @transform_4(%arg0: i32, %arg1: i32) -> (i32, i32) {
    %c0_i32 = arith.constant 0 : i32
    %c0_i32_0 = arith.constant 0 : i32
    %c0_i32_1 = arith.constant 0 : i32
    return %c0_i32, %c0_i32_0 : i32, i32
  }
  func.func @transform_5(%arg0: i32, %arg1: i32) -> (i32, i32, i32, i32) {
    %c0_i32 = arith.constant 0 : i32
    %c0_i32_0 = arith.constant 0 : i32
    %c0_i32_1 = arith.constant 0 : i32
    return %arg0, %arg1, %c0_i32, %c0_i32_0 : i32, i32, i32, i32
  }
}

</mosaic_0001>

<bundles_post_ra>
// kernel: feature_extractor.5
= control target key start
LH: loop header
LB: loop body
LE: loop exit
PB: predicated region body
PF: predicated region fallthrough
CT: control target
= control target key end

     0   :  { %s831_s12 = smov 0   ;;  %s833_s13 = smov 0   ;;  %s958_s0 = inlined_call_operand.vmem [shape: bf16[2,16,16,27], index: 0, kind: input, shape index: {}]   ;;  %s959_s1 = inlined_call_operand.vmem [shape: bf16[27,64], index: 1, kind: input, shape index: {}]   ;;  %s960_s2 = inlined_call_operand.vmem [shape: f32[1,64], index: 2, kind: input, shape index: {}]   ;;  %s961_s3 = inlined_call_operand.vmem [shape: bf16[2,16,16,64], index: 3, kind: output, shape index: {}]  }
   0x1   :  { %s835_s14 = smov 0   ;;  %s837_s15 = smov 0  }
   0x2   :  { %s839_s16 = smov 0  }
   0x3 LB: > { %s22_s17 = sadd.s32 1, %s800_s14  ;;  %s25_s18 = sadd.s32 1, %s804_s15  ;;  %s808_s16 = sphi %s839_s16, %s13_s16   ;;  %s804_s15 = sphi %s837_s15, %s965_s15   ;;  %s800_s14 = sphi %s835_s14, %s964_s14   ;;  %s796_s13 = sphi %s833_s13, %s963_s13   ;;  %s792_s12 = sphi %s831_s12, %s962_s12  }
   0x4   : > { %p23_p0 = scmp.ge.s32.totalorder %s22_s17, 2  ;;  %p623_p1 = scmp.ge.s32.totalorder %s808_s16, 1 }
   0x5   : > { %p159_p2 = scmp.lt.s32.totalorder %s808_s16, 5 }
   0x6   : > { %s967_s17 = smov (%p23_p0, %s22_s17), 0  ;;  %s969_s18 = smov (!%p23_p0, %s25_s18), %s804_s15 }
   0x7   : > { %p160_p3 = pnand %p623_p1, %p159_p2  ;;  %p27_p4 = scmp.ge.s32.totalorder %s969_s18, 2 }
   0x8   : > { %s624_s21 = sshll.u32 (!%p160_p3), %s792_s12, 3  ;;  %p194_p5 = scmp.lt.s32.totalorder (!%p160_p3), %s796_s13, 1 }
   0x9   : > { %s971_s18 = smov (%p27_p4, %s969_s18), 0  ;;  %163 = sbr.rel (%p160_p3) target bundleno = 242 (0xf2), region = 32 }
   0xa   : > { %p196_p6 = scmp.lt.s32.totalorder (!%p160_p3), %s624_s21, 15 }
   0xe   : > { %v760_v0 = vld [vmem:[%s959_s1 + $0x8] sm:$0x3f]   ;;  %vm319_vm0 = vcmask 1044480   ;;  %vm320_vm1 = vcmask 1045504   ;;  %v810_v1 = vmov 65535   ;;  %v761_v5 = vld [vmem:[%s959_s1] sm:$0xff]  }
   0xf   : > { %v321_v2 = vsel %vm319_vm0, 4294967295, %v810_v1  ;;  %s973_s13 = smov (!%p194_p5, %s796_s13), 1  ;;  %s975_s21 = smov (!%p196_p6, %s624_s21), 15  ;;  %vm294_vm2 = vcmask 220160   ;;  %v886_v14 = vld [vmem:[%s960_s2] ss:$0 sm:$0xff] }
  0x10   : > { %v322_v3 = vsel %vm320_vm1, %v321_v2, 0  ;;  %s626_s24 = sshll.u32 %s973_s13, 5  ;;  %s625_s25 = sshll.u32 %s975_s21, 1  ;;  %vm503_vm3 = vcmask 519168  }
  0x11   : > { %v324_v4 = vand.u32 %v760_v0, %v322_v3  ;;  %s867_s26 = sadd.s32 %s626_s24, %s625_s25 }
  0x12   : > { %s627_s27 = sshll.u32 %s867_s26, 2 }
  0x13   : > { %695 = vmatprep.subr.bf16.mxu0 %v324_v4  ;;  %715 = vmatprep.subr.bf16.mxu1 %v324_v4  ;;  %s202_s30 = scalar_lea.vmem %s958_s0, %s627_s27  ;;  %s896_s8 = scalar_lea.vmem %s961_s3, %s627_s27 }
  0x14   : > { %696 = vmatpush3.bf16.msra.mxu0 %v324_v4  ;;  %717 = vmatpush3.bf16.msra.mxu1 %v324_v4  ;;  %v762_v6 = vld [vmem:[%s202_s30] sm:$0xff]   ;;  %v764_v8 = vld [vmem:[%s202_s30 + $0x8] sm:$0xff]   ;;  %v766_v10 = vld [vmem:[%s202_s30 + $0x10] sm:$0xff]  }
  0x15   : > { %697 = vmatprep.subr.bf16.mxu0 %v761_v5  ;;  %716 = vmatprep.subr.bf16.mxu1 %v761_v5  ;;  %v763_v7 = vld [vmem:[%s202_s30 + $0x20] sm:$0xff]   ;;  %v765_v9 = vld [vmem:[%s202_s30 + $0x28] sm:$0xff]   ;;  %v767_v11 = vld [vmem:[%s202_s30 + $0x30] sm:$0xff]  }
  0x16   : > { %699 = vmatprep.mubr.msk.bf16.mxu0 %vm294_vm2, %v762_v6  ;;  %707 = vmatprep.mubr.msk.bf16.mxu1 %vm294_vm2, %v763_v7  ;;  %v768_v12 = vld [vmem:[%s202_s30 + $0x18] sm:$0xff]  }
  0x17   : > { %v769_v13 = vld [vmem:[%s202_s30 + $0x38] sm:$0xff]  }
  0x18   : > { %698 = vmatpush3.bf16.msra.mxu0 %v761_v5  ;;  %718 = vmatpush3.bf16.msra.mxu1 %v761_v5 }
  0x1b   : > { %700 = vmatmul.mubr.msk.bf16.vlgmr.msra.gmra.mxu0 %vm294_vm2, %v764_v8  ;;  %708 = vmatmul.mubr.msk.bf16.vlgmr.msra.gmra.mxu1 %vm294_vm2, %v765_v9 }
  0x1c   : > { %703 = vmatprep.mubr.msk.bf16.mxu0 %vm294_vm2, %v766_v10  ;;  %711 = vmatprep.mubr.msk.bf16.mxu1 %vm294_vm2, %v767_v11 }
  0x23   : > { %704 = vmatmul.mubr.msk.bf16.gmra.mxu0 %vm294_vm2, %v768_v12  ;;  %712 = vmatmul.mubr.msk.bf16.gmra.mxu1 %vm294_vm2, %v769_v13 }
  0xdb   : > { %v701_v15 = vpop.f32.mrf.mxu0  ;;  %v709_v17 = vpop.f32.mrf.mxu1 }
  0xdc   : > { %v369_v16 = vadd.f32 %v701_v15, %v886_v14  ;;  %v401_v18 = vadd.f32 %v709_v17, %v886_v14 }
  0xdd   : > { %v360_v19 = vpop.f32.mrf.mxu0  ;;  %v392_v22 = vpop.f32.mrf.mxu1 }
  0xde   : > { %v425_v20 = vmax.f32 %v369_v16, 0.0  ;;  %v361_v21 = vadd.f32 %v886_v14, %v360_v19  ;;  %v433_v23 = vmax.f32 %v401_v18, 0.0  ;;  %v393_v24 = vadd.f32 %v886_v14, %v392_v22 }
  0xdf   : > { %v702_v25 = vpop.f32.mrf.mxu0  ;;  %v710_v29 = vpop.f32.mrf.mxu1 }
  0xe0   : > { %v671_v26 = vpack.c.bf16 %v425_v20, %v425_v20  ;;  %v423_v27 = vmax.f32 %v361_v21, 0.0  ;;  %v372_v28 = vadd.f32 %v702_v25, %v886_v14  ;;  %v679_v30 = vpack.c.bf16 %v433_v23, %v433_v23 }
  0xe1   : > { %v431_v31 = vmax.f32 %v393_v24, 0.0  ;;  %v404_v32 = vadd.f32 %v710_v29, %v886_v14  ;;  %v363_v33 = vpop.f32.mrf.mxu0  ;;  %v395_v37 = vpop.f32.mrf.mxu1 }
  0xe2   : > { %506 = vst.msk [vmem:[%s896_s8 + $0x8] sm:$0xf] %vm503_vm3, %v671_v26  ;;  %v669_v34 = vpack.c.bf16 %v423_v27, %v423_v27  ;;  %v426_v35 = vmax.f32 %v372_v28, 0.0  ;;  %v364_v36 = vadd.f32 %v886_v14, %v363_v33  ;;  %514 = vst.msk [vmem:[%s896_s8 + $0x28] sm:$0xf] %vm503_vm3, %v679_v30  ;;  %v396_v40 = vadd.f32 %v886_v14, %v395_v37 }
  0xe3   : > { %v677_v38 = vpack.c.bf16 %v431_v31, %v431_v31  ;;  %v434_v39 = vmax.f32 %v404_v32, 0.0  ;;  %v705_v41 = vpop.f32.mrf.mxu0  ;;  %v713_v45 = vpop.f32.mrf.mxu1 }
  0xe4   : > { %504 = vst.msk [vmem:[%s896_s8] sm:$0xf] %vm503_vm3, %v669_v34  ;;  %v672_v42 = vpack.c.bf16 %v426_v35, %v426_v35  ;;  %v424_v43 = vmax.f32 %v364_v36, 0.0  ;;  %v385_v44 = vadd.f32 %v705_v41, %v886_v14  ;;  %v432_v47 = vmax.f32 %v396_v40, 0.0 }
  0xe5   : > { %512 = vst.msk [vmem:[%s896_s8 + $0x20] sm:$0xf] %vm503_vm3, %v677_v38  ;;  %v680_v46 = vpack.c.bf16 %v434_v39, %v434_v39  ;;  %v417_v48 = vadd.f32 %v713_v45, %v886_v14  ;;  %v376_v49 = vpop.f32.mrf.mxu0  ;;  %v408_v53 = vpop.f32.mrf.mxu1 }
  0xe6   : > { %507 = vst.msk [vmem:[%s896_s8 + $0xc] sm:$0xf] %vm503_vm3, %v672_v42  ;;  %v670_v50 = vpack.c.bf16 %v424_v43, %v424_v43  ;;  %v429_v51 = vmax.f32 %v385_v44, 0.0  ;;  %v377_v52 = vadd.f32 %v886_v14, %v376_v49  ;;  %v678_v54 = vpack.c.bf16 %v432_v47, %v432_v47 }
  0xe7   : > { %515 = vst.msk [vmem:[%s896_s8 + $0x2c] sm:$0xf] %vm503_vm3, %v680_v46  ;;  %v437_v55 = vmax.f32 %v417_v48, 0.0  ;;  %v409_v56 = vadd.f32 %v886_v14, %v408_v53  ;;  %v706_v57 = vpop.f32.mrf.mxu0  ;;  %v714_v61 = vpop.f32.mrf.mxu1 }
  0xe8   : > { %505 = vst.msk [vmem:[%s896_s8 + $0x4] sm:$0xf] %vm503_vm3, %v670_v50  ;;  %v675_v58 = vpack.c.bf16 %v429_v51, %v429_v51  ;;  %v427_v59 = vmax.f32 %v377_v52, 0.0  ;;  %v388_v60 = vadd.f32 %v706_v57, %v886_v14  ;;  %513 = vst.msk [vmem:[%s896_s8 + $0x24] sm:$0xf] %vm503_vm3, %v678_v54  ;;  %v420_v0 = vadd.f32 %v714_v61, %v886_v14 }
  0xe9   : > { %v683_v62 = vpack.c.bf16 %v437_v55, %v437_v55  ;;  %v435_v63 = vmax.f32 %v409_v56, 0.0  ;;  %v379_v1 = vpop.f32.mrf.mxu0  ;;  %v411_v5 = vpop.f32.mrf.mxu1 }
  0xea   : > { %510 = vst.msk [vmem:[%s896_s8 + $0x18] sm:$0xf] %vm503_vm3, %v675_v58  ;;  %v673_v2 = vpack.c.bf16 %v427_v59, %v427_v59  ;;  %v430_v3 = vmax.f32 %v388_v60, 0.0  ;;  %v380_v4 = vadd.f32 %v886_v14, %v379_v1  ;;  %v438_v7 = vmax.f32 %v420_v0, 0.0 }
  0xeb   : > { %518 = vst.msk [vmem:[%s896_s8 + $0x38] sm:$0xf] %vm503_vm3, %v683_v62  ;;  %v681_v6 = vpack.c.bf16 %v435_v63, %v435_v63  ;;  %v412_v8 = vadd.f32 %v886_v14, %v411_v5 }
  0xec   : > { %508 = vst.msk [vmem:[%s896_s8 + $0x10] sm:$0xf] %vm503_vm3, %v673_v2  ;;  %v676_v9 = vpack.c.bf16 %v430_v3, %v430_v3  ;;  %v428_v10 = vmax.f32 %v380_v4, 0.0  ;;  %v684_v11 = vpack.c.bf16 %v438_v7, %v438_v7 }
  0xed   : > { %516 = vst.msk [vmem:[%s896_s8 + $0x30] sm:$0xf] %vm503_vm3, %v681_v6  ;;  %v436_v12 = vmax.f32 %v412_v8, 0.0 }
  0xee   : > { %511 = vst.msk [vmem:[%s896_s8 + $0x1c] sm:$0xf] %vm503_vm3, %v676_v9  ;;  %v674_v13 = vpack.c.bf16 %v428_v10, %v428_v10  ;;  %519 = vst.msk [vmem:[%s896_s8 + $0x3c] sm:$0xf] %vm503_vm3, %v684_v11 }
  0xef   : > { %v682_v15 = vpack.c.bf16 %v436_v12, %v436_v12 }
  0xf0   : > { %509 = vst.msk [vmem:[%s896_s8 + $0x14] sm:$0xf] %vm503_vm3, %v674_v13 }
  0xf1   : > { %517 = vst.msk [vmem:[%s896_s8 + $0x34] sm:$0xf] %vm503_vm3, %v682_v15 }
  0xf2 PF: > { %s13_s16 = sadd.s32 1, %s808_s16   ;;  %s962_s12 = smov %s800_s14 }
  0xf3   : > { %p10_p7 = scmp.ge.s32.totalorder %s13_s16, 6   ;;  %s963_s13 = smov %s804_s15 }
  0xf4   : > { %s964_s14 = smov %s967_s17  ;;  %s965_s15 = smov %s971_s18 }
  0xf5   :  { %12 = sbr.rel (!%p10_p7) target bundleno = 3 (0x3), region = 62 }

// kernel: feature_extractor.6
= control target key start
LH: loop header
LB: loop body
LE: loop exit
PB: predicated region body
PF: predicated region fallthrough
CT: control target
= control target key end

     0   :  { %s3014_s18 = smov 0   ;;  %s3016_s19 = smov 0   ;;  %s3899_s0 = inlined_call_operand.vmem [shape: bf16[2,16,16,64], index: 0, kind: input, shape index: {}, may-alias: {0,1,2}]   ;;  %s3900_s1 = inlined_call_operand.vmem [shape: bf16[2,16,16,64], index: 1, kind: input, shape index: {}, may-alias: {0,1,2}]   ;;  %s3901_s2 = inlined_call_operand.vmem [shape: bf16[2,16,16,64], index: 2, kind: input, shape index: {}, may-alias: {0,1,2}]   ;;  %s3902_s3 = inlined_call_operand.vmem [shape: bf16[3,192,64], index: 3, kind: input, shape index: {}]   ;;  %s3903_s4 = inlined_call_operand.vmem [shape: f32[1,64], index: 4, kind: input, shape index: {}]   ;;  %s3904_s5 = inlined_call_operand.vmem [shape: bf16[2,8,8,64], index: 5, kind: output, shape index: {}]  }
   0x1   :  { %s3018_s20 = smov 0   ;;  %s3020_s21 = smov 0  }
   0x2   :  { %s3022_s22 = smov 0  }
   0x3 LB: > { %s24_s23 = sadd.s32 1, %s2971_s20  ;;  %s27_s24 = sadd.s32 1, %s2975_s21  ;;  %s2979_s22 = sphi %s3022_s22, %s15_s22   ;;  %s2975_s21 = sphi %s3020_s21, %s3916_s21   ;;  %s2971_s20 = sphi %s3018_s20, %s3915_s20   ;;  %s2967_s19 = sphi %s3016_s19, %s3914_s19   ;;  %s2963_s18 = sphi %s3014_s18, %s3913_s18  }
   0x4   : > { %p25_p0 = scmp.ge.s32.totalorder %s24_s23, 2  ;;  %p2611_p1 = scmp.ge.s32.totalorder %s2979_s22, 1 }
   0x5   : > { %p273_p2 = scmp.lt.s32.totalorder %s2979_s22, 5 }
   0x6   : > { %s3918_s23 = smov (%p25_p0, %s24_s23), 0  ;;  %s3920_s24 = smov (!%p25_p0, %s27_s24), %s2975_s21 }
   0x7   : > { %p274_p3 = pnand %p2611_p1, %p273_p2  ;;  %p29_p4 = scmp.ge.s32.totalorder %s3920_s24, 2 }
   0x9   : > { %s3922_s24 = smov (%p29_p4, %s3920_s24), 0  ;;  %277 = sbr.rel (%p274_p3) target bundleno = 622 (0x26e), region = 40 }
   0xe   : > { %s3049_s25 = sshll.u32 %s2963_s18, 3  ;;  %v2904_v0 = vld [vmem:[%s3902_s3 + $0x38] sm:$0xff]   ;;  %p340_p5 = scmp.lt.s32.totalorder %s2967_s19, 1  ;;  %v2981_v1 = vmov 0   ;;  %v2906_v3 = vld [vmem:[%s3902_s3 + $0x30] sm:$0xff]   ;;  %v2908_v5 = vld [vmem:[%s3902_s3 + $0x28] sm:$0xff]  }
   0xf   : > { %s2613_s28 = sadd.s32 4294967295, %s3049_s25  ;;  %1012 = vmatprep.subr.bf16.mxu1 %v2981_v1  ;;  %840 = vmatprep.subr.bf16.mxu0 %v2981_v1  ;;  %v2905_v2 = vld [vmem:[%s3902_s3 + $0x98] sm:$0xff]   ;;  %p356_p8 = scmp.lt.s32.totalorder %s3049_s25, 15  ;;  %v2907_v4 = vld [vmem:[%s3902_s3 + $0x90] sm:$0xff]   ;;  %v2909_v6 = vld [vmem:[%s3902_s3 + $0x88] sm:$0xff]   ;;  %vm621_vm0 = vcmask 1047552  }
  0x10   : > { %p338_p6 = scmp.gt.s32.totalorder %s2613_s28, 0  ;;  %1013 = vmatpush1.bf16.msra.mxu1 %v2904_v0  ;;  %p2614_p7 = scmp.lt.s32.totalorder %s2613_s28, 15  ;;  %841 = vmatpush1.bf16.msra.mxu0 %v2905_v2  ;;  %v2910_v7 = vld [vmem:[%s3902_s3 + $0x20] sm:$0xff]   ;;  %v2912_v9 = vld [vmem:[%s3902_s3 + $0x18] sm:$0xff]   ;;  %v2914_v13 = vld [vmem:[%s3902_s3 + $0x10] sm:$0xff]   ;;  %vm654_vm3 = vcmask 523264  }
  0x11   : > { %1014 = vmatprep.subr.bf16.mxu1 %v2981_v1  ;;  %s3926_s19 = smov (!%p340_p5, %s2967_s19), 1  ;;  %842 = vmatprep.subr.bf16.mxu0 %v2981_v1  ;;  %v2911_v8 = vld [vmem:[%s3902_s3 + $0x80] sm:$0xff]   ;;  %p392_p9 = scmp.gt.s32.totalorder %s2963_s18, 0  ;;  %v2913_v11 = vld [vmem:[%s3902_s3 + $0x78] sm:$0xff]   ;;  %v2915_v16 = vld [vmem:[%s3902_s3 + $0x70] sm:$0xff]   ;;  %vm578_vm4 = vcmask 1040384  }
  0x12   : > { %s3924_s28 = smov (!%p338_p6, %s2613_s28), 0  ;;  %s3084_s15 = sshll.u32 %s3926_s19, 5  ;;  %v2916_v17 = vld [vmem:[%s3902_s3 + $0x8] sm:$0xff]   ;;  %v2918_v21 = vld [vmem:[%s3902_s3] sm:$0xff]   ;;  %v2920_v24 = vld [vmem:[%s3902_s3 + $0x58] sm:$0xff]   ;;  %vm1713_vm7 = vcmask 517120  }
  0x13   : > { %s357_s12 = scalar_select %p356_p8, %s3049_s25, 15  ;;  %v2917_v18 = vld [vmem:[%s3902_s3 + $0x68] sm:$0xff]   ;;  %v2919_v22 = vld [vmem:[%s3902_s3 + $0x60] sm:$0xff]   ;;  %v2921_v27 = vld [vmem:[%s3902_s3 + $0xb8] sm:$0xff]   ;;  %vm622_vm1 = vsmask.f32 7424 }
  0x14   : > { %1015 = vmatpush1.bf16.msra.mxu1 %v2906_v3  ;;  %s3928_s28 = smov (!%p2614_p7, %s3924_s28), 15  ;;  %843 = vmatpush1.bf16.msra.mxu0 %v2907_v4  ;;  %p404_p12 = scmp.lt.s32.totalorder %s2963_s18, 1  ;;  %v2922_v30 = vld [vmem:[%s3902_s3 + $0x50] sm:$0xff]   ;;  %v2924_v37 = vld [vmem:[%s3902_s3 + $0x48] sm:$0xff]   ;;  %vm3206_vm2 = vmand %vm621_vm0, %vm622_vm1  ;;  %vm579_vm5 = vsmask.f32 256 }
  0x15   : > { %1016 = vmatprep.subr.bf16.mxu1 %v2981_v1  ;;  %s2623_s16 = sshll.u32 %s357_s12, 1  ;;  %844 = vmatprep.subr.bf16.mxu0 %v2981_v1  ;;  %s2619_s10 = sshll.u32 %s3928_s28, 1  ;;  %v2923_v33 = vld [vmem:[%s3902_s3 + $0xb0] sm:$0xff]   ;;  %v2925_v41 = vld [vmem:[%s3902_s3 + $0xa8] sm:$0xff]   ;;  %v2926_v49 = vld [vmem:[%s3902_s3 + $0x40] sm:$0xff]   ;;  %vm2418_vm8 = vcmask 1041409  }
  0x16   : > { %s360_s17 = sadd.s32 %s2623_s16, %s3084_s15  ;;  %s346_s16 = sadd.s32 %s3084_s15, %s2619_s10  ;;  %v2927_v57 = vld [vmem:[%s3902_s3 + $0xa0] sm:$0xff]   ;;  %vm3252_vm6 = vmand %vm578_vm4, %vm579_vm5  ;;  %v2928_v2 = vld [vmem:[%s3902_s3 + $0xf8] sm:$0xff]   ;;  %vm2420_vm9 = vcmask 1042434   ;;  %vm2422_vm10 = vcmask 1043459   ;;  %vm2424_vm11 = vcmask 1044484   ;;  %vm2426_vm12 = vcmask 1045509  }
  0x17   : > { %s2625_s29 = sshll.u32 %s360_s17, 2  ;;  %s2982_s28 = smov 64   ;;  %vm2428_vm13 = vcmask 1046534   ;;  %vm2430_vm14 = vcmask 1047559   ;;  %vm2461_vm15 = vcmask 519168  }
  0x18   : > { %1017 = vmatpush1.bf16.msra.mxu1 %v2908_v5  ;;  %s3095_s7 = scalar_lea.vmem %s3900_s1, %s2625_s29  ;;  %845 = vmatpush1.bf16.msra.mxu0 %v2909_v6  ;;  %s2796_s29 = sadd.s32 8, %s3049_s25 }
  0x19   : > { %1018 = vmatprep.subr.bf16.mxu1 %v2981_v1  ;;  %846 = vmatprep.subr.bf16.mxu0 %v2981_v1  ;;  %v3106_v10 = vld [vmem:[%s3095_s7 + $0x8] sm:$0xff]   ;;  %v3116_v12 = vld [vmem:[%s3095_s7 + $0x10] sm:$0xff]   ;;  %s393_s17 = scalar_select %p392_p9, 1.0, 0.0  ;;  %v3127_v14 = vld [vmem:[%s3095_s7 + $0x20] sm:$0xff]  }
  0x1a   : > { %638 = vrot.lane.b32.xlu1 %v3106_v10, %s2982_s28  ;;  %s2621_s30 = sshll.u32 %s346_s16, 2  ;;  %p3130_p11 = scmp.lt.s32.totalorder %s2796_s29, 15  ;;  %v3138_v15 = vld [vmem:[%s3095_s7 + $0x30] sm:$0xff]   ;;  %v2896_v29 = vld [vmem:[%s3095_s7] sm:$0xff]   ;;  %v3196_v36 = vld [vmem:[%s3095_s7 + $0x18] sm:$0xff]   ;;  %v516_v60 = vshll.u32 %v3106_v10, 16 }
  0x1b   : > { %s396_s6 = sshrl.u32 %s393_s17, 16  ;;  %p395_p10 = scmp.ne.f32.partialorder %s393_s17, %s393_s17  ;;  %v506_v39 = vshrl.u32 %v2896_v29, 16  ;;  %v509_v40 = vshll.u32 %v2896_v29, 16  ;;  %v3227_v52 = vld [vmem:[%s3095_s7 + $0x28] sm:$0xff]   ;;  %v3241_v58 = vld [vmem:[%s3095_s7 + $0x38] sm:$0xff]   ;;  %v513_v62 = vshrl.u32 %v3106_v10, 16 }
  0x1c   : > { %1019 = vmatpush1.bf16.msra.mxu1 %v2910_v7  ;;  %847 = vmatpush1.bf16.msra.mxu0 %v2911_v8  ;;  %s397_s8 = sand.u32 1, %s396_s6  ;;  %s348_s12 = scalar_lea.vmem %s3899_s0, %s2621_s30  ;;  %v595_v63 = vrot.slane %v516_v60, 1  ;;  %v523_v3 = vshll.u32 %v3116_v12, 16 }
  0x1d   : > { %1020 = vmatprep.subr.bf16.mxu1 %v2981_v1  ;;  %848 = vmatprep.subr.bf16.mxu0 %v2981_v1  ;;  %s398_s9 = sadd.s32 32767, %s397_s8  ;;  %v416_v19 = vld [vmem:[%s348_s12] sm:$0xf]  ;;  %v417_v20 = vld [vmem:[%s348_s12 + $0x4] sm:$0xf]  ;;  %s3932_s29 = smov (!%p3130_p11, %s2796_s29), 15 }
  0x1e   : > { %640 = vrot.lane.b32.xlu1 %v3116_v12, %s2982_s28  ;;  %s399_s13 = sadd.s32 %s398_s9, %s393_s17  ;;  %s3934_s29 = smov (!%p3130_p11, %s3932_s29), 15  ;;  %v508_v44 = vrot.slane %v506_v39, 7  ;;  %v593_v45 = vrot.slane %v509_v40, 1  ;;  %v515_v5 = vrot.slane %v513_v62, 7  ;;  %v596_v7 = vor.u32 %v595_v63, %v513_v62  ;;  %v2936_v62 = vld [vmem:[%s3902_s3 + $0x118] sm:$0xff]  }
  0x1f   : > { %s400_s26 = sand.u32 4294901760, %s399_s13  ;;  %s2630_s6 = sshll.u32 %s3934_s29, 1 }
  0x20   : > { %1021 = vmatpush1.bf16.msra.mxu1 %v2912_v9  ;;  %849 = vmatpush1.bf16.msra.mxu0 %v2913_v11  ;;  %s3930_s26 = smov (%p395_p10, %s400_s26), 2143289344  ;;  %s374_s8 = sadd.s32 %s2630_s6, %s3084_s15  ;;  %v594_v50 = vor.u32 %v593_v45, %v506_v39  ;;  %v511_v51 = vor.u32 %v509_v40, %v508_v44  ;;  %v2929_v9 = vld [vmem:[%s3902_s3 + $0xf0] sm:$0xff]   ;;  %v518_v11 = vor.u32 %v516_v60, %v515_v5 }
  0x21   : > { %1022 = vmatprep.subr.bf16.mxu1 %v2981_v1  ;;  %850 = vmatprep.subr.bf16.mxu0 %v2981_v1  ;;  %s403_s17 = sshrl.u32 %s3930_s26, 16  ;;  %s2632_s29 = sshll.u32 %s374_s8, 2  ;;  %v2933_v40 = vld [vmem:[%s3902_s3 + $0xd0] sm:$0xff]  }
  0x22   : > { %644 = vrot.lane.b32.xlu1 %v3127_v14, %s2982_s28  ;;  %s418_s11 = sshll.u32 %s403_s17, 16  ;;  %s376_s6 = scalar_lea.vmem %s3901_s2, %s2632_s29  ;;  %v625_v54 = vsel %vm3206_vm2, %v594_v50, 0  ;;  %v582_v8 = vsel %vm3252_vm6, 0, %v511_v51  ;;  %v2935_v51 = vld [vmem:[%s3902_s3 + $0xc0] sm:$0xff]   ;;  %v2937_v5 = vld [vmem:[%s3902_s3 + $0x110] sm:$0xff]  }
  0x23   : > { %s419_s13 = sor.u32 %s418_s11, %s403_s17  ;;  %v440_v46 = vld [vmem:[%s376_s6] sm:$0xf]  ;;  %v441_v47 = vld [vmem:[%s376_s6 + $0x4] sm:$0xf]  ;;  %2682 = vmatprep.mubr.msk.bf16.mxu0 %vm654_vm3, %v625_v54  ;;  %s2633_s8 = sshll.u32 %s2963_s18, 2 }
  0x24   : > { %1023 = vmatpush1.bf16.msra.mxu1 %v2914_v13  ;;  %851 = vmatpush1.bf16.msra.mxu0 %v2915_v16  ;;  %v420_v23 = vstv %s419_s13  ;;  %s3174_s27 = scalar_select %p404_p12, 1.0, 0.0  ;;  %v520_v13 = vshrl.u32 %v3116_v12, 16  ;;  %v597_v16 = vrot.slane %v523_v3, 1  ;;  %v583_v12 = vsel %vm3252_vm6, 0, %v518_v11 }
  0x25   : > { %1024 = vmatprep.subr.bf16.mxu1 %v2981_v1  ;;  %852 = vmatprep.subr.bf16.mxu0 %v2981_v1  ;;  %v422_v25 = vmul.bf16 %v420_v23, %v416_v19  ;;  %v423_v26 = vmul.bf16 %v420_v23, %v417_v20  ;;  %v530_v19 = vshll.u32 %v3196_v36, 16  ;;  %p3644_p0 = scmp.lt.s32.totalorder %s2633_s8, 7  ;;  %s2634_s25 = sshll.u32 %s3926_s19, 3 }
  0x26   : > { %648 = vrot.lane.b32.xlu1 %v3138_v15, %s2982_s28  ;;  %p407_p13 = scmp.ne.f32.partialorder %s3174_s27, %s3174_s27  ;;  %s408_s9 = sshrl.u32 %s3174_s27, 16  ;;  %v522_v23 = vrot.slane %v520_v13, 7 }
  0x27   : > { %v2636_v28 = vcombine.low %v422_v25, %v423_v26  ;;  %s409_s11 = sand.u32 1, %s408_s9  ;;  %s3938_s8 = smov (!%p3644_p0, %s2633_s8), 7 }
  0x28   : > { %1025 = vmatpush1.bf16.msra.mxu1 %v2916_v17  ;;  %853 = vmatpush1.bf16.msra.mxu0 %v2917_v18  ;;  %s410_s15 = sadd.s32 32767, %s409_s11  ;;  %v3275_v18 = vsel %vm3206_vm2, %v596_v7, 0  ;;  %v525_v26 = vor.u32 %v523_v3, %v522_v23  ;;  %v548_v3 = vshrl.u32 %v3138_v15, 16  ;;  %s387_s18 = sadd.s32 %s2634_s25, %s3938_s8 }
  0x29   : > { %1026 = vmatprep.subr.bf16.mxu1 %v2981_v1  ;;  %854 = vmatprep.subr.bf16.mxu0 %v2981_v1  ;;  %v499_v31 = vshrl.u32 %v2636_v28, 16  ;;  %v502_v32 = vshll.u32 %v2636_v28, 16  ;;  %s411_s14 = sadd.s32 %s410_s15, %s3174_s27  ;;  %s2635_s19 = sshll.u32 %s387_s18, 2 }
  0x2a   : > { %634 = vrot.lane.b32.xlu0 %v2636_v28, %s2982_s28  ;;  %s412_s30 = sand.u32 4294901760, %s411_s14  ;;  %v527_v28 = vshrl.u32 %v3196_v36, 16  ;;  %s3683_s29 = scalar_lea.vmem %s3904_s5, %s2635_s19 }
  0x2b   : > { %v501_v34 = vrot.slane %v499_v31, 7  ;;  %v591_v35 = vrot.slane %v502_v32, 1  ;;  %s3936_s30 = smov (%p407_p13, %s412_s30), 2143289344 }
  0x2c   : > { %1027 = vmatpush1.bf16.msra.mxu1 %v2918_v21  ;;  %855 = vmatpush1.bf16.msra.mxu0 %v2919_v22  ;;  %s415_s17 = sshrl.u32 %s3936_s30, 16  ;;  %v2930_v21 = vld [vmem:[%s3902_s3 + $0xe8] sm:$0xff]   ;;  %v598_v22 = vor.u32 %v597_v16, %v520_v13 }
  0x2d   : > { %1036 = vmatprep.subr.bf16.mxu1 %v2981_v1  ;;  %864 = vmatprep.subr.bf16.mxu0 %v2981_v1  ;;  %v592_v42 = vor.u32 %v591_v35, %v499_v31  ;;  %v504_v43 = vor.u32 %v502_v32, %v501_v34  ;;  %s442_s27 = sshll.u32 %s415_s17, 16  ;;  %v584_v32 = vsel %vm3252_vm6, 0, %v525_v26  ;;  %v529_v35 = vrot.slane %v527_v28, 7 }
  0x2e   : > { %636 = vrot.lane.b32.xlu0 %v2896_v29, %s2982_s28  ;;  %s443_s15 = sor.u32 %s442_s27, %s415_s17  ;;  %v3295_v25 = vsel %vm3206_vm2, %v598_v22, 0  ;;  %v599_v29 = vrot.slane %v530_v19, 1 }
  0x2f   : > { %v624_v48 = vsel %vm3206_vm2, %v592_v42, 0  ;;  %v444_v53 = vstv %s443_s15  ;;  %v581_v0 = vsel %vm3252_vm6, 0, %v504_v43  ;;  %v532_v39 = vor.u32 %v530_v19, %v529_v35 }
  0x30   : > { %1037 = vmatpush2.bf16.msra.mxu1 %v2920_v24  ;;  %865 = vmatpush2.bf16.msra.mxu0 %v2921_v27  ;;  %v446_v55 = vmul.bf16 %v444_v53, %v440_v46  ;;  %v447_v56 = vmul.bf16 %v444_v53, %v441_v47  ;;  %v2931_v27 = vld [vmem:[%s3902_s3 + $0xe0] sm:$0xff]   ;;  %v600_v34 = vor.u32 %v599_v29, %v527_v28  ;;  %v544_v43 = vshll.u32 %v3227_v52, 16  ;;  %v2934_v47 = vld [vmem:[%s3902_s3 + $0xc8] sm:$0xff]  }
  0x31   : > { %1038 = vmatprep.subr.bf16.mxu1 %v2981_v1  ;;  %866 = vmatprep.subr.bf16.mxu0 %v2981_v1  ;;  %v585_v45 = vsel %vm3252_vm6, 0, %v532_v39  ;;  %v541_v53 = vshrl.u32 %v3227_v52, 16 }
  0x32   : > { %642 = vrot.lane.b32.xlu0 %v3196_v36, %s2982_s28  ;;  %2702 = vmatprep.mubr.msk.bf16.mxu1 %vm654_vm3, %v624_v48  ;;  %v3243_v59 = vcombine.low %v446_v55, %v447_v56  ;;  %v551_v55 = vshll.u32 %v3138_v15, 16  ;;  %v550_v15 = vrot.slane %v548_v3, 7 }
  0x34   : > { %1039 = vmatpush2.bf16.msra.mxu1 %v2922_v30  ;;  %867 = vmatpush2.bf16.msra.mxu0 %v2923_v33  ;;  %v537_v30 = vshll.u32 %v3127_v14, 16  ;;  %v2932_v33 = vld [vmem:[%s3902_s3 + $0xd8] sm:$0xff]   ;;  %v553_v16 = vor.u32 %v551_v55, %v550_v15 }
  0x35   : > { %1040 = vmatprep.subr.bf16.mxu1 %v2981_v1  ;;  %868 = vmatprep.subr.bf16.mxu0 %v2981_v1 }
  0x36   : > { %646 = vrot.lane.b32.xlu0 %v3227_v52, %s2982_s28  ;;  %652 = vrot.lane.b32.xlu1 %v3243_v59, %s2982_s28  ;;  %v601_v42 = vrot.slane %v537_v30, 1  ;;  %v543_v52 = vrot.slane %v541_v53, 7 }
  0x38   : > { %1041 = vmatpush2.bf16.msra.mxu1 %v2924_v37  ;;  %869 = vmatpush2.bf16.msra.mxu0 %v2925_v41  ;;  %v3322_v37 = vsel %vm3206_vm2, %v600_v34, 0  ;;  %v534_v41 = vshrl.u32 %v3127_v14, 16 }
  0x39   : > { %1042 = vmatprep.subr.bf16.mxu1 %v2981_v1  ;;  %870 = vmatprep.subr.bf16.mxu0 %v2981_v1 }
  0x3a   : > { %650 = vrot.lane.b32.xlu0 %v3241_v58, %s2982_s28  ;;  %v602_v46 = vor.u32 %v601_v42, %v534_v41  ;;  %v536_v14 = vrot.slane %v534_v41, 7 }
  0x3c   : > { %1043 = vmatpush2.bf16.msra.mxu1 %v2926_v49  ;;  %871 = vmatpush2.bf16.msra.mxu0 %v2927_v57  ;;  %v3348_v49 = vsel %vm3206_vm2, %v602_v46, 0  ;;  %v539_v50 = vor.u32 %v537_v30, %v536_v14  ;;  %v565_v30 = vshll.u32 %v3243_v59, 16 }
  0x3d   : > { %2829 = vmatprep.subr.bf16.mxu1 %v2981_v1  ;;  %1209 = vmatprep.subr.bf16.mxu0 %v2981_v1 }
  0x3e   : > { %v586_v57 = vsel %vm3252_vm6, 0, %v539_v50 }
  0x8c   : > { %v639_v20 = vpop.permute.xlu1 %638 }
  0x8d   : > { %v3288_v24 = vsel %vm654_vm3, %v583_v12, %v639_v20  ;;  %v2939_v20 = vld [vmem:[%s3902_s3 + $0x100] sm:$0xff]  }
  0x90   : > { %v641_v31 = vpop.permute.xlu1 %640 }
  0x91   : > { %v3315_v36 = vsel %vm654_vm3, %v584_v32, %v641_v31  ;;  %v562_v31 = vshrl.u32 %v3243_v59, 16  ;;  %v609_v32 = vrot.slane %v565_v30, 1 }
  0x93   : > { %v564_v34 = vrot.slane %v562_v31, 7 }
  0x94   : > { %v645_v56 = vpop.permute.xlu1 %644 }
  0x95   : > { %v3369_v63 = vsel %vm654_vm3, %v586_v57, %v645_v56 }
  0x98   : > { %v649_v12 = vpop.permute.xlu1 %648 }
  0x9c   : > { %v635_v4 = vpop.permute.xlu0 %634 }
  0x9d   : > { %v657_v6 = vsel %vm654_vm3, %v581_v0, %v635_v4  ;;  %v605_v4 = vrot.slane %v551_v55, 1 }
  0x9e   : > { %1045 = vmatmul.mubr.bf16.vlgmr.msra.gmra.mxu1 %v657_v6  ;;  %v558_v6 = vshll.u32 %v3241_v58, 16 }
  0x9f   : > { %2841 = vmatpush1.bf16.msra.mxu1 %v2928_v2  ;;  %2703 = vmatprep.mubr.msk.bf16.mxu1 %vm654_vm3, %v625_v54  ;;  %v603_v54 = vrot.slane %v544_v43, 1 }
  0xa0   : > { %v637_v10 = vpop.permute.xlu0 %636  ;;  %2830 = vmatprep.subr.bf16.mxu1 %v2981_v1  ;;  %v607_v19 = vrot.slane %v558_v6, 1 }
  0xa1   : > { %v661_v17 = vsel %vm654_vm3, %v582_v8, %v637_v10  ;;  %v604_v60 = vor.u32 %v603_v54, %v541_v53  ;;  %v2938_v10 = vld [vmem:[%s3902_s3 + $0x108] sm:$0xff]  }
  0xa2   : > { %873 = vmatmul.mubr.bf16.vlgmr.msra.gmra.mxu0 %v661_v17 }
  0xa3   : > { %1210 = vmatpush1.bf16.msra.mxu0 %v2928_v2  ;;  %2842 = vmatpush1.bf16.msra.mxu1 %v2929_v9  ;;  %v630_v0 = vsel %vm3206_vm2, %v604_v60, 0  ;;  %v546_v2 = vor.u32 %v544_v43, %v543_v52 }
  0xa4   : > { %1211 = vmatprep.subr.bf16.mxu0 %v2981_v1  ;;  %2683 = vmatprep.mubr.msk.bf16.mxu0 %vm654_vm3, %v3275_v18  ;;  %v643_v44 = vpop.permute.xlu0 %642 }
  0xa5   : > { %2831 = vmatprep.subr.bf16.mxu1 %v2981_v1  ;;  %v3342_v48 = vsel %vm654_vm3, %v585_v45, %v643_v44  ;;  %v587_v8 = vsel %vm3252_vm6, 0, %v546_v2 }
  0xa6   : > { %1053 = vmatmul.mubr.bf16.gmra.mxu1 %v661_v17  ;;  %v555_v17 = vshrl.u32 %v3241_v58, 16 }
  0xa7   : > { %1212 = vmatpush1.bf16.msra.mxu0 %v2929_v9  ;;  %2704 = vmatprep.mubr.msk.bf16.mxu1 %vm654_vm3, %v3275_v18  ;;  %v606_v9 = vor.u32 %v605_v4, %v548_v3 }
  0xa8   : > { %1213 = vmatprep.subr.bf16.mxu0 %v2981_v1  ;;  %2843 = vmatpush1.bf16.msra.mxu1 %v2930_v21  ;;  %v647_v7 = vpop.permute.xlu0 %646  ;;  %v608_v22 = vor.u32 %v607_v19, %v555_v17  ;;  %v557_v23 = vrot.slane %v555_v17, 7 }
  0xa9   : > { %2832 = vmatprep.subr.bf16.mxu1 %v2981_v1  ;;  %v681_v11 = vsel %vm654_vm3, %v587_v8, %v647_v7  ;;  %v631_v13 = vsel %vm3206_vm2, %v606_v9, 0 }
  0xaa   : > { %881 = vmatmul.mubr.bf16.gmra.mxu0 %v3288_v24  ;;  %v632_v26 = vsel %vm3206_vm2, %v608_v22, 0 }
  0xab   : > { %1214 = vmatpush1.bf16.msra.mxu0 %v2930_v21  ;;  %2684 = vmatprep.mubr.msk.bf16.mxu0 %vm654_vm3, %v3295_v25  ;;  %v588_v21 = vsel %vm3252_vm6, 0, %v553_v16 }
  0xac   : > { %1215 = vmatprep.subr.bf16.mxu0 %v2981_v1  ;;  %2844 = vmatpush1.bf16.msra.mxu1 %v2931_v27  ;;  %v685_v58 = vsel %vm654_vm3, %v588_v21, %v649_v12  ;;  %v651_v28 = vpop.permute.xlu0 %650 }
  0xad   : > { %2833 = vmatprep.subr.bf16.mxu1 %v2981_v1 }
  0xae   : > { %1061 = vmatmul.mubr.bf16.gmra.mxu1 %v3288_v24 }
  0xaf   : > { %1216 = vmatpush1.bf16.msra.mxu0 %v2931_v27  ;;  %2705 = vmatprep.mubr.msk.bf16.mxu1 %vm654_vm3, %v3295_v25  ;;  %v560_v27 = vor.u32 %v558_v6, %v557_v23 }
  0xb0   : > { %1217 = vmatprep.subr.bf16.mxu0 %v2981_v1  ;;  %2845 = vmatpush1.bf16.msra.mxu1 %v2932_v33 }
  0xb1   : > { %2834 = vmatprep.subr.bf16.mxu1 %v2981_v1  ;;  %v589_v29 = vsel %vm3252_vm6, 0, %v560_v27 }
  0xb2   : > { %889 = vmatmul.mubr.bf16.gmra.mxu0 %v3315_v36 }
  0xb3   : > { %1218 = vmatpush1.bf16.msra.mxu0 %v2932_v33  ;;  %2685 = vmatprep.mubr.msk.bf16.mxu0 %vm654_vm3, %v3322_v37  ;;  %v610_v33 = vor.u32 %v609_v32, %v562_v31 }
  0xb4   : > { %1219 = vmatprep.subr.bf16.mxu0 %v2981_v1  ;;  %2846 = vmatpush1.bf16.msra.mxu1 %v2933_v40 }
  0xb5   : > { %2835 = vmatprep.subr.bf16.mxu1 %v2981_v1 }
  0xb6   : > { %1069 = vmatmul.mubr.bf16.gmra.mxu1 %v3315_v36 }
  0xb7   : > { %2706 = vmatprep.mubr.msk.bf16.mxu1 %vm654_vm3, %v3322_v37  ;;  %1220 = vmatpush1.bf16.msra.mxu0 %v2933_v40 }
  0xb8   : > { %1221 = vmatprep.subr.bf16.mxu0 %v2981_v1  ;;  %2847 = vmatpush1.bf16.msra.mxu1 %v2934_v47 }
  0xb9   : > { %2836 = vmatprep.subr.bf16.mxu1 %v2981_v1 }
  0xba   : > { %897 = vmatmul.mubr.bf16.gmra.mxu0 %v3342_v48 }
  0xbb   : > { %2686 = vmatprep.mubr.msk.bf16.mxu0 %vm654_vm3, %v3348_v49  ;;  %1222 = vmatpush1.bf16.msra.mxu0 %v2934_v47 }
  0xbc   : > { %1223 = vmatprep.subr.bf16.mxu0 %v2981_v1  ;;  %2848 = vmatpush1.bf16.msra.mxu1 %v2935_v51 }
  0xbd   : > { %2837 = vmatprep.subr.bf16.mxu1 %v2981_v1 }
  0xbe   : > { %1077 = vmatmul.mubr.bf16.gmra.mxu1 %v3342_v48 }
  0xbf   : > { %2707 = vmatprep.mubr.msk.bf16.mxu1 %vm654_vm3, %v3348_v49  ;;  %1224 = vmatpush1.bf16.msra.mxu0 %v2935_v51 }
  0xc0   : > { %1233 = vmatprep.subr.bf16.mxu0 %v2981_v1  ;;  %2849 = vmatpush2.bf16.msra.mxu1 %v2936_v62 }
  0xc1   : > { %2838 = vmatprep.subr.bf16.mxu1 %v2981_v1 }
  0xc2   : > { %905 = vmatmul.mubr.bf16.gmra.mxu0 %v3369_v63 }
  0xc3   : > { %2687 = vmatprep.mubr.msk.bf16.mxu0 %vm654_vm3, %v630_v0  ;;  %1234 = vmatpush2.bf16.msra.mxu0 %v2936_v62 }
  0xc4   : > { %1235 = vmatprep.subr.bf16.mxu0 %v2981_v1  ;;  %2850 = vmatpush2.bf16.msra.mxu1 %v2937_v5 }
  0xc5   : > { %2839 = vmatprep.subr.bf16.mxu1 %v2981_v1 }
  0xc6   : > { %1085 = vmatmul.mubr.bf16.gmra.mxu1 %v3369_v63 }
  0xc7   : > { %2708 = vmatprep.mubr.msk.bf16.mxu1 %vm654_vm3, %v630_v0  ;;  %1236 = vmatpush2.bf16.msra.mxu0 %v2937_v5 }
  0xc8   : > { %1237 = vmatprep.subr.bf16.mxu0 %v2981_v1  ;;  %2851 = vmatpush2.bf16.msra.mxu1 %v2938_v10 }
  0xc9   : > { %2840 = vmatprep.subr.bf16.mxu1 %v2981_v1 }
  0xca   : > { %913 = vmatmul.mubr.bf16.gmra.mxu0 %v681_v11 }
  0xcb   : > { %2688 = vmatprep.mubr.msk.bf16.mxu0 %vm654_vm3, %v631_v13  ;;  %1238 = vmatpush2.bf16.msra.mxu0 %v2938_v10 }
  0xcc   : > { %2852 = vmatpush2.bf16.msra.mxu1 %v2939_v20  ;;  %1239 = vmatprep.subr.bf16.mxu0 %v2981_v1  ;;  %v689_v1 = vsel %vm654_vm3, %v589_v29, %v651_v28 }
  0xce   : > { %1093 = vmatmul.mubr.bf16.gmra.mxu1 %v681_v11 }
  0xcf   : > { %2709 = vmatprep.mubr.msk.bf16.mxu1 %vm654_vm3, %v631_v13  ;;  %1240 = vmatpush2.bf16.msra.mxu0 %v2939_v20 }
  0xd2   : > { %921 = vmatmul.mubr.bf16.gmra.mxu0 %v685_v58 }
  0xd3   : > { %2689 = vmatprep.mubr.msk.bf16.mxu0 %vm654_vm3, %v632_v26 }
  0xd6   : > { %1101 = vmatmul.mubr.bf16.gmra.mxu1 %v685_v58 }
  0xd7   : > { %2750 = vmatprep.mubr.msk.bf16.mxu1 %vm654_vm3, %v630_v0 }
  0xda   : > { %929 = vmatmul.mubr.bf16.gmra.mxu0 %v689_v1 }
  0xdb   : > { %2746 = vmatprep.mubr.msk.bf16.mxu0 %vm654_vm3, %v3275_v18  ;;  %v633_v18 = vsel %vm3206_vm2, %v610_v33, 0 }
  0xde   : > { %1274 = vmatmul.mubr.bf16.vlgmr.msra.gmra.mxu1 %v681_v11 }
  0xdf   : > { %2751 = vmatprep.mubr.msk.bf16.mxu1 %vm654_vm3, %v631_v13 }
  0xe2   : > { %1242 = vmatmul.mubr.bf16.vlgmr.msra.gmra.mxu0 %v3288_v24  ;;  %v567_v24 = vor.u32 %v565_v30, %v564_v34 }
  0xe3   : > { %2747 = vmatprep.mubr.msk.bf16.mxu0 %vm654_vm3, %v3295_v25  ;;  %v653_v25 = vpop.permute.xlu1 %652 }
  0xe4   : > { %v590_v59 = vsel %vm3252_vm6, 0, %v567_v24 }
  0xe5   : > { %v693_v35 = vsel %vm654_vm3, %v590_v59, %v653_v25 }
  0xe6   : > { %1282 = vmatmul.mubr.bf16.gmra.mxu1 %v685_v58 }
  0xe7   : > { %2752 = vmatprep.mubr.msk.bf16.mxu1 %vm654_vm3, %v632_v26 }
  0xea   : > { %1250 = vmatmul.mubr.bf16.gmra.mxu0 %v3315_v36 }
  0xeb   : > { %2748 = vmatprep.mubr.msk.bf16.mxu0 %vm654_vm3, %v3322_v37 }
  0xee   : > { %1290 = vmatmul.mubr.bf16.gmra.mxu1 %v689_v1 }
  0xef   : > { %2753 = vmatprep.mubr.msk.bf16.mxu1 %vm654_vm3, %v633_v18 }
  0xf2   : > { %1258 = vmatmul.mubr.bf16.gmra.mxu0 %v3342_v48 }
  0xf3   : > { %2749 = vmatprep.mubr.msk.bf16.mxu0 %vm654_vm3, %v3348_v49 }
  0xf6   : > { %1298 = vmatmul.mubr.bf16.gmra.mxu1 %v693_v35 }
  0xfa   : > { %1266 = vmatmul.mubr.bf16.gmra.mxu0 %v3369_v63 }
 0x15e   : > { %v1046_v38 = vpop.f32.mrf.mxu1 }
 0x160   : > { %v1048_v36 = vpop.f32.mrf.mxu1 }
 0x162   : > { %v874_v37 = vpop.f32.mrf.mxu0  ;;  %v1049_v39 = vpop.f32.mrf.mxu1 }
 0x163   : > { %v3437_v40 = vadd.f32 %v1046_v38, %v874_v37 }
 0x164   : > { %v876_v41 = vpop.f32.mrf.mxu0  ;;  %v1051_v42 = vpop.f32.mrf.mxu1 }
 0x166   : > { %v877_v61 = vpop.f32.mrf.mxu0  ;;  %v1054_v43 = vpop.f32.mrf.mxu1 }
 0x167   : > { %v3439_v44 = vadd.f32 %v1049_v39, %v877_v61 }
 0x168   : > { %v879_v45 = vpop.f32.mrf.mxu0  ;;  %v1056_v46 = vpop.f32.mrf.mxu1 }
 0x169   : > { %v2983_v45 = vmov 1983009808  }
 0x16a   : > { %v882_v14 = vpop.f32.mrf.mxu0  ;;  %v1057_v47 = vpop.f32.mrf.mxu1  ;;  %v1379_v46 = vunpack.c.l.s4 %v2983_v45 }
 0x16b   : > { %v3441_v48 = vadd.f32 %v1054_v43, %v882_v14  ;;  %v1381_v14 = vlaneseq }
 0x16c   : > { %v884_v49 = vpop.f32.mrf.mxu0  ;;  %v1059_v50 = vpop.f32.mrf.mxu1 }
 0x16e   : > { %v885_v51 = vpop.f32.mrf.mxu0  ;;  %v1062_v53 = vpop.f32.mrf.mxu1 }
 0x16f   : > { %v3443_v54 = vadd.f32 %v1057_v47, %v885_v51 }
 0x170   : > { %v887_v55 = vpop.f32.mrf.mxu0  ;;  %v1064_v56 = vpop.f32.mrf.mxu1 }
 0x171   : > { %v1380_v55 = vunpack.c.0.s8 %v1379_v46  ;;  %v1382_v56 = vshrl.u32 %v1381_v14, 7 }
 0x172   : > { %v890_v57 = vpop.f32.mrf.mxu0  ;;  %v1065_v60 = vpop.f32.mrf.mxu1 }
 0x173   : > { %v3445_v52 = vadd.f32 %v1062_v53, %v890_v57 }
 0x174   : > { %v892_v62 = vpop.f32.mrf.mxu0  ;;  %v1067_v63 = vpop.f32.mrf.mxu1 }
 0x175   : > { %v3466_v62 = vld [vmem:[%s3903_s4] ss:$0 sm:$0xff] }
 0x176   : > { %v893_v0 = vpop.f32.mrf.mxu0  ;;  %v1070_v2 = vpop.f32.mrf.mxu1 }
 0x177   : > { %v3447_v3 = vadd.f32 %v1065_v60, %v893_v0 }
 0x178   : > { %v895_v4 = vpop.f32.mrf.mxu0  ;;  %v1072_v5 = vpop.f32.mrf.mxu1 }
 0x17a   : > { %v898_v6 = vpop.f32.mrf.mxu0  ;;  %v1073_v7 = vpop.f32.mrf.mxu1 }
 0x17b   : > { %v3449_v8 = vadd.f32 %v1070_v2, %v898_v6  ;;  %v3471_v6 = vsub.s32 %v1380_v55, %v1382_v56 }
 0x17c   : > { %v900_v9 = vpop.f32.mrf.mxu0  ;;  %v1075_v15 = vpop.f32.mrf.mxu1 }
 0x17e   : > { %v901_v10 = vpop.f32.mrf.mxu0  ;;  %v1078_v11 = vpop.f32.mrf.mxu1 }
 0x17f   : > { %v3451_v13 = vadd.f32 %v1073_v7, %v901_v10 }
 0x180   : > { %v903_v16 = vpop.f32.mrf.mxu0  ;;  %v1080_v17 = vpop.f32.mrf.mxu1 }
 0x182   : > { %v906_v19 = vpop.f32.mrf.mxu0  ;;  %v1081_v20 = vpop.f32.mrf.mxu1 }
 0x183   : > { %v1079_v12 = vadd.f32 %v1078_v11, %v906_v19 }
 0x184   : > { %v908_v21 = vpop.f32.mrf.mxu0  ;;  %v1083_v22 = vpop.f32.mrf.mxu1 }
 0x186   : > { %v909_v23 = vpop.f32.mrf.mxu0  ;;  %v1086_v58 = vpop.f32.mrf.mxu1 }
 0x187   : > { %v1082_v26 = vadd.f32 %v1081_v20, %v909_v23 }
 0x188   : > { %v911_v27 = vpop.f32.mrf.mxu0  ;;  %v1088_v28 = vpop.f32.mrf.mxu1 }
 0x18a   : > { %v914_v29 = vpop.f32.mrf.mxu0  ;;  %v1089_v1 = vpop.f32.mrf.mxu1 }
 0x18b   : > { %v3453_v30 = vadd.f32 %v1086_v58, %v914_v29 }
 0x18c   : > { %v916_v31 = vpop.f32.mrf.mxu0  ;;  %v1091_v32 = vpop.f32.mrf.mxu1 }
 0x18e   : > { %v917_v33 = vpop.f32.mrf.mxu0  ;;  %v1094_v34 = vpop.f32.mrf.mxu1 }
 0x18f   : > { %v3455_v18 = vadd.f32 %v1089_v1, %v917_v33 }
 0x190   : > { %v919_v24 = vpop.f32.mrf.mxu0  ;;  %v1096_v25 = vpop.f32.mrf.mxu1 }
 0x192   : > { %v922_v59 = vpop.f32.mrf.mxu0  ;;  %v1097_v35 = vpop.f32.mrf.mxu1 }
 0x193   : > { %v3457_v38 = vadd.f32 %v1094_v34, %v922_v59 }
 0x194   : > { %v924_v36 = vpop.f32.mrf.mxu0  ;;  %v1099_v37 = vpop.f32.mrf.mxu1 }
 0x196   : > { %v925_v39 = vpop.f32.mrf.mxu0  ;;  %v1102_v41 = vpop.f32.mrf.mxu1 }
 0x197   : > { %v3459_v42 = vadd.f32 %v1097_v35, %v925_v39 }
 0x198   : > { %v927_v61 = vpop.f32.mrf.mxu0  ;;  %v1104_v43 = vpop.f32.mrf.mxu1 }
 0x19a   : > { %v930_v47 = vpop.f32.mrf.mxu0  ;;  %v1105_v49 = vpop.f32.mrf.mxu1 }
 0x19b   : > { %v3461_v50 = vadd.f32 %v1102_v41, %v930_v47 }
 0x19c   : > { %v932_v51 = vpop.f32.mrf.mxu0  ;;  %v1107_v53 = vpop.f32.mrf.mxu1 }
 0x19e   : > { %v933_v57 = vpop.f32.mrf.mxu0  ;;  %v1275_v60 = vpop.f32.mrf.mxu1 }
 0x19f   : > { %v3468_v63 = vadd.f32 %v1105_v49, %v933_v57  ;;  %v1314_v0 = vadd.f32 %v1275_v60, %v1079_v12 }
 0x1a0   : > { %v935_v2 = vpop.f32.mrf.mxu0  ;;  %v1277_v4 = vpop.f32.mrf.mxu1 }
 0x1a1   : > { %v1337_v5 = vadd.f32 %v3466_v62, %v1314_v0 }
 0x1a2   : > { %v1243_v7 = vpop.f32.mrf.mxu0  ;;  %v1278_v9 = vpop.f32.mrf.mxu1 }
 0x1a3   : > { %v1353_v15 = vmax.f32 %v1337_v5, 0.0  ;;  %v1306_v10 = vadd.f32 %v1243_v7, %v3437_v40  ;;  %v1315_v11 = vadd.f32 %v1278_v9, %v1082_v26 }
 0x1a4   : > { %v1245_v16 = vpop.f32.mrf.mxu0  ;;  %v1280_v17 = vpop.f32.mrf.mxu1 }
 0x1a5   : > { %v1513_v19 = vcombine.high %v1353_v15, %v1353_v15  ;;  %v1520_v20 = vrot.slane %v1353_v15, %v3471_v6  ;;  %v1329_v12 = vadd.f32 %v3466_v62, %v1306_v10  ;;  %v1338_v21 = vadd.f32 %v3466_v62, %v1315_v11 }
 0x1a6   : > { %v1246_v22 = vpop.f32.mrf.mxu0  ;;  %v3477_v23 = vpop.f32.mrf.mxu1 }
 0x1a7   : > { %v1527_v58 = vrot.slane %v1513_v19, %v3471_v6  ;;  %v1528_v27 = vcombine.high %v1520_v20, %v1520_v20  ;;  %v1938_v28 = vsel %vm1713_vm7, %v1520_v20, -inf  ;;  %v1345_v40 = vmax.f32 %v1329_v12, 0.0 }
 0x1a8   : > { %v1939_v26 = vrot.slane %v1938_v28, 4  ;;  %v3481_v29 = vmax.f32 %v1338_v21, 0.0  ;;  %v3484_v1 = vadd.f32 %v1246_v22, %v3439_v44  ;;  %v1248_v31 = vpop.f32.mrf.mxu0  ;;  %v1285_v32 = vpop.f32.mrf.mxu1 }
 0x1a9   : > { %v1529_v33 = vcombine.high %v1527_v58, %v1527_v58  ;;  %v1945_v34 = vsel %vm1713_vm7, %v1528_v27, -inf  ;;  %v1952_v24 = vsel %vm1713_vm7, %v1527_v58, -inf  ;;  %v1377_v25 = vcombine.high %v1345_v40, %v1345_v40 }
 0x1aa   : > { %v1940_v59 = vmax.f32 %v1938_v28, %v1939_v26  ;;  %v1946_v35 = vrot.slane %v1945_v34, 4  ;;  %v1953_v36 = vrot.slane %v1952_v24, 4  ;;  %v1384_v37 = vrot.slane %v1345_v40, %v3471_v6  ;;  %v3489_v39 = vpop.f32.mrf.mxu0  ;;  %v3491_v41 = vpop.f32.mrf.mxu1 }
 0x1ab   : > { %v1959_v44 = vsel %vm1713_vm7, %v1529_v33, -inf  ;;  %v1391_v61 = vrot.slane %v1377_v25, %v3471_v6  ;;  %v1530_v43 = vcombine.high %v3481_v29, %v3481_v29 }
 0x1ac   : > { %v1941_v45 = vrot.slane %v1940_v59, 2  ;;  %v1947_v46 = vmax.f32 %v1945_v34, %v1946_v35  ;;  %v1954_v14 = vmax.f32 %v1952_v24, %v1953_v36  ;;  %v1960_v47 = vrot.slane %v1959_v44, 4  ;;  %v1253_v49 = vpop.f32.mrf.mxu0  ;;  %v1288_v51 = vpop.f32.mrf.mxu1 }
 0x1ad   : > { %v1392_v53 = vcombine.high %v1384_v37, %v1384_v37  ;;  %v1393_v55 = vcombine.high %v1391_v61, %v1391_v61  ;;  %v1714_v56 = vsel %vm1713_vm7, %v1384_v37, -inf  ;;  %v1728_v57 = vsel %vm1713_vm7, %v1391_v61, -inf }
 0x1ae   : > { %v1942_v60 = vmax.f32 %v1940_v59, %v1941_v45  ;;  %v1948_v0 = vrot.slane %v1947_v46, 2  ;;  %v1955_v2 = vrot.slane %v1954_v14, 2  ;;  %v1961_v4 = vmax.f32 %v1959_v44, %v1960_v47  ;;  %v3499_v5 = vpop.f32.mrf.mxu0  ;;  %v3501_v7 = vpop.f32.mrf.mxu1 }
 0x1af   : > { %v1715_v9 = vrot.slane %v1714_v56, 4  ;;  %v1721_v15 = vsel %vm1713_vm7, %v1392_v53, -inf  ;;  %v1729_v10 = vrot.slane %v1728_v57, 4  ;;  %v1735_v11 = vsel %vm1713_vm7, %v1393_v55, -inf }
 0x1b0   : > { %v1943_v16 = vrot.slane %v1942_v60, 1  ;;  %v1949_v17 = vmax.f32 %v1947_v46, %v1948_v0  ;;  %v1956_v19 = vmax.f32 %v1954_v14, %v1955_v2  ;;  %v1962_v20 = vrot.slane %v1961_v4, 2  ;;  %v1256_v12 = vpop.f32.mrf.mxu0  ;;  %v1293_v21 = vpop.f32.mrf.mxu1 }
 0x1b1   : > { %v1716_v22 = vmax.f32 %v1714_v56, %v1715_v9  ;;  %v1722_v58 = vrot.slane %v1721_v15, 4  ;;  %v1730_v27 = vmax.f32 %v1728_v57, %v1729_v10  ;;  %v1736_v28 = vrot.slane %v1735_v11, 4 }
 0x1b2   : > { %v1944_v40 = vmax.f32 %v1942_v60, %v1943_v16  ;;  %v1950_v26 = vrot.slane %v1949_v17, 1  ;;  %v1957_v31 = vrot.slane %v1956_v19, 1  ;;  %v1963_v32 = vmax.f32 %v1961_v4, %v1962_v20  ;;  %v3505_v33 = vpop.f32.mrf.mxu0  ;;  %v3507_v34 = vpop.f32.mrf.mxu1 }
 0x1b3   : > { %v1717_v24 = vrot.slane %v1716_v22, 2  ;;  %v1723_v25 = vmax.f32 %v1721_v15, %v1722_v58  ;;  %v1731_v59 = vrot.slane %v1730_v27, 2  ;;  %v1737_v35 = vmax.f32 %v1735_v11, %v1736_v28 }
 0x1b4   : > { %v1951_v36 = vmax.f32 %v1949_v17, %v1950_v26  ;;  %v1964_v37 = vrot.slane %v1963_v32, 1  ;;  %v1537_v44 = vrot.slane %v3481_v29, %v3471_v6  ;;  %v1316_v61 = vadd.f32 %v3477_v23, %v3453_v30  ;;  %v1261_v45 = vpop.f32.mrf.mxu0  ;;  %v1296_v46 = vpop.f32.mrf.mxu1 }
 0x1b5   : > { %v1718_v14 = vmax.f32 %v1716_v22, %v1717_v24  ;;  %v1724_v47 = vrot.slane %v1723_v25, 2  ;;  %v1732_v49 = vmax.f32 %v1730_v27, %v1731_v59  ;;  %v1738_v51 = vrot.slane %v1737_v35, 2 }
 0x1b6   : > { %v1958_v53 = vmax.f32 %v1956_v19, %v1957_v31  ;;  %v1965_v55 = vmax.f32 %v1963_v32, %v1964_v37  ;;  %v3514_v56 = vsel %vm654_vm3, %v1944_v40, -inf  ;;  %v1544_v57 = vrot.slane %v1530_v43, %v3471_v6  ;;  %v3517_v60 = vpop.f32.mrf.mxu0  ;;  %v3519_v0 = vpop.f32.mrf.mxu1 }
 0x1b7   : > { %v1719_v29 = vrot.slane %v1718_v14, 1  ;;  %v1725_v2 = vmax.f32 %v1723_v25, %v1724_v47  ;;  %v1733_v30 = vrot.slane %v1732_v49, 1  ;;  %v1739_v23 = vmax.f32 %v1737_v35, %v1738_v51 }
 0x1b8   : > { %v3522_v4 = vsel %vm654_vm3, %v1951_v36, -inf  ;;  %v1545_v9 = vcombine.high %v1537_v44, %v1537_v44  ;;  %v1546_v15 = vcombine.high %v1544_v57, %v1544_v57  ;;  %v1966_v10 = vsel %vm1713_vm7, %v1537_v44, -inf  ;;  %v1264_v11 = vpop.f32.mrf.mxu0  ;;  %v1301_v16 = vpop.f32.mrf.mxu1 }
 0x1b9   : > { %v1720_v17 = vmax.f32 %v1718_v14, %v1719_v29  ;;  %v1726_v19 = vrot.slane %v1725_v2, 1  ;;  %v1734_v43 = vmax.f32 %v1732_v49, %v1733_v30  ;;  %v1740_v20 = vrot.slane %v1739_v23, 1 }
 0x1ba   : > { %v1967_v12 = vrot.slane %v1966_v10, 4  ;;  %v1973_v21 = vsel %vm1713_vm7, %v1545_v9, -inf  ;;  %v1980_v22 = vsel %vm1713_vm7, %v1544_v57, -inf  ;;  %v1987_v58 = vsel %vm1713_vm7, %v1546_v15, -inf  ;;  %v3528_v27 = vpop.f32.mrf.mxu0  ;;  %v3530_v28 = vpop.f32.mrf.mxu1 }
 0x1bb   : > { %v3533_v40 = vsel %vm654_vm3, %v1958_v53, -inf  ;;  %v3536_v26 = vsel %vm654_vm3, %v1965_v55, -inf  ;;  %v1727_v31 = vmax.f32 %v1725_v2, %v1726_v19  ;;  %v1741_v32 = vmax.f32 %v1739_v23, %v1740_v20 }
 0x1bc   : > { %v1968_v24 = vmax.f32 %v1966_v10, %v1967_v12  ;;  %v1974_v25 = vrot.slane %v1973_v21, 4  ;;  %v1981_v59 = vrot.slane %v1980_v22, 4  ;;  %v1988_v35 = vrot.slane %v1987_v58, 4  ;;  %v1269_v36 = vpop.f32.mrf.mxu0  ;;  %v1304_v37 = vpop.f32.mrf.mxu1 }
 0x1bd   : > { %v3539_v44 = vsel %vm654_vm3, %v1720_v17, -inf  ;;  %v3542_v45 = vsel %vm654_vm3, %v1734_v43, -inf  ;;  %v1330_v46 = vadd.f32 %v3466_v62, %v3484_v1  ;;  %v1339_v14 = vadd.f32 %v3466_v62, %v1316_v61 }
 0x1be   : > { %v1969_v47 = vrot.slane %v1968_v24, 2  ;;  %v1975_v49 = vmax.f32 %v1973_v21, %v1974_v25  ;;  %v1982_v51 = vmax.f32 %v1980_v22, %v1981_v59  ;;  %v1989_v53 = vmax.f32 %v1987_v58, %v1988_v35  ;;  %v3558_v16 = vpop.f32.mrf.mxu0 }
 0x1bf   : > { %v3548_v55 = vsel %vm654_vm3, %v1727_v31, -inf  ;;  %v3551_v57 = vsel %vm654_vm3, %v1741_v32, -inf  ;;  %v1346_v29 = vmax.f32 %v1330_v46, 0.0  ;;  %v1355_v2 = vmax.f32 %v1339_v14, 0.0  ;;  %3910 = vst [vmem:[#allocation2_spill] sm:$0xff] %v3558_v16 }
 0x1c0   : > { %v1970_v30 = vmax.f32 %v1968_v24, %v1969_v47  ;;  %v1976_v23 = vrot.slane %v1975_v49, 2  ;;  %v1983_v9 = vrot.slane %v1982_v51, 2  ;;  %v1990_v15 = vrot.slane %v1989_v53, 2  ;;  %v1272_v31 = vpop.f32.mrf.mxu0 }
 0x1c1   : > { %v1394_v10 = vcombine.high %v1346_v29, %v1346_v29  ;;  %v1401_v1 = vrot.slane %v1346_v29, %v3471_v6  ;;  %v1547_v61 = vcombine.high %v1355_v2, %v1355_v2  ;;  %v3556_v11 = vadd.f32 %v3489_v39, %v3441_v48 }
 0x1c2   : > { %v1971_v17 = vrot.slane %v1970_v30, 1  ;;  %v1977_v19 = vmax.f32 %v1975_v49, %v1976_v23  ;;  %v1984_v43 = vmax.f32 %v1982_v51, %v1983_v9  ;;  %v1991_v20 = vmax.f32 %v1989_v53, %v1990_v15 }
 0x1c3   : > { %v1408_v12 = vrot.slane %v1394_v10, %v3471_v6  ;;  %v1409_v21 = vcombine.high %v1401_v1, %v1401_v1  ;;  %v1742_v22 = vsel %vm1713_vm7, %v1401_v1, -inf  ;;  %v1554_v58 = vrot.slane %v1355_v2, %v3471_v6 }
 0x1c4   : > { %v1972_v32 = vmax.f32 %v1970_v30, %v1971_v17  ;;  %v1978_v24 = vrot.slane %v1977_v19, 1  ;;  %v1985_v25 = vrot.slane %v1984_v43, 1  ;;  %v1992_v59 = vrot.slane %v1991_v20, 1 }
 0x1c5   : > { %v1410_v48 = vcombine.high %v1408_v12, %v1408_v12  ;;  %v1743_v39 = vrot.slane %v1742_v22, 4  ;;  %v1749_v35 = vsel %vm1713_vm7, %v1409_v21, -inf  ;;  %v1756_v36 = vsel %vm1713_vm7, %v1408_v12, -inf }
 0x1c6   : > { %v1979_v37 = vmax.f32 %v1977_v19, %v1978_v24  ;;  %v1986_v46 = vmax.f32 %v1984_v43, %v1985_v25  ;;  %v1561_v14 = vrot.slane %v1547_v61, %v3471_v6  ;;  %v1317_v47 = vadd.f32 %v3491_v41, %v3455_v18 }
 0x1c7   : > { %v1744_v49 = vmax.f32 %v1742_v22, %v1743_v39  ;;  %v1750_v51 = vrot.slane %v1749_v35, 4  ;;  %v1757_v53 = vrot.slane %v1756_v36, 4  ;;  %v1763_v29 = vsel %vm1713_vm7, %v1410_v48, -inf }
 0x1c8   : > { %v1993_v2 = vmax.f32 %v1991_v20, %v1992_v59  ;;  %v3570_v30 = vsel %vm654_vm3, %v1972_v32, -inf  ;;  %v3573_v23 = vsel %vm654_vm3, %v1979_v37, -inf  ;;  %v1764_v9 = vrot.slane %v1763_v29, 4 }
 0x1c9   : > { %v1745_v15 = vrot.slane %v1744_v49, 2  ;;  %v1751_v10 = vmax.f32 %v1749_v35, %v1750_v51  ;;  %v1758_v1 = vmax.f32 %v1756_v36, %v1757_v53  ;;  %v1562_v61 = vcombine.high %v1554_v58, %v1554_v58 }
 0x1ca   : > { %v1765_v17 = vmax.f32 %v1763_v29, %v1764_v9  ;;  %v1563_v19 = vcombine.high %v1561_v14, %v1561_v14  ;;  %v1994_v18 = vsel %vm1713_vm7, %v1554_v58, -inf  ;;  %v2008_v41 = vsel %vm1713_vm7, %v1561_v14, -inf }
 0x1cb   : > { %v1746_v43 = vmax.f32 %v1744_v49, %v1745_v15  ;;  %v1752_v12 = vrot.slane %v1751_v10, 2  ;;  %v1759_v20 = vrot.slane %v1758_v1, 2  ;;  %v1995_v21 = vrot.slane %v1994_v18, 4 }
 0x1cc   : > { %v1766_v22 = vrot.slane %v1765_v17, 2  ;;  %v2001_v31 = vsel %vm1713_vm7, %v1562_v61, -inf  ;;  %v2009_v32 = vrot.slane %v2008_v41, 4  ;;  %v2015_v24 = vsel %vm1713_vm7, %v1563_v19, -inf }
 0x1cd   : > { %v1747_v25 = vrot.slane %v1746_v43, 1  ;;  %v1753_v59 = vmax.f32 %v1751_v10, %v1752_v12  ;;  %v1760_v48 = vmax.f32 %v1758_v1, %v1759_v20  ;;  %v1996_v39 = vmax.f32 %v1994_v18, %v1995_v21 }
 0x1ce   : > { %v1767_v35 = vmax.f32 %v1765_v17, %v1766_v22  ;;  %v2002_v36 = vrot.slane %v2001_v31, 4  ;;  %v2010_v37 = vmax.f32 %v2008_v41, %v2009_v32  ;;  %v2016_v58 = vrot.slane %v2015_v24, 4 }
 0x1cf   : > { %v1748_v51 = vmax.f32 %v1746_v43, %v1747_v25  ;;  %v1754_v14 = vrot.slane %v1753_v59, 1  ;;  %v1761_v49 = vrot.slane %v1760_v48, 1  ;;  %v1997_v53 = vrot.slane %v1996_v39, 2 }
 0x1d0   : > { %v1768_v29 = vrot.slane %v1767_v35, 1  ;;  %v2003_v9 = vmax.f32 %v2001_v31, %v2002_v36  ;;  %v2011_v15 = vrot.slane %v2010_v37, 2  ;;  %v2017_v16 = vmax.f32 %v2015_v24, %v2016_v58 }
 0x1d1   : > { %v3580_v61 = vsel %vm654_vm3, %v1986_v46, -inf  ;;  %v3583_v19 = vsel %vm654_vm3, %v1993_v2, -inf  ;;  %v1755_v10 = vmax.f32 %v1753_v59, %v1754_v14  ;;  %v1998_v1 = vmax.f32 %v1996_v39, %v1997_v53 }
 0x1d2   : > { %v3585_v17 = vmax.f32 %v1760_v48, %v1761_v49  ;;  %v2004_v18 = vrot.slane %v2003_v9, 2  ;;  %v2012_v41 = vmax.f32 %v2010_v37, %v2011_v15  ;;  %v2018_v43 = vrot.slane %v2017_v16, 2 }
 0x1d3   : > { %v3587_v12 = vmax.f32 %v1767_v35, %v1768_v29  ;;  %v3590_v20 = vsel %vm654_vm3, %v1748_v51, -inf  ;;  %v1999_v21 = vrot.slane %v1998_v1, 1  ;;  %v1331_v46 = vadd.f32 %v3466_v62, %v3556_v11 }
 0x1d4   : > { %v3595_v22 = vsel %vm654_vm3, %v1755_v10, -inf  ;;  %v2005_v2 = vmax.f32 %v2003_v9, %v2004_v18  ;;  %v2013_v31 = vrot.slane %v2012_v41, 1  ;;  %v2019_v32 = vmax.f32 %v2017_v16, %v2018_v43 }
 0x1d5   : > { %v2000_v24 = vmax.f32 %v1998_v1, %v1999_v21  ;;  %v1347_v25 = vmax.f32 %v1331_v46, 0.0  ;;  %v1340_v59 = vadd.f32 %v3466_v62, %v1317_v47  ;;  %v1309_v48 = vadd.f32 %v3499_v5, %v3443_v54 }
 0x1d6   : > { %v2006_v39 = vrot.slane %v2005_v2, 1  ;;  %v2014_v35 = vmax.f32 %v2012_v41, %v2013_v31  ;;  %v2020_v36 = vrot.slane %v2019_v32, 1  ;;  %v3602_v11 = vadd.f32 %v3501_v7, %v3457_v38 }
 0x1d7   : > { %v2211_v37 = vsel %vm654_vm3, %v2000_v24, -inf  ;;  %v1411_v58 = vcombine.high %v1347_v25, %v1347_v25  ;;  %v1418_v16 = vrot.slane %v1347_v25, %v3471_v6  ;;  %v1356_v51 = vmax.f32 %v1340_v59, 0.0 }
 0x1d8   : > { %v2007_v14 = vmax.f32 %v2005_v2, %v2006_v39  ;;  %v2021_v47 = vmax.f32 %v2019_v32, %v2020_v36  ;;  %v2212_v49 = vmax.f32 %v3514_v56, %v2211_v37  ;;  %v2217_v54 = vsel %vm654_vm3, %v2014_v35, -inf }
 0x1d9   : > { %v2218_v5 = vmax.f32 %v3533_v40, %v2217_v54  ;;  %v1425_v53 = vrot.slane %v1411_v58, %v3471_v6  ;;  %v1426_v29 = vcombine.high %v1418_v16, %v1418_v16  ;;  %v1770_v38 = vsel %vm1713_vm7, %v1418_v16, -inf }
 0x1da   : > { %v2214_v7 = vsel %vm654_vm3, %v2007_v14, -inf  ;;  %v2220_v9 = vsel %vm654_vm3, %v2021_v47, -inf  ;;  %v2813_v15 = vpack.c.bf16 %v2212_v49, %v2212_v49  ;;  %v1771_v10 = vrot.slane %v1770_v38, 4 }
 0x1db   : > { %v2215_v1 = vmax.f32 %v3522_v4, %v2214_v7  ;;  %v2221_v18 = vmax.f32 %v3536_v26, %v2220_v9  ;;  %v2815_v56 = vpack.c.bf16 %v2218_v5, %v2218_v5  ;;  %v1427_v41 = vcombine.high %v1425_v53, %v1425_v53 }
 0x1dc   : > { %v2402_v43 = vunpack.c.l.b16 %v2813_v15  ;;  %v1772_v21 = vmax.f32 %v1770_v38, %v1771_v10  ;;  %v1777_v40 = vsel %vm1713_vm7, %v1426_v29, -inf  ;;  %v1784_v46 = vsel %vm1713_vm7, %v1425_v53, -inf }
 0x1dd   : > { %v2814_v2 = vpack.c.bf16 %v2215_v1, %v2215_v1  ;;  %v2816_v31 = vpack.c.bf16 %v2221_v18, %v2221_v18  ;;  %v2404_v32 = vunpack.c.l.b16 %v2815_v56  ;;  %v1778_v24 = vrot.slane %v1777_v40, 4 }
 0x1de   : > { %v1773_v25 = vrot.slane %v1772_v21, 2  ;;  %v1785_v59 = vrot.slane %v1784_v46, 4  ;;  %v1791_v39 = vsel %vm1713_vm7, %v1427_v41, -inf  ;;  %v1564_v35 = vcombine.high %v1356_v51, %v1356_v51 }
 0x1df   : > { %v2403_v4 = vunpack.c.l.b16 %v2814_v2  ;;  %v2405_v36 = vunpack.c.l.b16 %v2816_v31  ;;  %v1779_v26 = vmax.f32 %v1777_v40, %v1778_v24  ;;  %v1792_v37 = vrot.slane %v1791_v39, 4 }
 0x1e0   : > { %v1774_v58 = vmax.f32 %v1772_v21, %v1773_v25  ;;  %v1786_v16 = vmax.f32 %v1784_v46, %v1785_v59  ;;  %v1571_v14 = vrot.slane %v1356_v51, %v3471_v6  ;;  %v1578_v47 = vrot.slane %v1564_v35, %v3471_v6 }
 0x1e1   : > { %v2439_v49 = vsel %vm2418_vm8, %v2403_v4, %v2402_v43  ;;  %v1780_v54 = vrot.slane %v1779_v26, 2  ;;  %v1793_v5 = vmax.f32 %v1791_v39, %v1792_v37  ;;  %v1332_v53 = vadd.f32 %v3466_v62, %v1309_v48 }
 0x1e2   : > { %v2440_v29 = vsel %vm2420_vm9, %v2404_v32, %v2439_v49  ;;  %v1775_v38 = vrot.slane %v1774_v58, 1  ;;  %v1787_v7 = vrot.slane %v1786_v16, 2  ;;  %v1579_v9 = vcombine.high %v1571_v14, %v1571_v14 }
 0x1e3   : > { %v1781_v15 = vmax.f32 %v1779_v26, %v1780_v54  ;;  %v1794_v10 = vrot.slane %v1793_v5, 2  ;;  %v1580_v1 = vcombine.high %v1578_v47, %v1578_v47  ;;  %v2022_v18 = vsel %vm1713_vm7, %v1571_v14, -inf }
 0x1e4   : > { %v1776_v51 = vmax.f32 %v1774_v58, %v1775_v38  ;;  %v1788_v56 = vmax.f32 %v1786_v16, %v1787_v7  ;;  %v2023_v41 = vrot.slane %v2022_v18, 4  ;;  %v2029_v43 = vsel %vm1713_vm7, %v1579_v9, -inf }
 0x1e5   : > { %v1782_v21 = vrot.slane %v1781_v15, 1  ;;  %v1795_v40 = vmax.f32 %v1793_v5, %v1794_v10  ;;  %v2030_v46 = vrot.slane %v2029_v43, 4  ;;  %v2036_v48 = vsel %vm1713_vm7, %v1578_v47, -inf }
 0x1e6   : > { %v1789_v2 = vrot.slane %v1788_v56, 1  ;;  %v2163_v31 = vsel %vm654_vm3, %v1776_v51, -inf  ;;  %v2024_v32 = vmax.f32 %v2022_v18, %v2023_v41  ;;  %v2037_v24 = vrot.slane %v2036_v48, 4 }
 0x1e7   : > { %v1783_v25 = vmax.f32 %v1781_v15, %v1782_v21  ;;  %v1796_v59 = vrot.slane %v1795_v40, 1  ;;  %v2164_v39 = vmax.f32 %v3539_v44, %v2163_v31  ;;  %v2031_v35 = vmax.f32 %v2029_v43, %v2030_v46 }
 0x1e8   : > { %v1790_v4 = vmax.f32 %v1788_v56, %v1789_v2  ;;  %v2025_v26 = vrot.slane %v2024_v32, 2  ;;  %v2038_v37 = vmax.f32 %v2036_v48, %v2037_v24  ;;  %v2043_v58 = vsel %vm1713_vm7, %v1580_v1, -inf }
 0x1e9   : > { %v1797_v16 = vmax.f32 %v1795_v40, %v1796_v59  ;;  %v2166_v14 = vsel %vm654_vm3, %v1783_v25, -inf  ;;  %v2797_v49 = vpack.c.bf16 %v2164_v39, %v2164_v39  ;;  %v2032_v47 = vrot.slane %v2031_v35, 2 }
 0x1ea   : > { %v2167_v54 = vmax.f32 %v3548_v55, %v2166_v14  ;;  %v2169_v5 = vsel %vm654_vm3, %v1790_v4, -inf  ;;  %v2026_v38 = vmax.f32 %v2024_v32, %v2025_v26  ;;  %v2039_v7 = vrot.slane %v2038_v37, 2 }
 0x1eb   : > { %v2170_v9 = vmax.f32 %v3542_v45, %v2169_v5  ;;  %v2172_v44 = vsel %vm654_vm3, %v1797_v16, -inf  ;;  %v2386_v15 = vunpack.c.l.b16 %v2797_v49  ;;  %v2033_v10 = vmax.f32 %v2031_v35, %v2032_v47 }
 0x1ec   : > { %v2173_v1 = vmax.f32 %v3551_v57, %v2172_v44  ;;  %v2798_v18 = vpack.c.bf16 %v2167_v54, %v2167_v54  ;;  %v2027_v51 = vrot.slane %v2026_v38, 1  ;;  %v2040_v56 = vmax.f32 %v2038_v37, %v2039_v7 }
 0x1ed   : > { %v2799_v41 = vpack.c.bf16 %v2170_v9, %v2170_v9  ;;  %v2034_v43 = vrot.slane %v2033_v10, 1  ;;  %v2044_v55 = vrot.slane %v2043_v58, 4  ;;  %v2441_v21 = vsel %vm2422_vm10, %v2405_v36, %v2440_v29 }
 0x1ee   : > { %v2800_v40 = vpack.c.bf16 %v2173_v1, %v2173_v1  ;;  %v2387_v46 = vunpack.c.l.b16 %v2798_v18  ;;  %v2028_v45 = vmax.f32 %v2026_v38, %v2027_v51  ;;  %v2041_v48 = vrot.slane %v2040_v56, 1 }
 0x1ef   : > { %v2388_v2 = vunpack.c.l.b16 %v2799_v41  ;;  %v2035_v31 = vmax.f32 %v2033_v10, %v2034_v43  ;;  %v2045_v57 = vmax.f32 %v2043_v58, %v2044_v55  ;;  %v1348_v32 = vmax.f32 %v1332_v53, 0.0 }
 0x1f0   : > { %v2389_v24 = vunpack.c.l.b16 %v2800_v40  ;;  %v2419_v25 = vsel %vm2418_vm8, %v2387_v46, %v2386_v15  ;;  %v2042_v59 = vmax.f32 %v2040_v56, %v2041_v48  ;;  %v2223_v39 = vsel %vm654_vm3, %v2028_v45, -inf }
 0x1f1   : > { %v2421_v35 = vsel %vm2420_vm9, %v2388_v2, %v2419_v25  ;;  %v2046_v36 = vrot.slane %v2045_v57, 2  ;;  %v2224_v29 = vmax.f32 %v3570_v30, %v2223_v39  ;;  %v2226_v4 = vsel %vm654_vm3, %v2035_v31, -inf }
 0x1f2   : > { %v2227_v53 = vmax.f32 %v3573_v23, %v2226_v4  ;;  %v2229_v26 = vsel %vm654_vm3, %v2042_v59, -inf  ;;  %v1428_v37 = vcombine.high %v1348_v32, %v1348_v32  ;;  %v1435_v58 = vrot.slane %v1348_v32, %v3471_v6 }
 0x1f3   : > { %v2047_v16 = vmax.f32 %v2045_v57, %v2046_v36  ;;  %v2230_v14 = vmax.f32 %v3580_v61, %v2229_v26  ;;  %v2817_v30 = vpack.c.bf16 %v2224_v29, %v2224_v29  ;;  %v3653_v49 = vsel %vm2422_vm10, %v2389_v24, %v2421_v35 }
 0x1f4   : > { %v2818_v47 = vpack.c.bf16 %v2227_v53, %v2227_v53  ;;  %v1442_v54 = vrot.slane %v1428_v37, %v3471_v6  ;;  %v1443_v5 = vcombine.high %v1435_v58, %v1435_v58  ;;  %v1798_v23 = vsel %vm1713_vm7, %v1435_v58, -inf }
 0x1f5   : > { %v2048_v38 = vrot.slane %v2047_v16, 1  ;;  %v2819_v7 = vpack.c.bf16 %v2230_v14, %v2230_v14  ;;  %v2406_v9 = vunpack.c.l.b16 %v2817_v30  ;;  %v1799_v44 = vrot.slane %v1798_v23, 4 }
 0x1f6   : > { %v2407_v61 = vunpack.c.l.b16 %v2818_v47  ;;  %v1444_v15 = vcombine.high %v1442_v54, %v1442_v54  ;;  %v1805_v10 = vsel %vm1713_vm7, %v1443_v5, -inf  ;;  %v1812_v1 = vsel %vm1713_vm7, %v1442_v54, -inf }
 0x1f7   : > { %v2049_v18 = vmax.f32 %v2047_v16, %v2048_v38  ;;  %v2408_v51 = vunpack.c.l.b16 %v2819_v7  ;;  %v2442_v56 = vsel %vm2424_vm11, %v2406_v9, %v2441_v21  ;;  %v1800_v41 = vmax.f32 %v1798_v23, %v1799_v44 }
 0x1f8   : > { %v2443_v43 = vsel %vm2426_vm12, %v2407_v61, %v2442_v56  ;;  %v1806_v55 = vrot.slane %v1805_v10, 4  ;;  %v1813_v40 = vrot.slane %v1812_v1, 4  ;;  %v1819_v46 = vsel %vm1713_vm7, %v1444_v15, -inf }
 0x1f9   : > { %v2232_v45 = vsel %vm654_vm3, %v2049_v18, -inf  ;;  %v2444_v48 = vsel %vm2428_vm13, %v2408_v51, %v2443_v43  ;;  %v1801_v2 = vrot.slane %v1800_v41, 2  ;;  %v1820_v31 = vrot.slane %v1819_v46, 4 }
 0x1fa   : > { %v2233_v57 = vmax.f32 %v3583_v19, %v2232_v45  ;;  %v1807_v32 = vmax.f32 %v1805_v10, %v1806_v55  ;;  %v1814_v24 = vmax.f32 %v1812_v1, %v1813_v40  ;;  %v1341_v21 = vadd.f32 %v3466_v62, %v3602_v11 }
 0x1fb   : > { %v2180_v25 = vsel %vm654_vm3, %v3585_v17, -inf  ;;  %v1802_v59 = vmax.f32 %v1800_v41, %v1801_v2  ;;  %v1821_v39 = vmax.f32 %v1819_v46, %v1820_v31  ;;  %v1310_v35 = vadd.f32 %v3505_v33, %v3445_v52 }
 0x1fc   : > { %v2820_v36 = vpack.c.bf16 %v2233_v57, %v2233_v57  ;;  %v1808_v29 = vrot.slane %v1807_v32, 2  ;;  %v1815_v4 = vrot.slane %v1814_v24, 2  ;;  %v1357_v53 = vmax.f32 %v1341_v21, 0.0 }
 0x1fd   : > { %v2183_v19 = vsel %vm654_vm3, %v3587_v12, -inf  ;;  %v1803_v26 = vrot.slane %v1802_v59, 1  ;;  %v1822_v37 = vrot.slane %v1821_v39, 2  ;;  %v1333_v11 = vadd.f32 %v3466_v62, %v1310_v35 }
 0x1fe   : > { %v2409_v58 = vunpack.c.l.b16 %v2820_v36  ;;  %v1809_v16 = vmax.f32 %v1807_v32, %v1808_v29  ;;  %v1816_v17 = vmax.f32 %v1814_v24, %v1815_v4  ;;  %v1581_v14 = vcombine.high %v1357_v53, %v1357_v53 }
 0x1ff   : > { %v1804_v30 = vmax.f32 %v1802_v59, %v1803_v26  ;;  %v1823_v47 = vmax.f32 %v1821_v39, %v1822_v37  ;;  %v1588_v52 = vrot.slane %v1357_v53, %v3471_v6  ;;  %v1349_v33 = vmax.f32 %v1333_v11, 0.0 }
 0x200   : > { %v2445_v12 = vsel %vm2430_vm14, %v2409_v58, %v2444_v48  ;;  %v1810_v54 = vrot.slane %v1809_v16, 1  ;;  %v1817_v5 = vrot.slane %v1816_v17, 1  ;;  %v1595_v23 = vrot.slane %v1581_v14, %v3471_v6 }
 0x201   : > { %v2455_v38 = vpack.c.b16 %v2445_v12, %v2445_v12  ;;  %v1824_v7 = vrot.slane %v1823_v47, 1  ;;  %v2175_v9 = vsel %vm654_vm3, %v1804_v30, -inf  ;;  %v1596_v44 = vcombine.high %v1588_v52, %v1588_v52 }
 0x202   : > { %v1811_v61 = vmax.f32 %v1809_v16, %v1810_v54  ;;  %v1818_v15 = vmax.f32 %v1816_v17, %v1817_v5  ;;  %v2176_v10 = vmax.f32 %v3590_v20, %v2175_v9  ;;  %v1597_v1 = vcombine.high %v1595_v23, %v1595_v23 }
 0x203   : > { %2464 = vst.msk [vmem:[%s3683_s29 + $0x8] sm:$0xf] %vm2461_vm15, %v2455_v38  ;;  %v1825_v18 = vmax.f32 %v1823_v47, %v1824_v7  ;;  %v2050_v51 = vsel %vm1713_vm7, %v1588_v52, -inf  ;;  %v2057_v56 = vsel %vm1713_vm7, %v1596_v44, -inf  ;;  %v2064_v41 = vsel %vm1713_vm7, %v1595_v23, -inf }
 0x204   : > { %v2178_v43 = vsel %vm654_vm3, %v1811_v61, -inf  ;;  %v2181_v55 = vsel %vm654_vm3, %v1818_v15, -inf  ;;  %v2801_v40 = vpack.c.bf16 %v2176_v10, %v2176_v10  ;;  %v2051_v46 = vrot.slane %v2050_v51, 4 }
 0x205   : > { %v2179_v45 = vmax.f32 %v3595_v22, %v2178_v43  ;;  %v2182_v48 = vmax.f32 %v2180_v25, %v2181_v55  ;;  %v2184_v20 = vsel %vm654_vm3, %v1825_v18, -inf  ;;  %v2058_v2 = vrot.slane %v2057_v56, 4 }
 0x206   : > { %v2185_v31 = vmax.f32 %v2183_v19, %v2184_v20  ;;  %v2390_v57 = vunpack.c.l.b16 %v2801_v40  ;;  %v2052_v32 = vmax.f32 %v2050_v51, %v2051_v46  ;;  %v2065_v24 = vrot.slane %v2064_v41, 4 }
 0x207   : > { %v2802_v21 = vpack.c.bf16 %v2179_v45, %v2179_v45  ;;  %v2803_v59 = vpack.c.bf16 %v2182_v48, %v2182_v48  ;;  %v2059_v39 = vmax.f32 %v2057_v56, %v2058_v2  ;;  %v2071_v35 = vsel %vm1713_vm7, %v1597_v1, -inf }
 0x208   : > { %v2804_v36 = vpack.c.bf16 %v2185_v31, %v2185_v31  ;;  %v2425_v29 = vsel %vm2424_vm11, %v2390_v57, %v3653_v49  ;;  %v2053_v4 = vrot.slane %v2052_v32, 2  ;;  %v2066_v53 = vmax.f32 %v2064_v41, %v2065_v24 }
 0x209   : > { %v2391_v22 = vunpack.c.l.b16 %v2802_v21  ;;  %v2392_v25 = vunpack.c.l.b16 %v2803_v59  ;;  %v2060_v26 = vrot.slane %v2059_v39, 2  ;;  %v2072_v37 = vrot.slane %v2071_v35, 4 }
 0x20a   : > { %v2393_v11 = vunpack.c.l.b16 %v2804_v36  ;;  %v2067_v19 = vrot.slane %v2066_v53, 2  ;;  %v1445_v58 = vcombine.high %v1349_v33, %v1349_v33  ;;  %v1452_v17 = vrot.slane %v1349_v33, %v3471_v6 }
 0x20b   : > { %v2427_v16 = vsel %vm2426_vm12, %v2391_v22, %v2425_v29  ;;  %v1319_v14 = vadd.f32 %v3507_v34, %v3459_v42  ;;  %v2054_v49 = vmax.f32 %v2052_v32, %v2053_v4  ;;  %v2061_v12 = vmax.f32 %v2059_v39, %v2060_v26 }
 0x20c   : > { %v2429_v30 = vsel %vm2428_vm13, %v2392_v25, %v2427_v16  ;;  %v1459_v47 = vrot.slane %v1445_v58, %v3471_v6  ;;  %v2073_v54 = vmax.f32 %v2071_v35, %v2072_v37  ;;  %v1460_v5 = vcombine.high %v1452_v17, %v1452_v17 }
 0x20d   : > { %v2431_v52 = vsel %vm2430_vm14, %v2393_v11, %v2429_v30  ;;  %v2068_v38 = vmax.f32 %v2066_v53, %v2067_v19  ;;  %v1826_v9 = vsel %vm1713_vm7, %v1452_v17, -inf  ;;  %v1342_v44 = vadd.f32 %v3466_v62, %v1319_v14 }
 0x20e   : > { %v2453_v23 = vpack.c.b16 %v2431_v52, %v2431_v52  ;;  %v1461_v7 = vcombine.high %v1459_v47, %v1459_v47  ;;  %v1833_v33 = vsel %vm1713_vm7, %v1460_v5, -inf  ;;  %v2055_v42 = vrot.slane %v2054_v49, 1 }
 0x20f   : > { %v1827_v34 = vrot.slane %v1826_v9, 4  ;;  %v1834_v61 = vrot.slane %v1833_v33, 4  ;;  %v2062_v15 = vrot.slane %v2061_v12, 1  ;;  %v2074_v10 = vrot.slane %v2073_v54, 2 }
 0x210   : > { %2462 = vst.msk [vmem:[%s3683_s29] sm:$0xf] %vm2461_vm15, %v2453_v23  ;;  %v1840_v1 = vsel %vm1713_vm7, %v1459_v47, -inf  ;;  %v1847_v18 = vsel %vm1713_vm7, %v1461_v7, -inf  ;;  %v2069_v51 = vrot.slane %v2068_v38, 1  ;;  %v1358_v40 = vmax.f32 %v1342_v44, 0.0 }
 0x211   : > { %v1828_v56 = vmax.f32 %v1826_v9, %v1827_v34  ;;  %v1835_v41 = vmax.f32 %v1833_v33, %v1834_v61  ;;  %v1841_v43 = vrot.slane %v1840_v1, 4  ;;  %v1848_v55 = vrot.slane %v1847_v18, 4 }
 0x212   : > { %v2056_v46 = vmax.f32 %v2054_v49, %v2055_v42  ;;  %v1598_v2 = vcombine.high %v1358_v40, %v1358_v40  ;;  %v1605_v31 = vrot.slane %v1358_v40, %v3471_v6  ;;  %v2063_v57 = vmax.f32 %v2061_v12, %v2062_v15 }
 0x213   : > { %v1829_v45 = vrot.slane %v1828_v56, 2  ;;  %v1836_v62 = vrot.slane %v1835_v41, 2  ;;  %v1842_v48 = vmax.f32 %v1840_v1, %v1841_v43  ;;  %v1849_v20 = vmax.f32 %v1847_v18, %v1848_v55 }
 0x214   : > { %v2070_v32 = vmax.f32 %v2068_v38, %v2069_v51  ;;  %v2075_v24 = vmax.f32 %v2073_v54, %v2074_v10  ;;  %v1311_v21 = vadd.f32 %v3517_v60, %v3447_v3  ;;  %v1612_v39 = vrot.slane %v1598_v2, %v3471_v6  ;;  %v3728_v60 = vld [vmem:[%s3903_s4] ss:$0 sm:$0xff] }
 0x215   : > { %v1843_v59 = vrot.slane %v1842_v48, 2  ;;  %v1613_v35 = vcombine.high %v1605_v31, %v1605_v31  ;;  %v2078_v36 = vsel %vm1713_vm7, %v1605_v31, -inf  ;;  %v3721_v29 = vsel %vm654_vm3, %v2056_v46, -inf }
 0x216   : > { %v1830_v4 = vmax.f32 %v1828_v56, %v1829_v45  ;;  %v1837_v53 = vmax.f32 %v1835_v41, %v1836_v62  ;;  %v2079_v22 = vrot.slane %v2078_v36, 4  ;;  %v1850_v25 = vrot.slane %v1849_v20, 2 }
 0x217   : > { %v1614_v26 = vcombine.high %v1612_v39, %v1612_v39  ;;  %v2085_v37 = vsel %vm1713_vm7, %v1613_v35, -inf  ;;  %v2092_v11 = vsel %vm1713_vm7, %v1612_v39, -inf  ;;  %v2076_v19 = vrot.slane %v2075_v24, 1 }
 0x218   : > { %v2080_v3 = vmax.f32 %v2078_v36, %v2079_v22  ;;  %v1334_v58 = vadd.f32 %v3728_v60, %v1311_v21  ;;  %v1320_v16 = vadd.f32 %v3519_v0, %v3461_v50  ;;  %v1844_v17 = vmax.f32 %v1842_v48, %v1843_v59 }
 0x219   : > { %v2086_v14 = vrot.slane %v2085_v37, 4  ;;  %v2093_v30 = vrot.slane %v2092_v11, 4  ;;  %v2099_v49 = vsel %vm1713_vm7, %v1614_v26, -inf  ;;  %v3735_v47 = vsel %vm654_vm3, %v2063_v57, -inf }
 0x21a   : > { %v1831_v52 = vrot.slane %v1830_v4, 1  ;;  %v1838_v12 = vrot.slane %v1837_v53, 1  ;;  %v2081_v54 = vrot.slane %v2080_v3, 2  ;;  %v1851_v5 = vmax.f32 %v1849_v20, %v1850_v25 }
 0x21b   : > { %v2087_v23 = vmax.f32 %v2085_v37, %v2086_v14  ;;  %v2094_v38 = vmax.f32 %v2092_v11, %v2093_v30  ;;  %v2100_v7 = vrot.slane %v2099_v49, 4  ;;  %v3738_v9 = vsel %vm654_vm3, %v2070_v32, -inf }
 0x21c   : > { %v2082_v33 = vmax.f32 %v2080_v3, %v2081_v54  ;;  %v1350_v50 = vmax.f32 %v1334_v58, 0.0  ;;  %v1343_v0 = vadd.f32 %v3728_v60, %v1320_v16  ;;  %v1845_v44 = vrot.slane %v1844_v17, 1 }
 0x21d   : > { %v2088_v42 = vrot.slane %v2087_v23, 2  ;;  %v2095_v34 = vrot.slane %v2094_v38, 2  ;;  %v2101_v61 = vmax.f32 %v2099_v49, %v2100_v7  ;;  %v2077_v15 = vmax.f32 %v2075_v24, %v2076_v19 }
 0x21e   : > { %v1832_v10 = vmax.f32 %v1830_v4, %v1831_v52  ;;  %v1462_v1 = vcombine.high %v1350_v50, %v1350_v50  ;;  %v1469_v18 = vrot.slane %v1350_v50, %v3471_v6  ;;  %v1839_v51 = vmax.f32 %v1837_v53, %v1838_v12 }
 0x21f   : > { %v1852_v56 = vrot.slane %v1851_v5, 1  ;;  %v2083_v41 = vrot.slane %v2082_v33, 1  ;;  %v2102_v43 = vrot.slane %v2101_v61, 2  ;;  %v1359_v45 = vmax.f32 %v1343_v0, 0.0 }
 0x220   : > { %v1476_v55 = vrot.slane %v1462_v1, %v3471_v6  ;;  %v1477_v40 = vcombine.high %v1469_v18, %v1469_v18  ;;  %v1854_v46 = vsel %vm1713_vm7, %v1469_v18, -inf  ;;  %v1846_v62 = vmax.f32 %v1844_v17, %v1845_v44 }
 0x221   : > { %v2089_v48 = vmax.f32 %v2087_v23, %v2088_v42  ;;  %v2096_v20 = vmax.f32 %v2094_v38, %v2095_v34  ;;  %v1855_v2 = vrot.slane %v1854_v46, 4  ;;  %v2103_v31 = vmax.f32 %v2101_v61, %v2102_v43 }
 0x222   : > { %v1478_v57 = vcombine.high %v1476_v55, %v1476_v55  ;;  %v1861_v32 = vsel %vm1713_vm7, %v1477_v40, -inf  ;;  %v1868_v24 = vsel %vm1713_vm7, %v1476_v55, -inf  ;;  %v3747_v21 = vsel %vm654_vm3, %v2077_v15, -inf }
 0x223   : > { %v1853_v59 = vmax.f32 %v1851_v5, %v1852_v56  ;;  %v3750_v39 = vsel %vm654_vm3, %v1832_v10, -inf  ;;  %v2084_v35 = vmax.f32 %v2082_v33, %v2083_v41  ;;  %v1856_v36 = vmax.f32 %v1854_v46, %v1855_v2 }
 0x224   : > { %v1862_v4 = vrot.slane %v1861_v32, 4  ;;  %v1869_v53 = vrot.slane %v1868_v24, 4  ;;  %v1615_v22 = vcombine.high %v1359_v45, %v1359_v45  ;;  %v3753_v25 = vsel %vm654_vm3, %v1839_v51, -inf }
 0x225   : > { %v3756_v26 = vsel %vm654_vm3, %v1846_v62, -inf  ;;  %v2090_v37 = vrot.slane %v2089_v48, 1  ;;  %v1875_v11 = vsel %vm1713_vm7, %v1478_v57, -inf  ;;  %v2097_v19 = vrot.slane %v2096_v20, 1 }
 0x226   : > { %v2104_v3 = vrot.slane %v2103_v31, 1  ;;  %v1863_v58 = vmax.f32 %v1861_v32, %v1862_v4  ;;  %v1622_v16 = vrot.slane %v1359_v45, %v3471_v6  ;;  %v3761_v17 = vsel %vm654_vm3, %v1853_v59, -inf }
 0x227   : > { %v3764_v14 = vsel %vm654_vm3, %v2084_v35, -inf  ;;  %v1629_v30 = vrot.slane %v1615_v22, %v3471_v6  ;;  %v1312_v49 = vadd.f32 %v3528_v27, %v3449_v8  ;;  %v1857_v52 = vrot.slane %v1856_v36, 2 }
 0x228   : > { %v1870_v12 = vmax.f32 %v1868_v24, %v1869_v53  ;;  %v1876_v54 = vrot.slane %v1875_v11, 4  ;;  %v1630_v5 = vcombine.high %v1622_v16, %v1622_v16  ;;  %v2091_v23 = vmax.f32 %v2089_v48, %v2090_v37 }
 0x229   : > { %v1631_v38 = vcombine.high %v1629_v30, %v1629_v30  ;;  %v2106_v7 = vsel %vm1713_vm7, %v1622_v16, -inf  ;;  %v2120_v33 = vsel %vm1713_vm7, %v1629_v30, -inf  ;;  %v2098_v50 = vmax.f32 %v2096_v20, %v2097_v19 }
 0x22a   : > { %v2105_v0 = vmax.f32 %v2103_v31, %v2104_v3  ;;  %v1864_v44 = vrot.slane %v1863_v58, 2  ;;  %v2107_v42 = vrot.slane %v2106_v7, 4  ;;  %v2113_v34 = vsel %vm1713_vm7, %v1630_v5, -inf }
 0x22b   : > { %v2121_v61 = vrot.slane %v2120_v33, 4  ;;  %v2127_v15 = vsel %vm1713_vm7, %v1631_v38, -inf  ;;  %v1335_v8 = vadd.f32 %v3728_v60, %v1312_v49  ;;  %v3774_v27 = vmax.f32 %v1856_v36, %v1857_v52 }
 0x22c   : > { %v1871_v10 = vrot.slane %v1870_v12, 2  ;;  %v3776_v1 = vmax.f32 %v1875_v11, %v1876_v54  ;;  %v2108_v18 = vmax.f32 %v2106_v7, %v2107_v42  ;;  %v3779_v51 = vsel %vm654_vm3, %v2091_v23, -inf }
 0x22d   : > { %v2114_v56 = vrot.slane %v2113_v34, 4  ;;  %v2122_v41 = vmax.f32 %v2120_v33, %v2121_v61  ;;  %v2128_v43 = vrot.slane %v2127_v15, 4  ;;  %v3782_v55 = vsel %vm654_vm3, %v2098_v50, -inf }
 0x22e   : > { %v3785_v40 = vsel %vm654_vm3, %v2105_v0, -inf  ;;  %v3787_v46 = vmax.f32 %v1863_v58, %v1864_v44  ;;  %v2109_v45 = vrot.slane %v2108_v18, 2  ;;  %v1351_v2 = vmax.f32 %v1335_v8, 0.0 }
 0x22f   : > { %v2115_v62 = vmax.f32 %v2113_v34, %v2114_v56  ;;  %v2123_v48 = vrot.slane %v2122_v41, 2  ;;  %v2129_v20 = vmax.f32 %v2127_v15, %v2128_v43  ;;  %v1859_v31 = vrot.slane %v3774_v27, 1 }
 0x230   : > { %v3790_v57 = vmax.f32 %v1870_v12, %v1871_v10  ;;  %v1878_v32 = vrot.slane %v3776_v1, 2  ;;  %v2110_v24 = vmax.f32 %v2108_v18, %v2109_v45  ;;  %v1479_v4 = vcombine.high %v1351_v2, %v1351_v2 }
 0x231   : > { %v2116_v59 = vrot.slane %v2115_v62, 2  ;;  %v2124_v35 = vmax.f32 %v2122_v41, %v2123_v48  ;;  %v2130_v36 = vrot.slane %v2129_v20, 2  ;;  %v1866_v53 = vrot.slane %v3787_v46, 1 }
 0x232   : > { %v2111_v22 = vrot.slane %v2110_v24, 1  ;;  %v1486_v37 = vrot.slane %v1351_v2, %v3471_v6  ;;  %v1321_v11 = vadd.f32 %v3530_v28, %v3468_v63  ;;  %v1493_v16 = vrot.slane %v1479_v4, %v3471_v6 }
 0x233   : > { %v2117_v19 = vmax.f32 %v2115_v62, %v2116_v59  ;;  %v2125_v3 = vrot.slane %v2124_v35, 1  ;;  %v2131_v58 = vmax.f32 %v2129_v20, %v2130_v36 }
 0x234   : > { %v2112_v30 = vmax.f32 %v2110_v24, %v2111_v22  ;;  %v1494_v49 = vcombine.high %v1486_v37, %v1486_v37  ;;  %v1882_v52 = vsel %vm1713_vm7, %v1486_v37, -inf  ;;  %v1344_v12 = vadd.f32 %v3728_v60, %v1321_v11 }
 0x235   : > { %v2118_v54 = vrot.slane %v2117_v19, 1  ;;  %v2126_v5 = vmax.f32 %v2124_v35, %v2125_v3  ;;  %v2132_v23 = vrot.slane %v2131_v58, 1  ;;  %v1495_v38 = vcombine.high %v1493_v16, %v1493_v16 }
 0x236   : > { %v2235_v7 = vsel %vm654_vm3, %v2112_v30, -inf  ;;  %v1883_v33 = vrot.slane %v1882_v52, 4  ;;  %v1889_v63 = vsel %vm1713_vm7, %v1494_v49, -inf  ;;  %v1896_v28 = vsel %vm1713_vm7, %v1493_v16, -inf }
 0x237   : > { %v2119_v50 = vmax.f32 %v2117_v19, %v2118_v54  ;;  %v2133_v0 = vmax.f32 %v2131_v58, %v2132_v23  ;;  %v2236_v44 = vmax.f32 %v3721_v29, %v2235_v7  ;;  %v2241_v42 = vsel %vm654_vm3, %v2126_v5, -inf }
 0x238   : > { %v2242_v34 = vmax.f32 %v3738_v9, %v2241_v42  ;;  %v1884_v61 = vmax.f32 %v1882_v52, %v1883_v33  ;;  %v1890_v15 = vrot.slane %v1889_v63, 4  ;;  %v1897_v8 = vrot.slane %v1896_v28, 4 }
 0x239   : > { %v2238_v10 = vsel %vm654_vm3, %v2119_v50, -inf  ;;  %v2244_v18 = vsel %vm654_vm3, %v2133_v0, -inf  ;;  %v2821_v56 = vpack.c.bf16 %v2236_v44, %v2236_v44  ;;  %v1903_v41 = vsel %vm1713_vm7, %v1495_v38, -inf }
 0x23a   : > { %v2239_v43 = vmax.f32 %v3735_v47, %v2238_v10  ;;  %v2245_v45 = vmax.f32 %v3747_v21, %v2244_v18  ;;  %v2823_v62 = vpack.c.bf16 %v2242_v34, %v2242_v34  ;;  %v1885_v29 = vrot.slane %v1884_v61, 2  ;;  %v3912_v47 = vld [vmem:[#allocation2_spill] sm:$0xff] }
 0x23b   : > { %v2410_v48 = vunpack.c.l.b16 %v2821_v56  ;;  %v1891_v20 = vmax.f32 %v1889_v63, %v1890_v15  ;;  %v1898_v2 = vmax.f32 %v1896_v28, %v1897_v8  ;;  %v1904_v9 = vrot.slane %v1903_v41, 4 }
 0x23c   : > { %v2822_v24 = vpack.c.bf16 %v2239_v43, %v2239_v43  ;;  %v2824_v59 = vpack.c.bf16 %v2245_v45, %v2245_v45  ;;  %v2412_v35 = vunpack.c.l.b16 %v2823_v62  ;;  %v1886_v36 = vmax.f32 %v1884_v61, %v1885_v29 }
 0x23d   : > { %v1892_v4 = vrot.slane %v1891_v20, 2  ;;  %v1899_v22 = vrot.slane %v1898_v2, 2  ;;  %v1905_v37 = vmax.f32 %v1903_v41, %v1904_v9  ;;  %v1360_v11 = vmax.f32 %v1344_v12, 0.0 }
 0x23e   : > { %v2411_v19 = vunpack.c.l.b16 %v2822_v24  ;;  %v2413_v3 = vunpack.c.l.b16 %v2824_v59  ;;  %v1887_v58 = vrot.slane %v1886_v36, 1  ;;  %v1313_v21 = vadd.f32 %v3912_v47, %v3451_v13 }
 0x23f   : > { %v1893_v16 = vmax.f32 %v1891_v20, %v1892_v4  ;;  %v1900_v30 = vmax.f32 %v1898_v2, %v1899_v22  ;;  %v1906_v49 = vrot.slane %v1905_v37, 2  ;;  %v1632_v52 = vcombine.high %v1360_v11, %v1360_v11 }
 0x240   : > { %v2446_v54 = vsel %vm2418_vm8, %v2411_v19, %v2410_v48  ;;  %v1888_v5 = vmax.f32 %v1886_v36, %v1887_v58  ;;  %v1639_v23 = vrot.slane %v1360_v11, %v3471_v6  ;;  %v1336_v38 = vadd.f32 %v3728_v60, %v1313_v21 }
 0x241   : > { %v2447_v7 = vsel %vm2420_vm9, %v2412_v35, %v2446_v54  ;;  %v1894_v12 = vrot.slane %v1893_v16, 1  ;;  %v1901_v33 = vrot.slane %v1900_v30, 1  ;;  %v1907_v63 = vmax.f32 %v1905_v37, %v1906_v49 }
 0x242   : > { %v2187_v28 = vsel %vm654_vm3, %v1888_v5, -inf  ;;  %v1646_v13 = vrot.slane %v1632_v52, %v3471_v6  ;;  %v1647_v50 = vcombine.high %v1639_v23, %v1639_v23  ;;  %v2134_v0 = vsel %vm1713_vm7, %v1639_v23, -inf }
 0x243   : > { %v1895_v44 = vmax.f32 %v1893_v16, %v1894_v12  ;;  %v1902_v42 = vmax.f32 %v1900_v30, %v1901_v33  ;;  %v1908_v34 = vrot.slane %v1907_v63, 1  ;;  %v2188_v61 = vmax.f32 %v3750_v39, %v2187_v28 }
 0x244   : > { %v1648_v15 = vcombine.high %v1646_v13, %v1646_v13  ;;  %v2135_v8 = vrot.slane %v2134_v0, 4  ;;  %v2141_v60 = vsel %vm1713_vm7, %v1647_v50, -inf  ;;  %v2148_v10 = vsel %vm1713_vm7, %v1646_v13, -inf }
 0x245   : > { %v1909_v18 = vmax.f32 %v1907_v63, %v1908_v34  ;;  %v2190_v56 = vsel %vm654_vm3, %v1895_v44, -inf  ;;  %v2193_v41 = vsel %vm654_vm3, %v1902_v42, -inf  ;;  %v2805_v43 = vpack.c.bf16 %v2188_v61, %v2188_v61 }
 0x246   : > { %v2191_v45 = vmax.f32 %v3753_v25, %v2190_v56  ;;  %v2194_v62 = vmax.f32 %v3756_v26, %v2193_v41  ;;  %v2136_v29 = vmax.f32 %v2134_v0, %v2135_v8  ;;  %v2142_v48 = vrot.slane %v2141_v60, 4 }
 0x247   : > { %v2196_v39 = vsel %vm654_vm3, %v1909_v18, -inf  ;;  %v2394_v20 = vunpack.c.l.b16 %v2805_v43  ;;  %v2149_v2 = vrot.slane %v2148_v10, 4  ;;  %v2155_v9 = vsel %vm1713_vm7, %v1648_v15, -inf }
 0x248   : > { %v2197_v24 = vmax.f32 %v3761_v17, %v2196_v39  ;;  %v2806_v59 = vpack.c.bf16 %v2191_v45, %v2191_v45  ;;  %v2807_v35 = vpack.c.bf16 %v2194_v62, %v2194_v62  ;;  %v2137_v36 = vrot.slane %v2136_v29, 2 }
 0x249   : > { %v2143_v4 = vmax.f32 %v2141_v60, %v2142_v48  ;;  %v2150_v22 = vmax.f32 %v2148_v10, %v2149_v2  ;;  %v2156_v37 = vrot.slane %v2155_v9, 4  ;;  %v2448_v25 = vsel %vm2422_vm10, %v2413_v3, %v2447_v7 }
 0x24a   : > { %v2808_v11 = vpack.c.bf16 %v2197_v24, %v2197_v24  ;;  %v2395_v26 = vunpack.c.l.b16 %v2806_v59  ;;  %v2396_v19 = vunpack.c.l.b16 %v2807_v35  ;;  %v2138_v58 = vmax.f32 %v2136_v29, %v2137_v36 }
 0x24b   : > { %v2144_v47 = vrot.slane %v2143_v4, 2  ;;  %v2151_v21 = vrot.slane %v2150_v22, 2  ;;  %v2157_v16 = vmax.f32 %v2155_v9, %v2156_v37  ;;  %v1352_v30 = vmax.f32 %v1336_v38, 0.0 }
 0x24c   : > { %v1873_v49 = vrot.slane %v3790_v57, 1  ;;  %v2397_v52 = vunpack.c.l.b16 %v2808_v11  ;;  %v2432_v17 = vsel %vm2418_vm8, %v2395_v26, %v2394_v20  ;;  %v2139_v54 = vrot.slane %v2138_v58, 1 }
 0x24d   : > { %v2433_v5 = vsel %vm2420_vm9, %v2396_v19, %v2432_v17  ;;  %v2145_v23 = vmax.f32 %v2143_v4, %v2144_v47  ;;  %v2152_v12 = vmax.f32 %v2150_v22, %v2151_v21  ;;  %v2158_v33 = vrot.slane %v2157_v16, 2 }
 0x24e   : > { %v2140_v3 = vmax.f32 %v2138_v58, %v2139_v54  ;;  %v1496_v7 = vcombine.high %v1352_v30, %v1352_v30  ;;  %v1503_v63 = vrot.slane %v1352_v30, %v3471_v6  ;;  %v3836_v28 = vsel %vm2422_vm10, %v2397_v52, %v2433_v5 }
 0x24f   : > { %v1879_v38 = vmax.f32 %v3776_v1, %v1878_v32  ;;  %v2146_v13 = vrot.slane %v2145_v23, 1  ;;  %v2153_v50 = vrot.slane %v2152_v12, 1  ;;  %v2159_v0 = vmax.f32 %v2157_v16, %v2158_v33 }
 0x250   : > { %v2247_v44 = vsel %vm654_vm3, %v2140_v3, -inf  ;;  %v1510_v42 = vrot.slane %v1496_v7, %v3471_v6  ;;  %v1511_v34 = vcombine.high %v1503_v63, %v1503_v63  ;;  %v1910_v61 = vsel %vm1713_vm7, %v1503_v63, -inf }
 0x251   : > { %v2147_v15 = vmax.f32 %v2145_v23, %v2146_v13  ;;  %v2154_v8 = vmax.f32 %v2152_v12, %v2153_v50  ;;  %v2160_v60 = vrot.slane %v2159_v0, 1  ;;  %v2248_v10 = vmax.f32 %v3764_v14, %v2247_v44 }
 0x252   : > { %v1512_v18 = vcombine.high %v1510_v42, %v1510_v42  ;;  %v1911_v56 = vrot.slane %v1910_v61, 4  ;;  %v1917_v41 = vsel %vm1713_vm7, %v1511_v34, -inf  ;;  %v1924_v1 = vsel %vm1713_vm7, %v1510_v42, -inf }
 0x253   : > { %v2161_v32 = vmax.f32 %v2159_v0, %v2160_v60  ;;  %v2250_v43 = vsel %vm654_vm3, %v2147_v15, -inf  ;;  %v2253_v45 = vsel %vm654_vm3, %v2154_v8, -inf  ;;  %v2825_v6 = vpack.c.bf16 %v2248_v10, %v2248_v10 }
 0x254   : > { %v2251_v62 = vmax.f32 %v3779_v51, %v2250_v43  ;;  %v2254_v29 = vmax.f32 %v3782_v55, %v2253_v45  ;;  %v1912_v48 = vmax.f32 %v1910_v61, %v1911_v56  ;;  %v1918_v39 = vrot.slane %v1917_v41, 4 }
 0x255   : > { %v2256_v14 = vsel %vm654_vm3, %v2161_v32, -inf  ;;  %v2414_v20 = vunpack.c.l.b16 %v2825_v6  ;;  %v1925_v2 = vrot.slane %v1924_v1, 4  ;;  %v1931_v9 = vsel %vm1713_vm7, %v1512_v18, -inf }
 0x256   : > { %v2257_v24 = vmax.f32 %v3785_v40, %v2256_v14  ;;  %v2826_v59 = vpack.c.bf16 %v2251_v62, %v2251_v62  ;;  %v2827_v35 = vpack.c.bf16 %v2254_v29, %v2254_v29  ;;  %v1913_v36 = vrot.slane %v1912_v48, 2 }
 0x257   : > { %v2449_v4 = vsel %vm2424_vm11, %v2414_v20, %v2448_v25  ;;  %v1919_v22 = vmax.f32 %v1917_v41, %v1918_v39  ;;  %v1926_v37 = vmax.f32 %v1924_v1, %v1925_v2  ;;  %v1932_v51 = vrot.slane %v1931_v9, 4 }
 0x258   : > { %v2828_v11 = vpack.c.bf16 %v2257_v24, %v2257_v24  ;;  %v2415_v55 = vunpack.c.l.b16 %v2826_v59  ;;  %v2416_v26 = vunpack.c.l.b16 %v2827_v35  ;;  %v1914_v19 = vmax.f32 %v1912_v48, %v1913_v36 }
 0x259   : > { %v1860_v58 = vmax.f32 %v3774_v27, %v1859_v31  ;;  %v1920_v47 = vrot.slane %v1919_v22, 2  ;;  %v1927_v21 = vrot.slane %v1926_v37, 2  ;;  %v1933_v16 = vmax.f32 %v1931_v9, %v1932_v51 }
 0x25a   : > { %v1880_v40 = vrot.slane %v1879_v38, 1  ;;  %v2417_v30 = vunpack.c.l.b16 %v2828_v11  ;;  %v2450_v52 = vsel %vm2426_vm12, %v2415_v55, %v2449_v4  ;;  %v1915_v17 = vrot.slane %v1914_v19, 1 }
 0x25b   : > { %v2451_v25 = vsel %vm2428_vm13, %v2416_v26, %v2450_v52  ;;  %v1921_v54 = vmax.f32 %v1919_v22, %v1920_v47  ;;  %v1928_v5 = vmax.f32 %v1926_v37, %v1927_v21  ;;  %v1934_v23 = vrot.slane %v1933_v16, 2 }
 0x25c   : > { %v1867_v12 = vmax.f32 %v3787_v46, %v1866_v53  ;;  %v1874_v27 = vmax.f32 %v3790_v57, %v1873_v49  ;;  %v2452_v31 = vsel %vm2430_vm14, %v2417_v30, %v2451_v25  ;;  %v1916_v33 = vmax.f32 %v1914_v19, %v1915_v17 }
 0x25d   : > { %v2456_v3 = vpack.c.b16 %v2452_v31, %v2452_v31  ;;  %v1922_v7 = vrot.slane %v1921_v54, 1  ;;  %v1929_v63 = vrot.slane %v1928_v5, 1  ;;  %v1935_v13 = vmax.f32 %v1933_v16, %v1934_v23 }
 0x25e   : > { %v1881_v50 = vmax.f32 %v1879_v38, %v1880_v40  ;;  %v2198_v0 = vsel %vm654_vm3, %v1860_v58, -inf  ;;  %v2199_v44 = vsel %vm654_vm3, %v1916_v33, -inf  ;;  %v2201_v57 = vsel %vm654_vm3, %v1867_v12, -inf }
 0x25f   : > { %2465 = vst.msk [vmem:[%s3683_s29 + $0xc] sm:$0xf] %vm2461_vm15, %v2456_v3  ;;  %v1923_v42 = vmax.f32 %v1921_v54, %v1922_v7  ;;  %v1930_v46 = vmax.f32 %v1928_v5, %v1929_v63  ;;  %v1936_v53 = vrot.slane %v1935_v13, 1  ;;  %v2200_v34 = vmax.f32 %v2198_v0, %v2199_v44 }
 0x260   : > { %v2204_v49 = vsel %vm654_vm3, %v1874_v27, -inf  ;;  %v2207_v18 = vsel %vm654_vm3, %v1881_v50, -inf }
 0x261   : > { %v1937_v61 = vmax.f32 %v1935_v13, %v1936_v53  ;;  %v2202_v15 = vsel %vm654_vm3, %v1923_v42, -inf  ;;  %v2205_v8 = vsel %vm654_vm3, %v1930_v46, -inf  ;;  %v2809_v38 = vpack.c.bf16 %v2200_v34, %v2200_v34 }
 0x262   : > { %v2203_v60 = vmax.f32 %v2201_v57, %v2202_v15  ;;  %v2206_v10 = vmax.f32 %v2204_v49, %v2205_v8 }
 0x263   : > { %v2208_v56 = vsel %vm654_vm3, %v1937_v61, -inf  ;;  %v2398_v41 = vunpack.c.l.b16 %v2809_v38 }
 0x264   : > { %v2209_v1 = vmax.f32 %v2207_v18, %v2208_v56  ;;  %v2810_v32 = vpack.c.bf16 %v2203_v60, %v2203_v60  ;;  %v2811_v43 = vpack.c.bf16 %v2206_v10, %v2206_v10 }
 0x265   : > { %v2435_v45 = vsel %vm2424_vm11, %v2398_v41, %v3836_v28 }
 0x266   : > { %v2812_v6 = vpack.c.bf16 %v2209_v1, %v2209_v1  ;;  %v2399_v62 = vunpack.c.l.b16 %v2810_v32  ;;  %v2400_v29 = vunpack.c.l.b16 %v2811_v43 }
 0x268   : > { %v2401_v48 = vunpack.c.l.b16 %v2812_v6  ;;  %v2436_v39 = vsel %vm2426_vm12, %v2399_v62, %v2435_v45 }
 0x269   : > { %v2437_v14 = vsel %vm2428_vm13, %v2400_v29, %v2436_v39 }
 0x26a   : > { %v2438_v20 = vsel %vm2430_vm14, %v2401_v48, %v2437_v14 }
 0x26b   : > { %v2454_v2 = vpack.c.b16 %v2438_v20, %v2438_v20 }
 0x26d   : > { %2463 = vst.msk [vmem:[%s3683_s29 + $0x4] sm:$0xf] %vm2461_vm15, %v2454_v2 }
 0x26e PF: > { %s15_s22 = sadd.s32 1, %s2979_s22   ;;  %s3913_s18 = smov %s2971_s20 }
 0x26f   : > { %p12_p1 = scmp.ge.s32.totalorder %s15_s22, 6   ;;  %s3914_s19 = smov %s2975_s21 }
 0x270   : > { %s3915_s20 = smov %s3918_s23  ;;  %s3916_s21 = smov %s3922_s24 }
 0x271   :  { %14 = sbr.rel (!%p12_p1) target bundleno = 3 (0x3), region = 78 }

// kernel: feature_extractor.7
= control target key start
LH: loop header
LB: loop body
LE: loop exit
PB: predicated region body
PF: predicated region fallthrough
CT: control target
= control target key end

     0   :  { %s1538_s18 = smov 0   ;;  %s1540_s19 = smov 0   ;;  %s1929_s0 = inlined_call_operand.vmem [shape: bf16[2,8,8,64], index: 0, kind: input, shape index: {}, may-alias: {0,1,2}]   ;;  %s1930_s1 = inlined_call_operand.vmem [shape: bf16[2,8,8,64], index: 1, kind: input, shape index: {}, may-alias: {0,1,2}]   ;;  %s1931_s2 = inlined_call_operand.vmem [shape: bf16[2,8,8,64], index: 2, kind: input, shape index: {}, may-alias: {0,1,2}]   ;;  %s1932_s3 = inlined_call_operand.vmem [shape: bf16[3,192,128], index: 3, kind: input, shape index: {}]   ;;  %s1933_s4 = inlined_call_operand.vmem [shape: f32[1,128], index: 4, kind: input, shape index: {}]   ;;  %s1934_s5 = inlined_call_operand.vmem [shape: bf16[2,8,8,128], index: 5, kind: output, shape index: {}]  }
   0x1   :  { %s1542_s20 = smov 0   ;;  %s1544_s21 = smov 0  }
   0x2   :  { %s1546_s22 = smov 0  }
   0x3 LB: > { %s24_s23 = sadd.s32 1, %s1496_s20  ;;  %s27_s24 = sadd.s32 1, %s1500_s21  ;;  %s1504_s22 = sphi %s1546_s22, %s15_s22   ;;  %s1500_s21 = sphi %s1544_s21, %s1943_s21   ;;  %s1496_s20 = sphi %s1542_s20, %s1942_s20   ;;  %s1492_s19 = sphi %s1540_s19, %s1941_s19   ;;  %s1488_s18 = sphi %s1538_s18, %s1940_s18  }
   0x4   : > { %p25_p0 = scmp.ge.s32.totalorder %s24_s23, 2  ;;  %p1210_p1 = scmp.ge.s32.totalorder %s1504_s22, 1 }
   0x5   : > { %p270_p2 = scmp.lt.s32.totalorder %s1504_s22, 5 }
   0x6   : > { %s1945_s23 = smov (%p25_p0, %s24_s23), 0  ;;  %s1947_s24 = smov (!%p25_p0, %s27_s24), %s1500_s21 }
   0x7   : > { %p271_p3 = pnand %p1210_p1, %p270_p2  ;;  %p29_p4 = scmp.ge.s32.totalorder %s1947_s24, 2 }
   0x8   : > { %s1571_s25 = sshll.u32 (!%p271_p3), %s1488_s18, 2  ;;  %p334_p5 = scmp.lt.s32.totalorder (!%p271_p3), %s1492_s19, 1 }
   0x9   : > { %s1949_s24 = smov (%p29_p4, %s1947_s24), 0  ;;  %274 = sbr.rel (%p271_p3) target bundleno = 414 (0x19e), region = 40 }
   0xa   : > { %p349_p6 = scmp.lt.s32.totalorder (!%p271_p3), %s1571_s25, 7  ;;  %s1212_s9 = sadd.s32 (!%p271_p3), 4294967295, %s1571_s25 }
   0xb   : > { %p332_p7 = scmp.gt.s32.totalorder (!%p271_p3), %s1212_s9, 0  ;;  %p1213_p8 = scmp.lt.s32.totalorder (!%p271_p3), %s1212_s9, 7 }
   0xc   : > { %p383_p9 = scmp.gt.s32.totalorder (!%p271_p3), %s1488_s18, 0  ;;  %s1507_s29 = smov (!%p271_p3), 64  }
   0xd   : > { %p395_p12 = scmp.lt.s32.totalorder (!%p271_p3), %s1488_s18, 1 }
   0xe   : > { %v1430_v0 = vld [vmem:[%s1932_s3 + $0x98] sm:$0xff]   ;;  %v1506_v1 = vmov 0   ;;  %s1951_s19 = smov (!%p334_p5, %s1492_s19), 1  ;;  %v1432_v3 = vld [vmem:[%s1932_s3 + $0x90] sm:$0xff]   ;;  %v1434_v5 = vld [vmem:[%s1932_s3 + $0x88] sm:$0xff]   ;;  %s1953_s9 = smov (!%p332_p7, %s1212_s9), 0 }
   0xf   : > { %709 = vmatprep.subr.bf16.mxu0 %v1506_v1  ;;  %842 = vmatprep.subr.bf16.mxu1 %v1506_v1  ;;  %v1431_v2 = vld [vmem:[%s1932_s3 + $0x38] sm:$0xff]   ;;  %s350_s30 = scalar_select %p349_p6, %s1571_s25, 7  ;;  %v1433_v4 = vld [vmem:[%s1932_s3 + $0x30] sm:$0xff]   ;;  %v1435_v7 = vld [vmem:[%s1932_s3 + $0x28] sm:$0xff]   ;;  %vm516_vm0 = vcmask 1043456   ;;  %vm537_vm3 = vcmask 523264  }
  0x10   : > { %710 = vmatpush1.bf16.msra.mxu0 %v1430_v0  ;;  %s1587_s8 = sshll.u32 %s1951_s19, 3  ;;  %843 = vmatpush1.bf16.msra.mxu1 %v1431_v2  ;;  %s1955_s9 = smov (!%p1213_p8, %s1953_s9), 7  ;;  %v1436_v9 = vld [vmem:[%s1932_s3 + $0x80] sm:$0xff]   ;;  %v1438_v11 = vld [vmem:[%s1932_s3 + $0x78] sm:$0xff]   ;;  %v1440_v14 = vld [vmem:[%s1932_s3 + $0x70] sm:$0xff]   ;;  %vm489_vm4 = vcmask 1040384  }
  0x11   : > { %711 = vmatprep.subr.bf16.mxu0 %v1506_v1  ;;  %s352_s12 = sadd.s32 %s1587_s8, %s350_s30  ;;  %844 = vmatprep.subr.bf16.mxu1 %v1506_v1  ;;  %s339_s10 = sadd.s32 %s1955_s9, %s1587_s8  ;;  %v1437_v10 = vld [vmem:[%s1932_s3 + $0x20] sm:$0xff]   ;;  %v1439_v12 = vld [vmem:[%s1932_s3 + $0x18] sm:$0xff]   ;;  %v1441_v15 = vld [vmem:[%s1932_s3 + $0x10] sm:$0xff]   ;;  %vm517_vm1 = vsmask.f32 3328 }
  0x12   : > { %s1598_s15 = sshll.u32 %s352_s12, 2  ;;  %s1219_s14 = sshll.u32 %s339_s10, 2  ;;  %v1442_v18 = vld [vmem:[%s1932_s3 + $0x68] sm:$0xff]   ;;  %v1444_v25 = vld [vmem:[%s1932_s3 + $0x60] sm:$0xff]   ;;  %v1446_v29 = vld [vmem:[%s1932_s3 + $0xb8] sm:$0xff]  }
  0x13   : > { %s1604_s19 = scalar_lea.vmem %s1930_s1, %s1598_s15  ;;  %s341_s27 = scalar_lea.vmem %s1929_s0, %s1219_s14  ;;  %v1443_v21 = vld [vmem:[%s1932_s3 + $0x8] sm:$0xff]   ;;  %v1445_v27 = vld [vmem:[%s1932_s3] sm:$0xff]   ;;  %v1447_v37 = vld [vmem:[%s1932_s3 + $0x58] sm:$0xff]   ;;  %vm490_vm5 = vsmask.f32 256 }
  0x14   : > { %712 = vmatpush1.bf16.msra.mxu0 %v1432_v3  ;;  %v1609_v6 = vld [vmem:[%s1604_s19 + $0x4] ss:$0 sps:$4 sm:$0xff]   ;;  %845 = vmatpush1.bf16.msra.mxu1 %v1433_v4  ;;  %s384_s28 = scalar_select %p383_p9, 1.0, 0.0  ;;  %v1618_v8 = vld [vmem:[%s1604_s19 + $0x8] ss:$0 sps:$4 sm:$0xff]   ;;  %vm1753_vm2 = vmand %vm516_vm0, %vm517_vm1 }
  0x15   : > { %713 = vmatprep.subr.bf16.mxu0 %v1506_v1  ;;  %846 = vmatprep.subr.bf16.mxu1 %v1506_v1  ;;  %s1348_s12 = sadd.s32 4, %s1571_s25  ;;  %v407_v13 = vld [vmem:[%s341_s27] sm:$0xf]  ;;  %v456_v22 = vshrl.u32 %v1609_v6, 16  ;;  %v1682_v23 = vld [vmem:[%s1604_s19 + $0xc] ss:$0 sps:$4 sm:$0xff]   ;;  %vm1806_vm6 = vmand %vm489_vm4, %vm490_vm5  ;;  %s380_s14 = scalar_lea.vmem %s1934_s5, %s1598_s15 }
  0x16   : > { %529 = vrot.lane.b32.xlu1 %v1609_v6, %s1507_s29  ;;  %p386_p10 = scmp.ne.f32.partialorder %s384_s28, %s384_s28  ;;  %s387_s7 = sshrl.u32 %s384_s28, 16  ;;  %v1672_v20 = vld [vmem:[%s1604_s19] ss:$0 sps:$4 sm:$0xff]   ;;  %v473_v28 = vshll.u32 %v1682_v23, 16  ;;  %v459_v31 = vshll.u32 %v1609_v6, 16  ;;  %v463_v34 = vshrl.u32 %v1618_v8, 16 }
  0x17   : > { %s388_s11 = sand.u32 1, %s387_s7  ;;  %p1643_p11 = scmp.lt.s32.totalorder %s1348_s12, 7  ;;  %v449_v26 = vshrl.u32 %v1672_v20, 16  ;;  %v458_v30 = vrot.slane %v456_v22, 7  ;;  %v466_v39 = vshll.u32 %v1618_v8, 16  ;;  %v1448_v41 = vld [vmem:[%s1932_s3 + $0xb0] sm:$0xff]  }
  0x18   : > { %714 = vmatpush1.bf16.msra.mxu0 %v1434_v5  ;;  %847 = vmatpush1.bf16.msra.mxu1 %v1435_v7  ;;  %s389_s16 = sadd.s32 32767, %s388_s11  ;;  %v452_v42 = vshll.u32 %v1672_v20, 16  ;;  %v502_v43 = vrot.slane %v459_v31, 1  ;;  %v506_v44 = vrot.slane %v473_v28, 1  ;;  %v470_v45 = vshrl.u32 %v1682_v23, 16  ;;  %v1449_v52 = vld [vmem:[%s1932_s3 + $0x50] sm:$0xff]  }
  0x19   : > { %715 = vmatprep.subr.bf16.mxu0 %v1506_v1  ;;  %848 = vmatprep.subr.bf16.mxu1 %v1506_v1  ;;  %s390_s30 = sadd.s32 %s389_s16, %s384_s28  ;;  %s1959_s12 = smov (!%p1643_p11, %s1348_s12), 7  ;;  %v1717_v35 = vor.u32 %v459_v31, %v458_v30  ;;  %v451_v40 = vrot.slane %v449_v26, 7  ;;  %v504_v47 = vrot.slane %v466_v39, 1  ;;  %v1450_v56 = vld [vmem:[%s1932_s3 + $0xa8] sm:$0xff]   ;;  %v1452_v6 = vld [vmem:[%s1932_s3 + $0xa0] sm:$0xff]  }
  0x1a   : > { %531 = vrot.lane.b32.xlu1 %v1618_v8, %s1507_s29  ;;  %s391_s7 = sand.u32 4294901760, %s390_s30  ;;  %s1961_s12 = smov (!%p1643_p11, %s1959_s12), 7  ;;  %v500_v50 = vrot.slane %v452_v42, 1  ;;  %v503_v51 = vor.u32 %v502_v43, %v456_v22  ;;  %v507_v54 = vor.u32 %v506_v44, %v470_v45  ;;  %v1451_v63 = vld [vmem:[%s1932_s3 + $0x48] sm:$0xff]   ;;  %v472_v8 = vrot.slane %v470_v45, 7 }
  0x1b   : > { %s1957_s7 = smov (%p386_p10, %s391_s7), 2143289344  ;;  %s365_s11 = sadd.s32 %s1587_s8, %s1961_s12  ;;  %v1738_v49 = vor.u32 %v452_v42, %v451_v40  ;;  %v505_v53 = vor.u32 %v504_v47, %v463_v34  ;;  %v1456_v45 = vld [vmem:[%s1932_s3 + $0xe8] sm:$0xff]  }
  0x1c   : > { %716 = vmatpush1.bf16.msra.mxu0 %v1436_v9  ;;  %849 = vmatpush1.bf16.msra.mxu1 %v1437_v10  ;;  %s394_s25 = sshrl.u32 %s1957_s7, 16  ;;  %v501_v57 = vor.u32 %v500_v50, %v449_v26  ;;  %v521_v61 = vsel %vm1753_vm2, %v503_v51, 0  ;;  %v1773_v0 = vsel %vm1753_vm2, %v507_v54, 0  ;;  %v1453_v9 = vld [vmem:[%s1932_s3 + $0x40] sm:$0xff]   ;;  %v1458_v50 = vld [vmem:[%s1932_s3 + $0xd8] sm:$0xff]   ;;  %v1459_v51 = vld [vmem:[%s1932_s3 + $0xd0] sm:$0xff]  }
  0x1d   : > { %717 = vmatprep.subr.bf16.mxu0 %v1506_v1  ;;  %850 = vmatprep.subr.bf16.mxu1 %v1506_v1  ;;  %s408_s16 = sshll.u32 %s394_s25, 16  ;;  %v1766_v62 = vsel %vm1753_vm2, %v505_v53, 0  ;;  %v493_v31 = vsel %vm1806_vm6, 0, %v1738_v49  ;;  %v1457_v49 = vld [vmem:[%s1932_s3 + $0xe0] sm:$0xff]   ;;  %v1462_v54 = vld [vmem:[%s1932_s3 + $0x118] sm:$0xff]  }
  0x1e   : > { %s409_s27 = sor.u32 %s408_s16, %s394_s25  ;;  %s1228_s25 = sshll.u32 %s365_s11, 2  ;;  %v520_v60 = vsel %vm1753_vm2, %v501_v57, 0  ;;  %v1776_v3 = vcombine.low %v521_v61, %v1766_v62  ;;  %v1265_v5 = vcombine.low %v1766_v62, %v1773_v0  ;;  %v1461_v53 = vld [vmem:[%s1932_s3 + $0xc0] sm:$0xff]  }
  0x1f   : > { %v410_v16 = vstv %s409_s27  ;;  %s1661_s30 = scalar_select %p395_p12, 1.0, 0.0  ;;  %v1263_v2 = vcombine.low %v520_v60, %v521_v61  ;;  %v1465_v57 = vld [vmem:[%s1932_s3 + $0x100] sm:$0xff]  }
  0x20   : > { %718 = vmatpush1.bf16.msra.mxu0 %v1438_v11  ;;  %851 = vmatpush1.bf16.msra.mxu1 %v1439_v12  ;;  %v412_v17 = vmul.bf16 %v410_v16, %v407_v13  ;;  %s367_s17 = scalar_lea.vmem %s1931_s2, %s1228_s25 }
  0x21   : > { %719 = vmatprep.subr.bf16.mxu0 %v1506_v1  ;;  %852 = vmatprep.subr.bf16.mxu1 %v1506_v1  ;;  %p398_p13 = scmp.ne.f32.partialorder %s1661_s30, %s1661_s30  ;;  %s399_s18 = sshrl.u32 %s1661_s30, 16  ;;  %v417_v36 = vld [vmem:[%s367_s17] sm:$0xf] }
  0x22   : > { %v1669_v19 = vcombine.low %v412_v17, %v412_v17  ;;  %s400_s13 = sand.u32 1, %s399_s18  ;;  %1278 = vmatprep.mubr.msk.bf16.mxu0 %vm537_vm3, %v1263_v2  ;;  %v465_v17 = vrot.slane %v463_v34, 7 }
  0x23   : > { %s401_s28 = sadd.s32 32767, %s400_s13 }
  0x24   : > { %720 = vmatpush1.bf16.msra.mxu0 %v1440_v14  ;;  %853 = vmatpush1.bf16.msra.mxu1 %v1441_v15  ;;  %v442_v24 = vshrl.u32 %v1669_v19, 16  ;;  %s402_s19 = sadd.s32 %s401_s28, %s1661_s30  ;;  %v445_v33 = vshll.u32 %v1669_v19, 16 }
  0x25   : > { %721 = vmatprep.subr.bf16.mxu0 %v1506_v1  ;;  %854 = vmatprep.subr.bf16.mxu1 %v1506_v1  ;;  %s403_s26 = sand.u32 4294901760, %s402_s19 }
  0x26   : > { %525 = vrot.lane.b32.xlu0 %v1669_v19, %s1507_s29  ;;  %s1963_s26 = smov (%p398_p13, %s403_s26), 2143289344  ;;  %v444_v32 = vrot.slane %v442_v24, 7  ;;  %v498_v59 = vrot.slane %v445_v33, 1 }
  0x27   : > { %s406_s30 = sshrl.u32 %s1963_s26, 16 }
  0x28   : > { %722 = vmatpush1.bf16.msra.mxu0 %v1442_v18  ;;  %855 = vmatpush1.bf16.msra.mxu1 %v1443_v21  ;;  %s418_s7 = sshll.u32 %s406_s30, 16  ;;  %v1722_v38 = vor.u32 %v445_v33, %v444_v32  ;;  %v499_v4 = vor.u32 %v498_v59, %v442_v24  ;;  %v468_v18 = vor.u32 %v466_v39, %v465_v17  ;;  %v494_v21 = vsel %vm1806_vm6, 0, %v1717_v35  ;;  %v1338_v17 = vld [vmem:[%s1933_s4] ss:$0 sm:$0xff] }
  0x29   : > { %723 = vmatprep.subr.bf16.mxu0 %v1506_v1  ;;  %856 = vmatprep.subr.bf16.mxu1 %v1506_v1  ;;  %s419_s13 = sor.u32 %s418_s7, %s406_s30  ;;  %v475_v32 = vor.u32 %v473_v28, %v472_v8  ;;  %v1455_v28 = vld [vmem:[%s1932_s3 + $0xf0] sm:$0xff]  }
  0x2a   : > { %527 = vrot.lane.b32.xlu0 %v1672_v20, %s1507_s29  ;;  %v420_v46 = vstv %s419_s13  ;;  %v519_v7 = vsel %vm1753_vm2, %v499_v4, 0  ;;  %v495_v22 = vsel %vm1806_vm6, 0, %v468_v18  ;;  %v492_v30 = vsel %vm1806_vm6, 0, %v1722_v38 }
  0x2b   : > { %v422_v48 = vmul.bf16 %v420_v46, %v417_v36  ;;  %v1281_v10 = vcombine.low %v519_v7, %v520_v60  ;;  %v496_v38 = vsel %vm1806_vm6, 0, %v475_v32 }
  0x2c   : > { %724 = vmatpush1.bf16.msra.mxu0 %v1444_v25  ;;  %857 = vmatpush1.bf16.msra.mxu1 %v1445_v27 }
  0x2d   : > { %733 = vmatprep.subr.bf16.mxu0 %v1506_v1  ;;  %866 = vmatprep.subr.bf16.mxu1 %v1506_v1  ;;  %v1747_v55 = vcombine.low %v422_v48, %v422_v48 }
  0x2e   : > { %533 = vrot.lane.b32.xlu0 %v1682_v23, %s1507_s29  ;;  %1296 = vmatprep.mubr.msk.bf16.mxu1 %vm537_vm3, %v1281_v10 }
  0x2f   : > { %535 = vrot.lane.b32.xlu1 %v1747_v55, %s1507_s29  ;;  %v480_v11 = vshll.u32 %v1747_v55, 16  ;;  %v477_v13 = vshrl.u32 %v1747_v55, 16  ;;  %v1463_v55 = vld [vmem:[%s1932_s3 + $0x110] sm:$0xff]  }
  0x30   : > { %734 = vmatpush2.bf16.msra.mxu0 %v1446_v29  ;;  %867 = vmatpush2.bf16.msra.mxu1 %v1447_v37  ;;  %v1454_v37 = vld [vmem:[%s1932_s3 + $0xf8] sm:$0xff]  }
  0x31   : > { %735 = vmatprep.subr.bf16.mxu0 %v1506_v1  ;;  %868 = vmatprep.subr.bf16.mxu1 %v1506_v1  ;;  %v508_v12 = vrot.slane %v480_v11, 1  ;;  %v479_v33 = vrot.slane %v477_v13, 7 }
  0x33   : > { %v509_v14 = vor.u32 %v508_v12, %v477_v13 }
  0x34   : > { %736 = vmatpush2.bf16.msra.mxu0 %v1448_v41  ;;  %869 = vmatpush2.bf16.msra.mxu1 %v1449_v52  ;;  %v482_v41 = vor.u32 %v480_v11, %v479_v33  ;;  %v1460_v52 = vld [vmem:[%s1932_s3 + $0xc8] sm:$0xff]  }
  0x35   : > { %737 = vmatprep.subr.bf16.mxu0 %v1506_v1  ;;  %870 = vmatprep.subr.bf16.mxu1 %v1506_v1  ;;  %v524_v15 = vsel %vm1753_vm2, %v509_v14, 0 }
  0x36   : > { %v1323_v16 = vcombine.low %v1773_v0, %v524_v15  ;;  %v497_v44 = vsel %vm1806_vm6, 0, %v482_v41 }
  0x38   : > { %738 = vmatpush2.bf16.msra.mxu0 %v1450_v56  ;;  %871 = vmatpush2.bf16.msra.mxu1 %v1451_v63  ;;  %v1464_v56 = vld [vmem:[%s1932_s3 + $0x108] sm:$0xff]  }
  0x39   : > { %739 = vmatprep.subr.bf16.mxu0 %v1506_v1  ;;  %872 = vmatprep.subr.bf16.mxu1 %v1506_v1 }
  0x3c   : > { %740 = vmatpush2.bf16.msra.mxu0 %v1452_v6  ;;  %873 = vmatpush2.bf16.msra.mxu1 %v1453_v9 }
  0x3d   : > { %998 = vmatprep.subr.bf16.mxu0 %v1506_v1  ;;  %1360 = vmatprep.subr.bf16.mxu1 %v1506_v1 }
  0x88   : > { %v530_v20 = vpop.permute.xlu1 %529 }
  0x89   : > { %v546_v24 = vsel %vm537_vm3, %v494_v21, %v530_v20 }
  0x8c   : > { %v532_v25 = vpop.permute.xlu1 %531 }
  0x8d   : > { %v549_v26 = vsel %vm537_vm3, %v495_v22, %v532_v25 }
  0x8e   : > { %v1817_v27 = vcombine.low %v546_v24, %v549_v26 }
  0x98   : > { %v526_v29 = vpop.permute.xlu0 %525 }
  0x99   : > { %v540_v35 = vsel %vm537_vm3, %v492_v30, %v526_v29 }
  0x9c   : > { %v528_v34 = vpop.permute.xlu0 %527 }
  0x9d   : > { %v543_v36 = vsel %vm537_vm3, %v493_v31, %v528_v34 }
  0x9e   : > { %v1262_v39 = vcombine.low %v543_v36, %v546_v24  ;;  %v1280_v40 = vcombine.low %v540_v35, %v543_v36 }
  0xa0   : > { %742 = vmatmul.mubr.bf16.vlgmr.msra.gmra.mxu0 %v1262_v39  ;;  %875 = vmatmul.mubr.bf16.vlgmr.msra.gmra.mxu1 %v1280_v40  ;;  %v534_v23 = vpop.permute.xlu0 %533 }
  0xa1   : > { %999 = vmatpush1.bf16.msra.mxu0 %v1454_v37  ;;  %1372 = vmatpush1.bf16.msra.mxu1 %v1454_v37  ;;  %v1840_v42 = vsel %vm537_vm3, %v496_v38, %v534_v23  ;;  %v536_v46 = vpop.permute.xlu1 %535 }
  0xa2   : > { %1000 = vmatprep.subr.bf16.mxu0 %v1506_v1  ;;  %1361 = vmatprep.subr.bf16.mxu1 %v1506_v1  ;;  %v1264_v43 = vcombine.low %v549_v26, %v1840_v42  ;;  %v555_v47 = vsel %vm537_vm3, %v497_v44, %v536_v46 }
  0xa3   : > { %1279 = vmatprep.mubr.msk.bf16.mxu0 %vm537_vm3, %v1265_v5  ;;  %1297 = vmatprep.mubr.msk.bf16.mxu1 %vm537_vm3, %v1776_v3  ;;  %v1322_v48 = vcombine.low %v1840_v42, %v555_v47 }
  0xa5   : > { %1001 = vmatpush1.bf16.msra.mxu0 %v1455_v28  ;;  %1373 = vmatpush1.bf16.msra.mxu1 %v1455_v28 }
  0xa6   : > { %1002 = vmatprep.subr.bf16.mxu0 %v1506_v1  ;;  %1362 = vmatprep.subr.bf16.mxu1 %v1506_v1 }
  0xa8   : > { %750 = vmatmul.mubr.bf16.gmra.mxu0 %v1264_v43  ;;  %883 = vmatmul.mubr.bf16.gmra.mxu1 %v1817_v27 }
  0xa9   : > { %1003 = vmatpush1.bf16.msra.mxu0 %v1456_v45  ;;  %1374 = vmatpush1.bf16.msra.mxu1 %v1456_v45 }
  0xaa   : > { %1004 = vmatprep.subr.bf16.mxu0 %v1506_v1  ;;  %1363 = vmatprep.subr.bf16.mxu1 %v1506_v1 }
  0xab   : > { %1336 = vmatprep.mubr.msk.bf16.mxu0 %vm537_vm3, %v1776_v3  ;;  %1337 = vmatprep.mubr.msk.bf16.mxu1 %vm537_vm3, %v1323_v16 }
  0xad   : > { %1005 = vmatpush1.bf16.msra.mxu0 %v1457_v49  ;;  %1375 = vmatpush1.bf16.msra.mxu1 %v1457_v49 }
  0xae   : > { %1006 = vmatprep.subr.bf16.mxu0 %v1506_v1  ;;  %1364 = vmatprep.subr.bf16.mxu1 %v1506_v1 }
  0xb1   : > { %1007 = vmatpush1.bf16.msra.mxu0 %v1458_v50  ;;  %1376 = vmatpush1.bf16.msra.mxu1 %v1458_v50 }
  0xb2   : > { %1008 = vmatprep.subr.bf16.mxu0 %v1506_v1  ;;  %1365 = vmatprep.subr.bf16.mxu1 %v1506_v1 }
  0xb5   : > { %1009 = vmatpush1.bf16.msra.mxu0 %v1459_v51  ;;  %1377 = vmatpush1.bf16.msra.mxu1 %v1459_v51 }
  0xb6   : > { %1010 = vmatprep.subr.bf16.mxu0 %v1506_v1  ;;  %1366 = vmatprep.subr.bf16.mxu1 %v1506_v1 }
  0xb9   : > { %1011 = vmatpush1.bf16.msra.mxu0 %v1460_v52  ;;  %1378 = vmatpush1.bf16.msra.mxu1 %v1460_v52 }
  0xba   : > { %1012 = vmatprep.subr.bf16.mxu0 %v1506_v1  ;;  %1367 = vmatprep.subr.bf16.mxu1 %v1506_v1 }
  0xbd   : > { %1013 = vmatpush1.bf16.msra.mxu0 %v1461_v53  ;;  %1379 = vmatpush1.bf16.msra.mxu1 %v1461_v53 }
  0xbe   : > { %1022 = vmatprep.subr.bf16.mxu0 %v1506_v1  ;;  %1368 = vmatprep.subr.bf16.mxu1 %v1506_v1 }
  0xc1   : > { %1023 = vmatpush2.bf16.msra.mxu0 %v1462_v54  ;;  %1380 = vmatpush2.bf16.msra.mxu1 %v1462_v54 }
  0xc2   : > { %1024 = vmatprep.subr.bf16.mxu0 %v1506_v1  ;;  %1369 = vmatprep.subr.bf16.mxu1 %v1506_v1 }
  0xc5   : > { %1025 = vmatpush2.bf16.msra.mxu0 %v1463_v55  ;;  %1381 = vmatpush2.bf16.msra.mxu1 %v1463_v55 }
  0xc6   : > { %1026 = vmatprep.subr.bf16.mxu0 %v1506_v1  ;;  %1370 = vmatprep.subr.bf16.mxu1 %v1506_v1 }
  0xc9   : > { %1027 = vmatpush2.bf16.msra.mxu0 %v1464_v56  ;;  %1382 = vmatpush2.bf16.msra.mxu1 %v1464_v56 }
  0xca   : > { %1028 = vmatprep.subr.bf16.mxu0 %v1506_v1  ;;  %1371 = vmatprep.subr.bf16.mxu1 %v1506_v1 }
  0xcd   : > { %1029 = vmatpush2.bf16.msra.mxu0 %v1465_v57  ;;  %1383 = vmatpush2.bf16.msra.mxu1 %v1465_v57 }
  0xd0   : > { %1031 = vmatmul.mubr.bf16.vlgmr.msra.gmra.mxu0 %v1817_v27  ;;  %1039 = vmatmul.mubr.bf16.vlgmr.msra.gmra.mxu1 %v1322_v48 }
 0x160   : > { %v743_v58 = vpop.f32.mrf.mxu0  ;;  %v876_v59 = vpop.f32.mrf.mxu1 }
 0x161   : > { %v877_v11 = vadd.f32 %v876_v59, %v743_v58 }
 0x162   : > { %v745_v60 = vpop.f32.mrf.mxu0  ;;  %v878_v61 = vpop.f32.mrf.mxu1 }
 0x164   : > { %v746_v62 = vpop.f32.mrf.mxu0  ;;  %v879_v63 = vpop.f32.mrf.mxu1 }
 0x165   : > { %v880_v20 = vadd.f32 %v879_v63, %v746_v62 }
 0x166   : > { %v748_v0 = vpop.f32.mrf.mxu0  ;;  %v881_v2 = vpop.f32.mrf.mxu1 }
 0x168   : > { %v751_v3 = vpop.f32.mrf.mxu0  ;;  %v884_v4 = vpop.f32.mrf.mxu1 }
 0x169   : > { %v885_v12 = vadd.f32 %v884_v4, %v751_v3 }
 0x16a   : > { %v753_v5 = vpop.f32.mrf.mxu0  ;;  %v886_v6 = vpop.f32.mrf.mxu1 }
 0x16c   : > { %v754_v7 = vpop.f32.mrf.mxu0  ;;  %v887_v9 = vpop.f32.mrf.mxu1 }
 0x16d   : > { %v888_v21 = vadd.f32 %v887_v9, %v754_v7 }
 0x16e   : > { %v889_v1 = vpop.f32.mrf.mxu1  ;;  %v756_v10 = vpop.f32.mrf.mxu0 }
 0x190   : > { %v1032_v13 = vpop.f32.mrf.mxu0  ;;  %v1040_v14 = vpop.f32.mrf.mxu1 }
 0x191   : > { %v1047_v15 = vadd.f32 %v1032_v13, %v877_v11  ;;  %v1049_v16 = vadd.f32 %v1040_v14, %v885_v12 }
 0x192   : > { %v1034_v18 = vpop.f32.mrf.mxu0  ;;  %v1042_v19 = vpop.f32.mrf.mxu1 }
 0x193   : > { %v1058_v25 = vadd.f32 %v1338_v17, %v1047_v15  ;;  %v1060_v26 = vadd.f32 %v1338_v17, %v1049_v16 }
 0x194   : > { %v1035_v22 = vpop.f32.mrf.mxu0  ;;  %v1043_v24 = vpop.f32.mrf.mxu1 }
 0x195   : > { %v1048_v27 = vadd.f32 %v1035_v22, %v880_v20  ;;  %v1050_v8 = vadd.f32 %v1043_v24, %v888_v21  ;;  %v1062_v33 = vmax.f32 %v1058_v25, 0.0  ;;  %v1064_v34 = vmax.f32 %v1060_v26, 0.0 }
 0x196   : > { %v1037_v29 = vpop.f32.mrf.mxu0  ;;  %v1045_v30 = vpop.f32.mrf.mxu1 }
 0x197   : > { %v1059_v31 = vadd.f32 %v1338_v17, %v1048_v27  ;;  %v1061_v32 = vadd.f32 %v1338_v17, %v1050_v8 }
 0x199   : > { %v1063_v35 = vmax.f32 %v1059_v31, 0.0  ;;  %v1065_v36 = vmax.f32 %v1061_v32, 0.0 }
 0x19b   : > { %v1352_v37 = vpack.c.bf16 %v1063_v35, %v1062_v33  ;;  %v1357_v39 = vpack.c.bf16 %v1065_v36, %v1064_v34 }
 0x19d   : > { %1353 = vst [vmem:[%s380_s14] sm:$0xff] %v1352_v37   ;;  %1359 = vst [vmem:[%s380_s14 + $0x8] sm:$0xff] %v1357_v39  }
 0x19e PF: > { %s15_s22 = sadd.s32 1, %s1504_s22   ;;  %s1940_s18 = smov %s1496_s20 }
 0x19f   : > { %p12_p0 = scmp.ge.s32.totalorder %s15_s22, 6   ;;  %s1941_s19 = smov %s1500_s21 }
 0x1a0   : > { %s1942_s20 = smov %s1945_s23  ;;  %s1943_s21 = smov %s1949_s24 }
 0x1a1   :  { %14 = sbr.rel (!%p12_p0) target bundleno = 3 (0x3), region = 78 }

// kernel: feature_extractor.8
= control target key start
LH: loop header
LB: loop body
LE: loop exit
PB: predicated region body
PF: predicated region fallthrough
CT: control target
= control target key end

     0   :  { %s2575_s18 = smov 0   ;;  %s2577_s19 = smov 0   ;;  %s3105_s0 = inlined_call_operand.vmem [shape: bf16[2,8,8,128], index: 0, kind: input, shape index: {}, may-alias: {0,1,2}]   ;;  %s3106_s1 = inlined_call_operand.vmem [shape: bf16[2,8,8,128], index: 1, kind: input, shape index: {}, may-alias: {0,1,2}]   ;;  %s3107_s2 = inlined_call_operand.vmem [shape: bf16[2,8,8,128], index: 2, kind: input, shape index: {}, may-alias: {0,1,2}]   ;;  %s3108_s3 = inlined_call_operand.vmem [shape: bf16[3,384,128], index: 3, kind: input, shape index: {}]   ;;  %s3109_s4 = inlined_call_operand.vmem [shape: f32[1,128], index: 4, kind: input, shape index: {}]   ;;  %s3110_s5 = inlined_call_operand.vmem [shape: bf16[2,4,4,128], index: 5, kind: output, shape index: {}]  }
   0x1   :  { %s2579_s20 = smov 0   ;;  %s2581_s21 = smov 0  }
   0x2   :  { %s2583_s22 = smov 0  }
   0x3 LB: > { %s24_s23 = sadd.s32 1, %s2534_s20  ;;  %s27_s24 = sadd.s32 1, %s2538_s21  ;;  %s2542_s22 = sphi %s2583_s22, %s15_s22   ;;  %s2538_s21 = sphi %s2581_s21, %s3119_s21   ;;  %s2534_s20 = sphi %s2579_s20, %s3118_s20   ;;  %s2530_s19 = sphi %s2577_s19, %s3117_s19   ;;  %s2526_s18 = sphi %s2575_s18, %s3116_s18  }
   0x4   : > { %p25_p0 = scmp.ge.s32.totalorder %s24_s23, 2  ;;  %p1986_p1 = scmp.ge.s32.totalorder %s2542_s22, 1 }
   0x5   : > { %p270_p2 = scmp.lt.s32.totalorder %s2542_s22, 5 }
   0x6   : > { %s3121_s23 = smov (%p25_p0, %s24_s23), 0  ;;  %s3123_s24 = smov (!%p25_p0, %s27_s24), %s2538_s21 }
   0x7   : > { %p271_p3 = pnand %p1986_p1, %p270_p2  ;;  %p29_p4 = scmp.ge.s32.totalorder %s3123_s24, 2 }
   0x8   : > { %s2619_s6 = sshll.u32 (!%p271_p3), %s2526_s18, 2  ;;  %p334_p5 = scmp.lt.s32.totalorder (!%p271_p3), %s2530_s19, 1 }
   0x9   : > { %s3125_s24 = smov (%p29_p4, %s3123_s24), 0  ;;  %274 = sbr.rel (%p271_p3) target bundleno = 381 (0x17d), region = 40 }
   0xa   : > { %p349_p6 = scmp.lt.s32.totalorder (!%p271_p3), %s2619_s6, 7  ;;  %s2209_s26 = sadd.s32 (!%p271_p3), 4, %s2619_s6 }
   0xb   : > { %p2652_p7 = scmp.lt.s32.totalorder (!%p271_p3), %s2209_s26, 7  ;;  %s2668_s14 = sadd.s32 (!%p271_p3), 4294967295, %s2619_s6 }
   0xc   : > { %p332_p8 = scmp.gt.s32.totalorder (!%p271_p3), %s2668_s14, 0  ;;  %p395_p9 = scmp.lt.s32.totalorder (!%p271_p3), %s2526_s18, 1 }
   0xd   : > { %p1989_p10 = scmp.lt.s32.totalorder (!%p271_p3), %s2668_s14, 7  ;;  %p383_p11 = scmp.gt.s32.totalorder (!%p271_p3), %s2526_s18, 0 }
   0xe   : > { %v2425_v0 = vld [vmem:[%s3108_s3 + $0x138] sm:$0xff]   ;;  %v2428_v3 = vld [vmem:[%s3108_s3 + $0x130] sm:$0xff]   ;;  %v2431_v6 = vld [vmem:[%s3108_s3 + $0x128] sm:$0xff]   ;;  %s3127_s19 = smov (!%p334_p5, %s2530_s19), 1  ;;  %s3129_s26 = smov (!%p2652_p7, %s2209_s26), 7  ;;  %vm489_vm0 = vcmask 1040384  }
   0xf   : > { %v2426_v1 = vld [vmem:[%s3108_s3 + $0xf8] sm:$0xff]   ;;  %2210 = vmatprep.subr.bf16.mxu0 %v2425_v0  ;;  %v2429_v4 = vld [vmem:[%s3108_s3 + $0xf0] sm:$0xff]   ;;  %v2432_v7 = vld [vmem:[%s3108_s3 + $0xe8] sm:$0xff]   ;;  %s350_s29 = scalar_select %p349_p6, %s2619_s6, 7  ;;  %vm490_vm1 = vsmask.f32 256 }
  0x10   : > { %v2427_v2 = vld [vmem:[%s3108_s3 + $0x178] sm:$0xff]   ;;  %2211 = vmatpush3.bf16.msra.mxu0 %v2426_v1  ;;  %v2430_v5 = vld [vmem:[%s3108_s3 + $0x170] sm:$0xff]   ;;  %v2433_v8 = vld [vmem:[%s3108_s3 + $0x168] sm:$0xff]   ;;  %s2660_s11 = sshll.u32 %s3127_s19, 3  ;;  %s3131_s26 = smov (!%p2652_p7, %s3129_s26), 7  ;;  %vm516_vm3 = vcmask 1043456  }
  0x11   : > { %2324 = vmatprep.subr.bf16.mxu1 %v2427_v2  ;;  %2212 = vmatprep.subr.bf16.mxu0 %v2428_v3  ;;  %v2434_v9 = vld [vmem:[%s3108_s3 + $0x120] sm:$0xff]   ;;  %v2437_v12 = vld [vmem:[%s3108_s3 + $0x118] sm:$0xff]   ;;  %s352_s27 = sadd.s32 %s2660_s11, %s350_s29  ;;  %v2440_v15 = vld [vmem:[%s3108_s3 + $0x110] sm:$0xff]   ;;  %s2684_s30 = sadd.s32 %s2660_s11, %s3131_s26  ;;  %vm517_vm4 = vsmask.f32 3328  ;;  %vm1558_vm6 = vcmask 1041408  }
  0x12   : > { %2325 = vmatpush3.bf16.msra.mxu1 %v2427_v2  ;;  %v2435_v10 = vld [vmem:[%s3108_s3 + $0xe0] sm:$0xff]   ;;  %v2439_v13 = vld [vmem:[%s3108_s3 + $0x158] sm:$0xff]   ;;  %v2442_v16 = vld [vmem:[%s3108_s3 + $0x150] sm:$0xff]   ;;  %s1998_s9 = sshll.u32 %s352_s27, 2  ;;  %s2004_s7 = sshll.u32 %s2684_s30, 2  ;;  %vm1816_vm7 = vcmask 1041409  }
  0x13   : > { %2326 = vmatprep.subr.bf16.mxu1 %v2430_v5  ;;  %v2436_v11 = vld [vmem:[%s3108_s3 + $0x160] sm:$0xff]   ;;  %v2438_v14 = vld [vmem:[%s3108_s3 + $0xd8] sm:$0xff]   ;;  %v2441_v17 = vld [vmem:[%s3108_s3 + $0xd0] sm:$0xff]   ;;  %s333_s13 = scalar_select %p332_p8, %s2668_s14, 0  ;;  %vm1819_vm8 = vcmask 1042434   ;;  %vm1822_vm9 = vcmask 1043459  }
  0x14   : > { %2213 = vmatpush3.bf16.msra.mxu0 %v2429_v4  ;;  %v2443_v18 = vld [vmem:[%s3108_s3 + $0x108] sm:$0xff]   ;;  %s354_s27 = scalar_lea.vmem %s3106_s1, %s1998_s9  ;;  %v2446_v21 = vld [vmem:[%s3108_s3 + $0x100] sm:$0xff]   ;;  %v2452_v36 = vld [vmem:[%s3108_s3 + $0x78] sm:$0xff]   ;;  %s367_s8 = scalar_lea.vmem %s3107_s2, %s2004_s7 }
  0x15   : > { %2214 = vmatprep.subr.bf16.mxu0 %v2431_v6  ;;  %v2444_v19 = vld [vmem:[%s3108_s3 + $0xc8] sm:$0xff]   ;;  %s2714_s10 = scalar_select %p395_p9, 1.0, 0.0  ;;  %v2716_v22 = vld [vmem:[%s354_s27] sm:$0xf]  ;;  %vm2766_vm2 = vmand %vm489_vm0, %vm490_vm1 }
  0x16   : > { %2327 = vmatpush3.bf16.msra.mxu1 %v2430_v5  ;;  %v2445_v20 = vld [vmem:[%s3108_s3 + $0x148] sm:$0xff]   ;;  %v2718_v23 = vld [vmem:[%s354_s27 + $0x4] sm:$0xf]  ;;  %v2009_v27 = vcombine.low %v2716_v22, %v2716_v22  ;;  %s3133_s13 = smov (!%p1989_p10, %s333_s13), 7  ;;  %vm2775_vm5 = vmand %vm516_vm3, %vm517_vm4 }
  0x17   : > { %2328 = vmatprep.subr.bf16.mxu1 %v2433_v8  ;;  %v2448_v24 = vld [vmem:[%s3108_s3 + $0x140] sm:$0xff]   ;;  %v2723_v25 = vld [vmem:[%s354_s27 + $0x8] sm:$0xf]  ;;  %v2725_v26 = vld [vmem:[%s354_s27 + $0xc] sm:$0xf]  ;;  %v2010_v28 = vcombine.low %v2718_v23, %v2718_v23  ;;  %v2063_v29 = vcombine.low %v2716_v22, %v2718_v23  ;;  %s399_s26 = sshrl.u32 %s2714_s10, 16  ;;  %p398_p12 = scmp.ne.f32.partialorder %s2714_s10, %s2714_s10 }
  0x18   : > { %2215 = vmatpush3.bf16.msra.mxu0 %v2432_v7  ;;  %v2740_v30 = vcombine.low %v2723_v25, %v2723_v25  ;;  %v2447_v31 = vld [vmem:[%s3108_s3 + $0xc0] sm:$0xff]   ;;  %s400_s14 = sand.u32 1, %s399_s26  ;;  %v449_v32 = vshrl.u32 %v2009_v27, 16  ;;  %v452_v33 = vshll.u32 %v2009_v27, 16  ;;  %v2754_v39 = vcombine.low %v2725_v26, %v2725_v26  ;;  %s339_s12 = sadd.s32 %s3133_s13, %s2660_s11  ;;  %v2454_v51 = vld [vmem:[%s3108_s3 + $0x38] sm:$0xff]   ;;  %v2457_v1 = vld [vmem:[%s3108_s3 + $0x70] sm:$0xff]  }
  0x19   : > { %2216 = vmatprep.subr.bf16.mxu0 %v2434_v9  ;;  %v456_v34 = vshrl.u32 %v2010_v28, 16  ;;  %v459_v35 = vshll.u32 %v2010_v28, 16  ;;  %830 = vmatprep.mubr.bf16.mxu0 %v2063_v29  ;;  %s401_s17 = sadd.s32 32767, %s400_s14  ;;  %v417_v52 = vld [vmem:[%s367_s8] sm:$0xf]  ;;  %v2066_v56 = vcombine.low %v2723_v25, %v2725_v26  ;;  %v2456_v61 = vld [vmem:[%s3108_s3 + $0xb8] sm:$0xff]  }
  0x1a   : > { %2329 = vmatpush3.bf16.msra.mxu1 %v2433_v8  ;;  %v463_v37 = vshrl.u32 %v2740_v30, 16  ;;  %v466_v38 = vshll.u32 %v2740_v30, 16  ;;  %s402_s29 = sadd.s32 %s401_s17, %s2714_s10  ;;  %v451_v40 = vrot.slane %v449_v32, 7  ;;  %v500_v42 = vrot.slane %v452_v33, 1  ;;  %s2809_s16 = sshll.u32 %s339_s12, 2  ;;  %v2458_v5 = vld [vmem:[%s3108_s3 + $0x30] sm:$0xff]  }
  0x1b   : > { %2330 = vmatprep.subr.bf16.mxu1 %v2436_v11  ;;  %v458_v41 = vrot.slane %v456_v34, 7  ;;  %v502_v43 = vrot.slane %v459_v35, 1  ;;  %s403_s9 = sand.u32 4294901760, %s402_s29  ;;  %v470_v54 = vshrl.u32 %v2754_v39, 16  ;;  %v473_v55 = vshll.u32 %v2754_v39, 16  ;;  %v2459_v7 = vld [vmem:[%s3108_s3 + $0xb0] sm:$0xff]  }
  0x1c   : > { %2217 = vmatpush3.bf16.msra.mxu0 %v2435_v10  ;;  %v504_v45 = vrot.slane %v466_v38, 1  ;;  %s3135_s9 = smov (%p398_p12, %s403_s9), 2143289344  ;;  %v454_v46 = vor.u32 %v452_v33, %v451_v40  ;;  %v501_v48 = vor.u32 %v500_v42, %v449_v32  ;;  %v465_v8 = vrot.slane %v463_v37, 7  ;;  %v2463_v27 = vld [vmem:[%s3108_s3 + $0xa8] sm:$0xff]   ;;  %v2464_v28 = vld [vmem:[%s3108_s3 + $0x60] sm:$0xff]   ;;  %v2467_v39 = vld [vmem:[%s3108_s3 + $0x58] sm:$0xff]  }
  0x1d   : > { %2218 = vmatprep.subr.bf16.mxu0 %v2437_v12  ;;  %v461_v47 = vor.u32 %v459_v35, %v458_v41  ;;  %v503_v49 = vor.u32 %v502_v43, %v456_v34  ;;  %s2784_s13 = scalar_select %p383_p11, 1.0, 0.0  ;;  %v506_v0 = vrot.slane %v473_v55, 1  ;;  %v472_v10 = vrot.slane %v470_v54, 7  ;;  %v2465_v34 = vld [vmem:[%s3108_s3 + $0x20] sm:$0xff]   ;;  %v2468_v42 = vld [vmem:[%s3108_s3 + $0x18] sm:$0xff]  }
  0x1e   : > { %2331 = vmatpush3.bf16.msra.mxu1 %v2436_v11  ;;  %v505_v53 = vor.u32 %v504_v45, %v463_v37  ;;  %s406_s7 = sshrl.u32 %s3135_s9, 16  ;;  %v2792_v57 = vsel %vm2766_vm2, 0, %v454_v46  ;;  %v2800_v59 = vsel %vm2775_vm5, %v501_v48, 0  ;;  %v2469_v46 = vld [vmem:[%s3108_s3 + $0x98] sm:$0xff]   ;;  %v2476_v50 = vld [vmem:[%s3108_s3 + $0x40] sm:$0xff]  }
  0x1f   : > { %2332 = vmatprep.subr.bf16.mxu1 %v2439_v13  ;;  %v2796_v58 = vsel %vm2766_vm2, 0, %v461_v47  ;;  %v2804_v60 = vsel %vm2775_vm5, %v503_v49, 0  ;;  %s418_s15 = sshll.u32 %s406_s7, 16  ;;  %s387_s27 = sshrl.u32 %s2784_s13, 16  ;;  %v507_v4 = vor.u32 %v506_v0, %v470_v54  ;;  %v2481_v44 = vld [vmem:[%s3108_s3 + $0x238] sm:$0xff]  }
  0x20   : > { %2219 = vmatpush3.bf16.msra.mxu0 %v2438_v14  ;;  %v2062_v62 = vcombine.low %v2792_v57, %v2796_v58  ;;  %v2064_v63 = vcombine.low %v2800_v59, %v2804_v60  ;;  %s419_s25 = sor.u32 %s418_s15, %s406_s7  ;;  %v2821_v2 = vsel %vm2775_vm5, %v505_v53, 0  ;;  %p386_p13 = scmp.ne.f32.partialorder %s2784_s13, %s2784_s13  ;;  %v2461_v14 = vld [vmem:[%s3108_s3 + $0x68] sm:$0xff]  }
  0x21   : > { %2220 = vmatprep.subr.bf16.mxu0 %v2440_v15  ;;  %v420_v3 = vstv %s419_s25  ;;  %s388_s28 = sand.u32 1, %s387_s27  ;;  %s341_s7 = scalar_lea.vmem %s3105_s0, %s2809_s16  ;;  %v523_v9 = vsel %vm2775_vm5, %v507_v4, 0  ;;  %v2478_v4 = vld [vmem:[%s3108_s3 + $0x80] sm:$0xff]  }
  0x22   : > { %2333 = vmatpush3.bf16.msra.mxu1 %v2439_v13  ;;  %2340 = vmatprep.mubr.bf16.mxu1 %v2064_v63  ;;  %v2828_v6 = vmul.bf16 %v420_v3, %v417_v52  ;;  %s389_s29 = sadd.s32 32767, %s388_s28  ;;  %v2067_v12 = vcombine.low %v2821_v2, %v523_v9  ;;  %v468_v13 = vor.u32 %v466_v38, %v465_v8  ;;  %v2471_v52 = vld [vmem:[%s3108_s3 + $0x10] sm:$0xff]   ;;  %v2477_v3 = vld [vmem:[%s3108_s3] sm:$0xff]   ;;  %v2480_v8 = vld [vmem:[%s3108_s3 + $0x1b8] sm:$0xff]  }
  0x23   : > { %2334 = vmatprep.subr.bf16.mxu1 %v2442_v16  ;;  %s390_s10 = sadd.s32 %s389_s29, %s2784_s13 }
  0x24   : > { %2221 = vmatpush3.bf16.msra.mxu0 %v2441_v17  ;;  %s391_s26 = sand.u32 4294901760, %s390_s10  ;;  %v2013_v11 = vcombine.low %v2828_v6, %v2828_v6  ;;  %v2171_v15 = vcombine.low %v2725_v26, %v2828_v6  ;;  %v407_v17 = vld [vmem:[%s341_s7] sm:$0xf] }
  0x25   : > { %2222 = vmatprep.subr.bf16.mxu0 %v2443_v18  ;;  %s3137_s26 = smov (%p386_p13, %s391_s26), 2143289344 }
  0x26   : > { %2335 = vmatpush3.bf16.msra.mxu1 %v2442_v16  ;;  %v475_v16 = vor.u32 %v473_v55, %v472_v10  ;;  %v477_v18 = vshrl.u32 %v2013_v11, 16  ;;  %s394_s25 = sshrl.u32 %s3137_s26, 16  ;;  %v2472_v55 = vld [vmem:[%s3108_s3 + $0x90] sm:$0xff]   ;;  %v2096_v10 = vcombine.low %v2718_v23, %v2723_v25  ;;  %v2486_v23 = vld [vmem:[%s3108_s3 + $0x1e8] sm:$0xff]   ;;  %s2005_s26 = sshll.u32 %s2526_s18, 1 }
  0x27   : > { %2336 = vmatprep.subr.bf16.mxu1 %v2445_v20  ;;  %s408_s8 = sshll.u32 %s394_s25, 16  ;;  %p375_p0 = scmp.lt.s32.totalorder %s2005_s26, 3 }
  0x28   : > { %2223 = vmatpush3.bf16.msra.mxu0 %v2444_v19  ;;  %v480_v19 = vshll.u32 %v2013_v11, 16  ;;  %s409_s29 = sor.u32 %s408_s8, %s394_s25  ;;  %v2483_v11 = vld [vmem:[%s3108_s3 + $0x1b0] sm:$0xff]   ;;  %s2006_s18 = sshll.u32 %s3127_s19, 2 }
  0x29   : > { %2224 = vmatprep.subr.bf16.mxu0 %v2446_v21  ;;  %v2462_v21 = vld [vmem:[%s3108_s3 + $0x28] sm:$0xff]   ;;  %v410_v32 = vstv %s409_s29  ;;  %s3139_s26 = smov (!%p375_p0, %s2005_s26), 3 }
  0x2a   : > { %2337 = vmatpush3.bf16.msra.mxu1 %v2445_v20  ;;  %v2855_v20 = vsel %vm2766_vm2, 0, %v468_v13  ;;  %v508_v29 = vrot.slane %v480_v19, 1  ;;  %v412_v35 = vmul.bf16 %v410_v32, %v407_v17  ;;  %v2489_v13 = vld [vmem:[%s3108_s3 + $0x1e0] sm:$0xff]   ;;  %v2493_v17 = vld [vmem:[%s3108_s3 + $0x198] sm:$0xff]   ;;  %s378_s15 = sadd.s32 %s2006_s18, %s3139_s26 }
  0x2b   : > { %2338 = vmatprep.subr.bf16.mxu1 %v2448_v24  ;;  %v2095_v25 = vcombine.low %v2796_v58, %v2855_v20  ;;  %v2490_v58 = vld [vmem:[%s3108_s3 + $0x1a0] sm:$0xff]   ;;  %s2007_s19 = sshll.u32 %s378_s15, 1 }
  0x2c   : > { %2225 = vmatpush3.bf16.msra.mxu0 %v2447_v31  ;;  %v479_v31 = vrot.slane %v477_v18, 7  ;;  %v509_v33 = vor.u32 %v508_v29, %v477_v18  ;;  %v2008_v40 = vcombine.low %v412_v35, %v412_v35  ;;  %v2093_v43 = vcombine.low %v412_v35, %v2716_v22  ;;  %v2494_v18 = vld [vmem:[%s3108_s3 + $0x218] sm:$0xff]   ;;  %v2501_v29 = vld [vmem:[%s3108_s3 + $0x1c0] sm:$0xff]   ;;  %s3071_s17 = scalar_lea.vmem %s3110_s5, %s2007_s19 }
  0x2d   : > { %2248 = vmatprep.subr.bf16.mxu0 %v2452_v36  ;;  %v2466_v36 = vld [vmem:[%s3108_s3 + $0xa0] sm:$0xff]  }
  0x2e   : > { %2339 = vmatpush3.bf16.msra.mxu1 %v2448_v24  ;;  %v496_v24 = vsel %vm2766_vm2, 0, %v475_v16  ;;  %v482_v37 = vor.u32 %v480_v19, %v479_v31  ;;  %v524_v38 = vsel %vm2775_vm5, %v509_v33, 0  ;;  %v442_v48 = vshrl.u32 %v2008_v40, 16  ;;  %v2492_v16 = vld [vmem:[%s3108_s3 + $0x1d8] sm:$0xff]   ;;  %v2495_v19 = vld [vmem:[%s3108_s3 + $0x1d0] sm:$0xff]   ;;  %v2503_v31 = vld [vmem:[%s3108_s3 + $0x200] sm:$0xff]  }
  0x2f   : > { %2344 = vmatprep.subr.bf16.mxu1 %v2456_v61  ;;  %831 = vmatmul.mubr.bf16.vlgmr.msra.gmra.mxu0 %v2062_v62  ;;  %v2065_v30 = vcombine.low %v2855_v20, %v496_v24  ;;  %v2880_v41 = vcombine.low %v523_v9, %v524_v38  ;;  %v445_v49 = vshll.u32 %v2008_v40, 16  ;;  %v2474_v62 = vld [vmem:[%s3108_s3 + $0x8] sm:$0xff]   ;;  %v2482_v9 = vld [vmem:[%s3108_s3 + $0x1f0] sm:$0xff]  }
  0x30   : > { %2249 = vmatpush3.bf16.msra.mxu0 %v2454_v51  ;;  %838 = vmatprep.mubr.bf16.mxu0 %v2066_v56  ;;  %v497_v45 = vsel %vm2766_vm2, 0, %v482_v37  ;;  %v2470_v51 = vld [vmem:[%s3108_s3 + $0x50] sm:$0xff]   ;;  %v444_v53 = vrot.slane %v442_v48, 7  ;;  %v2473_v56 = vld [vmem:[%s3108_s3 + $0x48] sm:$0xff]  }
  0x31   : > { %2250 = vmatprep.subr.bf16.mxu0 %v2457_v1  ;;  %2341 = vmatmul.mubr.bf16.vlgmr.msra.gmra.mxu1 %v2067_v12  ;;  %v2891_v47 = vcombine.low %v496_v24, %v497_v45  ;;  %v498_v22 = vrot.slane %v445_v49, 1  ;;  %v2475_v1 = vld [vmem:[%s3108_s3 + $0x88] sm:$0xff]   ;;  %v2484_v12 = vld [vmem:[%s3108_s3 + $0x230] sm:$0xff]  }
  0x32   : > { %2345 = vmatpush3.bf16.msra.mxu1 %v2456_v61  ;;  %v447_v0 = vor.u32 %v445_v49, %v444_v53  ;;  %v2496_v20 = vld [vmem:[%s3108_s3 + $0x190] sm:$0xff]   ;;  %v2498_v24 = vld [vmem:[%s3108_s3 + $0x1c8] sm:$0xff]  }
  0x33   : > { %2346 = vmatprep.subr.bf16.mxu1 %v2459_v7  ;;  %v499_v54 = vor.u32 %v498_v22, %v442_v48 }
  0x34   : > { %2251 = vmatpush3.bf16.msra.mxu0 %v2458_v5  ;;  %v2479_v5 = vld [vmem:[%s3108_s3 + $0x1f8] sm:$0xff]  }
  0x35   : > { %2252 = vmatprep.subr.bf16.mxu0 %v2461_v14  ;;  %v519_v61 = vsel %vm2775_vm5, %v499_v54, 0  ;;  %v2491_v14 = vld [vmem:[%s3108_s3 + $0x220] sm:$0xff]  }
  0x36   : > { %2347 = vmatpush3.bf16.msra.mxu1 %v2459_v7  ;;  %v2094_v63 = vcombine.low %v519_v61, %v2800_v59  ;;  %v492_v59 = vsel %vm2766_vm2, 0, %v447_v0  ;;  %v2544_v0 = vmov 1983009808  }
  0x37   : > { %839 = vmatmul.mubr.bf16.gmra.mxu0 %v2065_v30  ;;  %2348 = vmatprep.subr.bf16.mxu1 %v2463_v27  ;;  %v2092_v7 = vcombine.low %v492_v59, %v2792_v57  ;;  %v2097_v57 = vcombine.low %v2804_v60, %v2821_v2  ;;  %v2487_v60 = vld [vmem:[%s3108_s3 + $0x1a8] sm:$0xff]   ;;  %v2502_v30 = vld [vmem:[%s3108_s3 + $0x180] sm:$0xff]  }
  0x38   : > { %2253 = vmatpush3.bf16.msra.mxu0 %v2462_v21  ;;  %1084 = vmatprep.mubr.bf16.mxu0 %v2093_v43  ;;  %v2488_v2 = vld [vmem:[%s3108_s3 + $0x228] sm:$0xff]   ;;  %v2497_v21 = vld [vmem:[%s3108_s3 + $0x210] sm:$0xff]  }
  0x39   : > { %2254 = vmatprep.subr.bf16.mxu0 %v2464_v28  ;;  %2360 = vmatprep.mubr.bf16.mxu1 %v2094_v63  ;;  %v2500_v28 = vld [vmem:[%s3108_s3 + $0x208] sm:$0xff]  }
  0x3a   : > { %2349 = vmatpush3.bf16.msra.mxu1 %v2463_v27  ;;  %v2499_v27 = vld [vmem:[%s3108_s3 + $0x188] sm:$0xff]  }
  0x3b   : > { %2350 = vmatprep.subr.bf16.mxu1 %v2466_v36 }
  0x3c   : > { %2255 = vmatpush3.bf16.msra.mxu0 %v2465_v34 }
  0x3d   : > { %2256 = vmatprep.subr.bf16.mxu0 %v2467_v39 }
  0x3e   : > { %2351 = vmatpush3.bf16.msra.mxu1 %v2466_v36 }
  0x3f   : > { %2352 = vmatprep.subr.bf16.mxu1 %v2469_v46 }
  0x40   : > { %2257 = vmatpush3.bf16.msra.mxu0 %v2468_v42 }
  0x41   : > { %2258 = vmatprep.subr.bf16.mxu0 %v2470_v51 }
  0x42   : > { %2353 = vmatpush3.bf16.msra.mxu1 %v2469_v46 }
  0x43   : > { %2354 = vmatprep.subr.bf16.mxu1 %v2472_v55 }
  0x44   : > { %2259 = vmatpush3.bf16.msra.mxu0 %v2471_v52 }
  0x45   : > { %2260 = vmatprep.subr.bf16.mxu0 %v2473_v56 }
  0x46   : > { %2355 = vmatpush3.bf16.msra.mxu1 %v2472_v55 }
  0x47   : > { %2356 = vmatprep.subr.bf16.mxu1 %v2475_v1 }
  0x48   : > { %2261 = vmatpush3.bf16.msra.mxu0 %v2474_v62 }
  0x49   : > { %2262 = vmatprep.subr.bf16.mxu0 %v2476_v50  ;;  %v1478_v50 = vlaneseq }
  0x4a   : > { %2357 = vmatpush3.bf16.msra.mxu1 %v2475_v1  ;;  %v1476_v1 = vunpack.c.l.s4 %v2544_v0 }
  0x4b   : > { %2358 = vmatprep.subr.bf16.mxu1 %v2478_v4 }
  0x4c   : > { %2263 = vmatpush3.bf16.msra.mxu0 %v2477_v3 }
  0x4d   : > { %2286 = vmatprep.subr.bf16.mxu0 %v2479_v5 }
  0x4e   : > { %2359 = vmatpush3.bf16.msra.mxu1 %v2478_v4 }
  0x4f   : > { %1085 = vmatmul.mubr.bf16.vlgmr.msra.gmra.mxu0 %v2092_v7  ;;  %2364 = vmatprep.subr.bf16.mxu1 %v2481_v44 }
  0x50   : > { %2287 = vmatpush3.bf16.msra.mxu0 %v2480_v8  ;;  %1092 = vmatprep.mubr.bf16.mxu0 %v2096_v10 }
  0x51   : > { %2288 = vmatprep.subr.bf16.mxu0 %v2482_v9  ;;  %2361 = vmatmul.mubr.bf16.vlgmr.msra.gmra.mxu1 %v2097_v57 }
  0x52   : > { %2365 = vmatpush3.bf16.msra.mxu1 %v2481_v44  ;;  %2380 = vmatprep.mubr.bf16.mxu1 %v2097_v57  ;;  %v1477_v57 = vunpack.c.0.s8 %v1476_v1 }
  0x53   : > { %2366 = vmatprep.subr.bf16.mxu1 %v2484_v12 }
  0x54   : > { %2289 = vmatpush3.bf16.msra.mxu0 %v2483_v11  ;;  %v1479_v11 = vshrl.u32 %v1478_v50, 7 }
  0x55   : > { %2290 = vmatprep.subr.bf16.mxu0 %v2486_v23 }
  0x56   : > { %2367 = vmatpush3.bf16.msra.mxu1 %v2484_v12 }
  0x57   : > { %1093 = vmatmul.mubr.bf16.gmra.mxu0 %v2095_v25  ;;  %2368 = vmatprep.subr.bf16.mxu1 %v2488_v2 }
  0x58   : > { %2291 = vmatpush3.bf16.msra.mxu0 %v2487_v60  ;;  %1385 = vmatprep.mubr.bf16.mxu0 %v2096_v10 }
  0x59   : > { %2292 = vmatprep.subr.bf16.mxu0 %v2489_v13 }
  0x5a   : > { %2369 = vmatpush3.bf16.msra.mxu1 %v2488_v2 }
  0x5b   : > { %2370 = vmatprep.subr.bf16.mxu1 %v2491_v14 }
  0x5c   : > { %2293 = vmatpush3.bf16.msra.mxu0 %v2490_v58  ;;  %v3020_v58 = vld [vmem:[%s3109_s4] ss:$0 sm:$0xff] }
  0x5d   : > { %2294 = vmatprep.subr.bf16.mxu0 %v2492_v16 }
  0x5e   : > { %2371 = vmatpush3.bf16.msra.mxu1 %v2491_v14 }
  0x5f   : > { %2372 = vmatprep.subr.bf16.mxu1 %v2494_v18 }
  0x60   : > { %2295 = vmatpush3.bf16.msra.mxu0 %v2493_v17 }
  0x61   : > { %2296 = vmatprep.subr.bf16.mxu0 %v2495_v19  ;;  %v3024_v19 = vsub.s32 %v1477_v57, %v1479_v11 }
  0x62   : > { %2373 = vmatpush3.bf16.msra.mxu1 %v2494_v18 }
  0x63   : > { %2374 = vmatprep.subr.bf16.mxu1 %v2497_v21 }
  0x64   : > { %2297 = vmatpush3.bf16.msra.mxu0 %v2496_v20 }
  0x65   : > { %2298 = vmatprep.subr.bf16.mxu0 %v2498_v24 }
  0x66   : > { %2375 = vmatpush3.bf16.msra.mxu1 %v2497_v21 }
  0x67   : > { %2376 = vmatprep.subr.bf16.mxu1 %v2500_v28 }
  0x68   : > { %2299 = vmatpush3.bf16.msra.mxu0 %v2499_v27 }
  0x69   : > { %2300 = vmatprep.subr.bf16.mxu0 %v2501_v29 }
  0x6a   : > { %2377 = vmatpush3.bf16.msra.mxu1 %v2500_v28 }
  0x6b   : > { %2378 = vmatprep.subr.bf16.mxu1 %v2503_v31 }
  0x6c   : > { %2301 = vmatpush3.bf16.msra.mxu0 %v2502_v30 }
  0x6e   : > { %2379 = vmatpush3.bf16.msra.mxu1 %v2503_v31 }
  0x6f   : > { %1386 = vmatmul.mubr.bf16.vlgmr.msra.gmra.mxu0 %v2095_v25 }
  0x70   : > { %1393 = vmatprep.mubr.bf16.mxu0 %v2171_v15 }
  0x71   : > { %2381 = vmatmul.mubr.bf16.vlgmr.msra.gmra.mxu1 %v2880_v41 }
  0x77   : > { %1394 = vmatmul.mubr.bf16.gmra.mxu0 %v2891_v47 }
  0xef   : > { %v2226_v32 = vpop.f32.mrf.mxu0 }
  0xf1   : > { %v2227_v33 = vpop.f32.mrf.mxu0  ;;  %v2342_v43 = vpop.f32.mrf.mxu1 }
  0xf2   : > { %v2228_v22 = vadd.f32 %v2227_v33, %v2226_v32 }
  0xf3   : > { %v2229_v34 = vpop.f32.mrf.mxu0  ;;  %v881_v26 = vpop.f32.mrf.mxu1 }
  0xf4   : > { %v882_v56 = vadd.f32 %v2228_v22, %v881_v26 }
  0xf5   : > { %v2230_v35 = vpop.f32.mrf.mxu0  ;;  %v3013_v15 = vpop.f32.mrf.mxu1 }
  0xf6   : > { %v2231_v61 = vadd.f32 %v2230_v35, %v2229_v34 }
  0xf7   : > { %v2232_v36 = vpop.f32.mrf.mxu0  ;;  %v884_v46 = vpop.f32.mrf.mxu1 }
  0xf8   : > { %v885_v44 = vadd.f32 %v2231_v61, %v884_v46 }
  0xf9   : > { %v2233_v37 = vpop.f32.mrf.mxu0 }
  0xfa   : > { %v2234_v5 = vadd.f32 %v2233_v37, %v2232_v36 }
  0xfb   : > { %v3009_v38 = vpop.f32.mrf.mxu0 }
  0xfc   : > { %v890_v13 = vadd.f32 %v2342_v43, %v2234_v5 }
  0xfd   : > { %v3011_v39 = vpop.f32.mrf.mxu0 }
  0xfe   : > { %v2237_v37 = vadd.f32 %v3011_v39, %v3009_v38 }
 0x100   : > { %v893_v39 = vadd.f32 %v3013_v15, %v2237_v37 }
 0x10f   : > { %v2264_v40 = vpop.f32.mrf.mxu0 }
 0x111   : > { %v2265_v42 = vpop.f32.mrf.mxu0  ;;  %v2362_v47 = vpop.f32.mrf.mxu1 }
 0x112   : > { %v2266_v54 = vadd.f32 %v2265_v42, %v2264_v40 }
 0x113   : > { %v2267_v45 = vpop.f32.mrf.mxu0  ;;  %v1135_v49 = vpop.f32.mrf.mxu1 }
 0x114   : > { %v1087_v59 = vadd.f32 %v2266_v54, %v882_v56 }
 0x115   : > { %v2268_v6 = vpop.f32.mrf.mxu0  ;;  %v3015_v52 = vpop.f32.mrf.mxu1 }
 0x116   : > { %v2269_v3 = vadd.f32 %v2268_v6, %v2267_v45  ;;  %v1136_v23 = vadd.f32 %v1135_v49, %v1087_v59 }
 0x117   : > { %v2270_v41 = vpop.f32.mrf.mxu0  ;;  %v1138_v62 = vpop.f32.mrf.mxu1 }
 0x118   : > { %v1090_v25 = vadd.f32 %v2269_v3, %v885_v44 }
 0x119   : > { %v2271_v48 = vpop.f32.mrf.mxu0 }
 0x11a   : > { %v2272_v9 = vadd.f32 %v2271_v48, %v2270_v41  ;;  %v1139_v24 = vadd.f32 %v1138_v62, %v1090_v25 }
 0x11b   : > { %v2273_v51 = vpop.f32.mrf.mxu0 }
 0x11c   : > { %v1095_v18 = vadd.f32 %v2272_v9, %v890_v13 }
 0x11d   : > { %v2274_v53 = vpop.f32.mrf.mxu0 }
 0x11e   : > { %v1144_v33 = vadd.f32 %v2362_v47, %v1095_v18  ;;  %v2275_v6 = vadd.f32 %v2274_v53, %v2273_v51 }
 0x120   : > { %v1098_v5 = vadd.f32 %v2275_v6, %v893_v39 }
 0x122   : > { %v1147_v18 = vadd.f32 %v3015_v52, %v1098_v5 }
 0x12f   : > { %v2302_v55 = vpop.f32.mrf.mxu0 }
 0x131   : > { %v2303_v63 = vpop.f32.mrf.mxu0  ;;  %v2382_v7 = vpop.f32.mrf.mxu1 }
 0x132   : > { %v2304_v4 = vadd.f32 %v2303_v63, %v2302_v55 }
 0x133   : > { %v2305_v8 = vpop.f32.mrf.mxu0  ;;  %v1436_v10 = vpop.f32.mrf.mxu1 }
 0x134   : > { %v1437_v60 = vadd.f32 %v2304_v4, %v1436_v10 }
 0x135   : > { %v2306_v12 = vpop.f32.mrf.mxu0  ;;  %v3022_v14 = vpop.f32.mrf.mxu1 }
 0x136   : > { %v2307_v2 = vadd.f32 %v2306_v12, %v2305_v8  ;;  %v1451_v17 = vadd.f32 %v1437_v60, %v1136_v23 }
 0x137   : > { %v2308_v16 = vpop.f32.mrf.mxu0  ;;  %v1439_v20 = vpop.f32.mrf.mxu1 }
 0x138   : > { %v1462_v27 = vadd.f32 %v3020_v58, %v1451_v17  ;;  %v1440_v28 = vadd.f32 %v2307_v2, %v1439_v20 }
 0x139   : > { %v2309_v21 = vpop.f32.mrf.mxu0 }
 0x13a   : > { %v2310_v29 = vadd.f32 %v2309_v21, %v2308_v16  ;;  %v1466_v30 = vmax.f32 %v1462_v27, 0.0  ;;  %v1452_v31 = vadd.f32 %v1440_v28, %v1139_v24 }
 0x13b   : > { %v2311_v4 = vpop.f32.mrf.mxu0 }
 0x13c   : > { %v1445_v32 = vadd.f32 %v2382_v7, %v2310_v29  ;;  %v1474_v34 = vcombine.high %v1466_v30, %v1466_v30  ;;  %v1481_v35 = vrot.slane %v1466_v30, %v3024_v19  ;;  %v1463_v36 = vadd.f32 %v3020_v58, %v1452_v31 }
 0x13d   : > { %v2312_v17 = vpop.f32.mrf.mxu0 }
 0x13e   : > { %v1453_v40 = vadd.f32 %v1445_v32, %v1144_v33  ;;  %v1488_v42 = vrot.slane %v1474_v34, %v3024_v19  ;;  %v1489_v43 = vcombine.high %v1481_v35, %v1481_v35  ;;  %v1559_v45 = vsel %vm1558_vm6, %v1481_v35, -inf }
 0x13f   : > { %v1467_v26 = vmax.f32 %v1463_v36, 0.0  ;;  %v1560_v41 = vrot.slane %v1559_v45, 4  ;;  %v2313_v33 = vadd.f32 %v2312_v17, %v2311_v4 }
 0x140   : > { %v1490_v46 = vcombine.high %v1488_v42, %v1488_v42  ;;  %v1566_v47 = vsel %vm1558_vm6, %v1489_v43, -inf  ;;  %v1573_v48 = vsel %vm1558_vm6, %v1488_v42, -inf  ;;  %v1464_v51 = vadd.f32 %v3020_v58, %v1453_v40 }
 0x141   : > { %v1491_v49 = vcombine.high %v1467_v26, %v1467_v26  ;;  %v1561_v22 = vmax.f32 %v1559_v45, %v1560_v41  ;;  %v1567_v54 = vrot.slane %v1566_v47, 4  ;;  %v1574_v55 = vrot.slane %v1573_v48, 4 }
 0x142   : > { %v1498_v38 = vrot.slane %v1467_v26, %v3024_v19  ;;  %v1580_v56 = vsel %vm1558_vm6, %v1490_v46, -inf  ;;  %v1468_v25 = vmax.f32 %v1464_v51, 0.0 }
 0x143   : > { %v1505_v61 = vrot.slane %v1491_v49, %v3024_v19  ;;  %v1562_v53 = vrot.slane %v1561_v22, 2  ;;  %v1568_v62 = vmax.f32 %v1566_v47, %v1567_v54  ;;  %v1575_v63 = vmax.f32 %v1573_v48, %v1574_v55 }
 0x144   : > { %v1581_v0 = vrot.slane %v1580_v56, 4  ;;  %v1506_v1 = vcombine.high %v1498_v38, %v1498_v38  ;;  %v1587_v3 = vsel %vm1558_vm6, %v1498_v38, -inf  ;;  %v1508_v32 = vcombine.high %v1468_v25, %v1468_v25 }
 0x145   : > { %v1507_v50 = vcombine.high %v1505_v61, %v1505_v61  ;;  %v1601_v59 = vsel %vm1558_vm6, %v1505_v61, -inf  ;;  %v1569_v7 = vrot.slane %v1568_v62, 2  ;;  %v1576_v15 = vrot.slane %v1575_v63, 2 }
 0x146   : > { %v1582_v8 = vmax.f32 %v1580_v56, %v1581_v0  ;;  %v1588_v44 = vrot.slane %v1587_v3, 4  ;;  %v1594_v9 = vsel %vm1558_vm6, %v1506_v1, -inf  ;;  %v1602_v10 = vrot.slane %v1601_v59, 4 }
 0x147   : > { %v1608_v57 = vsel %vm1558_vm6, %v1507_v50, -inf  ;;  %v1563_v11 = vmax.f32 %v1561_v22, %v1562_v53  ;;  %v1577_v12 = vmax.f32 %v1575_v63, %v1576_v15  ;;  %v1595_v2 = vrot.slane %v1594_v9, 4 }
 0x148   : > { %v1583_v23 = vrot.slane %v1582_v8, 2  ;;  %v1589_v60 = vmax.f32 %v1587_v3, %v1588_v44  ;;  %v1603_v13 = vmax.f32 %v1601_v59, %v1602_v10  ;;  %v1609_v16 = vrot.slane %v1608_v57, 4 }
 0x149   : > { %v1570_v20 = vmax.f32 %v1568_v62, %v1569_v7  ;;  %v1596_v27 = vmax.f32 %v1594_v9, %v1595_v2  ;;  %v1564_v30 = vrot.slane %v1563_v11, 1  ;;  %v1578_v31 = vrot.slane %v1577_v12, 1 }
 0x14a   : > { %v1584_v21 = vmax.f32 %v1582_v8, %v1583_v23  ;;  %v1590_v24 = vrot.slane %v1589_v60, 2  ;;  %v1604_v28 = vrot.slane %v1603_v13, 2  ;;  %v1610_v29 = vmax.f32 %v1608_v57, %v1609_v16 }
 0x14b   : > { %v1597_v35 = vrot.slane %v1596_v27, 2  ;;  %v1571_v40 = vrot.slane %v1570_v20, 1  ;;  %v1515_v43 = vrot.slane %v1468_v25, %v3024_v19  ;;  %v1522_v52 = vrot.slane %v1508_v32, %v3024_v19 }
 0x14c   : > { %v1591_v34 = vmax.f32 %v1589_v60, %v1590_v24  ;;  %v1605_v36 = vmax.f32 %v1603_v13, %v1604_v28  ;;  %v1611_v37 = vrot.slane %v1610_v29, 2  ;;  %v1585_v42 = vrot.slane %v1584_v21, 1 }
 0x14d   : > { %v1598_v26 = vmax.f32 %v1596_v27, %v1597_v35  ;;  %v1565_v46 = vmax.f32 %v1563_v11, %v1564_v30  ;;  %v1579_v47 = vmax.f32 %v1577_v12, %v1578_v31  ;;  %v1523_v48 = vcombine.high %v1515_v43, %v1515_v43 }
 0x14e   : > { %v1592_v45 = vrot.slane %v1591_v34, 1  ;;  %v1606_v6 = vrot.slane %v1605_v36, 1  ;;  %v1612_v41 = vmax.f32 %v1610_v29, %v1611_v37  ;;  %v1448_v49 = vadd.f32 %v3022_v14, %v2313_v33 }
 0x14f   : > { %v1599_v54 = vrot.slane %v1598_v26, 1  ;;  %v1572_v39 = vmax.f32 %v1570_v20, %v1571_v40  ;;  %v1586_v56 = vmax.f32 %v1584_v21, %v1585_v42  ;;  %v1524_v61 = vcombine.high %v1522_v52, %v1522_v52 }
 0x150   : > { %v1593_v22 = vmax.f32 %v1591_v34, %v1592_v45  ;;  %v1607_v55 = vmax.f32 %v1605_v36, %v1606_v6  ;;  %v1613_v38 = vrot.slane %v1612_v41, 1  ;;  %v1615_v51 = vsel %vm1558_vm6, %v1515_v43, -inf }
 0x151   : > { %v1600_v53 = vmax.f32 %v1598_v26, %v1599_v54  ;;  %v1622_v1 = vsel %vm1558_vm6, %v1523_v48, -inf  ;;  %v1629_v50 = vsel %vm1558_vm6, %v1522_v52, -inf  ;;  %v1454_v3 = vadd.f32 %v1448_v49, %v1147_v18 }
 0x152   : > { %v1614_v62 = vmax.f32 %v1612_v41, %v1613_v38  ;;  %v1671_v63 = vmax.f32 %v1565_v46, %v1593_v22  ;;  %v1673_v0 = vmax.f32 %v1579_v47, %v1607_v55  ;;  %v1616_v7 = vrot.slane %v1615_v51, 4 }
 0x153   : > { %v1672_v14 = vmax.f32 %v1572_v39, %v1600_v53  ;;  %v1636_v15 = vsel %vm1558_vm6, %v1524_v61, -inf  ;;  %v1623_v57 = vrot.slane %v1622_v1, 4  ;;  %v1630_v11 = vrot.slane %v1629_v50, 4 }
 0x154   : > { %v1674_v59 = vmax.f32 %v1586_v56, %v1614_v62  ;;  %v1679_v4 = vpack.c.bf16 %v1671_v63, %v1671_v63  ;;  %v1681_v5 = vpack.c.bf16 %v1673_v0, %v1673_v0  ;;  %v1465_v60 = vadd.f32 %v3020_v58, %v1454_v3 }
 0x155   : > { %v1680_v8 = vpack.c.bf16 %v1672_v14, %v1672_v14  ;;  %v1617_v13 = vmax.f32 %v1615_v51, %v1616_v7  ;;  %v1637_v16 = vrot.slane %v1636_v15, 4  ;;  %v1624_v21 = vmax.f32 %v1622_v1, %v1623_v57 }
 0x156   : > { %v1682_v44 = vpack.c.bf16 %v1674_v59, %v1674_v59  ;;  %v1701_v9 = vrot.slane %v1679_v4, %v3024_v19  ;;  %v1715_v10 = vrot.slane %v1681_v5, %v3024_v19  ;;  %v1631_v24 = vmax.f32 %v1629_v50, %v1630_v11 }
 0x157   : > { %v1708_v12 = vrot.slane %v1680_v8, %v3024_v19  ;;  %v1469_v29 = vmax.f32 %v1465_v60, 0.0  ;;  %v1618_v31 = vrot.slane %v1617_v13, 2  ;;  %v1638_v32 = vmax.f32 %v1636_v15, %v1637_v16 }
 0x158   : > { %v1722_v23 = vrot.slane %v1682_v44, %v3024_v19  ;;  %v1771_v25 = vrot.slane %v1715_v10, %v3024_v19  ;;  %v1757_v2 = vrot.slane %v1701_v9, %v3024_v19  ;;  %v1625_v37 = vrot.slane %v1624_v21, 2 }
 0x159   : > { %v1764_v17 = vrot.slane %v1708_v12, %v3024_v19  ;;  %v1525_v35 = vcombine.high %v1469_v29, %v1469_v29  ;;  %v1532_v36 = vrot.slane %v1469_v29, %v3024_v19  ;;  %v1632_v40 = vrot.slane %v1631_v24, 2 }
 0x15a   : > { %v1778_v18 = vrot.slane %v1722_v23, %v3024_v19  ;;  %v1809_v20 = vunpack.c.l.b16 %v1771_v25  ;;  %v1807_v30 = vunpack.c.l.b16 %v1757_v2  ;;  %v1619_v6 = vmax.f32 %v1617_v13, %v1618_v31 }
 0x15b   : > { %v1808_v27 = vunpack.c.l.b16 %v1764_v17  ;;  %v1539_v43 = vrot.slane %v1525_v35, %v3024_v19  ;;  %v1540_v52 = vcombine.high %v1532_v36, %v1532_v36  ;;  %v1643_v45 = vsel %vm1558_vm6, %v1532_v36, -inf }
 0x15c   : > { %v1810_v28 = vunpack.c.l.b16 %v1778_v18  ;;  %v1818_v58 = vrot.slane %v1809_v20, 6  ;;  %v1639_v41 = vrot.slane %v1638_v32, 2  ;;  %v1644_v46 = vrot.slane %v1643_v45, 4 }
 0x15d   : > { %v1815_v33 = vrot.slane %v1808_v27, 7  ;;  %v1541_v48 = vcombine.high %v1539_v43, %v1539_v43  ;;  %v1650_v49 = vsel %vm1558_vm6, %v1540_v52, -inf  ;;  %v1657_v22 = vsel %vm1558_vm6, %v1539_v43, -inf }
 0x15e   : > { %v1821_v34 = vrot.slane %v1810_v28, 5  ;;  %v1645_v55 = vmax.f32 %v1643_v45, %v1644_v46  ;;  %v1651_v38 = vrot.slane %v1650_v49, 4  ;;  %v1658_v39 = vrot.slane %v1657_v22, 4 }
 0x15f   : > { %v1817_v42 = vsel %vm1816_vm7, %v1815_v33, %v1807_v30  ;;  %v1626_v56 = vmax.f32 %v1624_v21, %v1625_v37  ;;  %v1633_v61 = vmax.f32 %v1631_v24, %v1632_v40  ;;  %v1664_v51 = vsel %vm1558_vm6, %v1541_v48, -inf }
 0x160   : > { %v1820_v26 = vsel %vm1819_vm8, %v1818_v58, %v1817_v42  ;;  %v1646_v53 = vrot.slane %v1645_v55, 2  ;;  %v1652_v62 = vmax.f32 %v1650_v49, %v1651_v38  ;;  %v1659_v63 = vmax.f32 %v1657_v22, %v1658_v39 }
 0x161   : > { %v1823_v47 = vsel %vm1822_vm9, %v1821_v34, %v1820_v26  ;;  %v1665_v0 = vrot.slane %v1664_v51, 4  ;;  %v1620_v1 = vrot.slane %v1619_v6, 1  ;;  %v1640_v50 = vmax.f32 %v1638_v32, %v1639_v41 }
 0x162   : > { %v1830_v54 = vpack.c.b16 %v1823_v47, %v1823_v47  ;;  %v1647_v3 = vmax.f32 %v1645_v55, %v1646_v53  ;;  %v1653_v14 = vrot.slane %v1652_v62, 2  ;;  %v1660_v59 = vrot.slane %v1659_v63, 2 }
 0x163   : > { %v1666_v4 = vmax.f32 %v1664_v51, %v1665_v0  ;;  %v1627_v5 = vrot.slane %v1626_v56, 1  ;;  %v1634_v7 = vrot.slane %v1633_v61, 1  ;;  %v1621_v10 = vmax.f32 %v1619_v6, %v1620_v1 }
 0x164   : > { %2198 = vst.sshfl [vmem:[%s3071_s17] sm:$0x3 pattern:$0x76325410] %v1830_v54  ;;  %v1648_v15 = vrot.slane %v1647_v3, 1  ;;  %v1654_v8 = vmax.f32 %v1652_v62, %v1653_v14  ;;  %v1661_v44 = vmax.f32 %v1659_v63, %v1660_v59  ;;  %v1641_v57 = vrot.slane %v1640_v50, 1 }
 0x165   : > { %v1667_v9 = vrot.slane %v1666_v4, 2  ;;  %v1628_v60 = vmax.f32 %v1626_v56, %v1627_v5  ;;  %v1635_v2 = vmax.f32 %v1633_v61, %v1634_v7 }
 0x166   : > { %v1649_v11 = vmax.f32 %v1647_v3, %v1648_v15  ;;  %v1655_v12 = vrot.slane %v1654_v8, 1  ;;  %v1662_v23 = vrot.slane %v1661_v44, 1  ;;  %v1642_v20 = vmax.f32 %v1640_v50, %v1641_v57 }
 0x167   : > { %v1668_v25 = vmax.f32 %v1666_v4, %v1667_v9 }
 0x168   : > { %v1656_v13 = vmax.f32 %v1654_v8, %v1655_v12  ;;  %v1663_v16 = vmax.f32 %v1661_v44, %v1662_v23  ;;  %v1675_v18 = vmax.f32 %v1621_v10, %v1649_v11 }
 0x169   : > { %v1669_v17 = vrot.slane %v1668_v25, 1 }
 0x16a   : > { %v1676_v24 = vmax.f32 %v1628_v60, %v1656_v13  ;;  %v1677_v27 = vmax.f32 %v1635_v2, %v1663_v16  ;;  %v1683_v28 = vpack.c.bf16 %v1675_v18, %v1675_v18 }
 0x16b   : > { %v1670_v21 = vmax.f32 %v1668_v25, %v1669_v17 }
 0x16c   : > { %v1684_v30 = vpack.c.bf16 %v1676_v24, %v1676_v24  ;;  %v1685_v58 = vpack.c.bf16 %v1677_v27, %v1677_v27  ;;  %v1729_v31 = vrot.slane %v1683_v28, %v3024_v19 }
 0x16d   : > { %v1678_v29 = vmax.f32 %v1642_v20, %v1670_v21 }
 0x16e   : > { %v1736_v33 = vrot.slane %v1684_v30, %v3024_v19  ;;  %v1743_v34 = vrot.slane %v1685_v58, %v3024_v19  ;;  %v1785_v36 = vrot.slane %v1729_v31, %v3024_v19 }
 0x16f   : > { %v1686_v32 = vpack.c.bf16 %v1678_v29, %v1678_v29 }
 0x170   : > { %v1792_v37 = vrot.slane %v1736_v33, %v3024_v19  ;;  %v1799_v40 = vrot.slane %v1743_v34, %v3024_v19  ;;  %v1811_v45 = vunpack.c.l.b16 %v1785_v36 }
 0x171   : > { %v1750_v35 = vrot.slane %v1686_v32, %v3024_v19 }
 0x172   : > { %v1812_v43 = vunpack.c.l.b16 %v1792_v37  ;;  %v1813_v52 = vunpack.c.l.b16 %v1799_v40 }
 0x173   : > { %v1806_v42 = vrot.slane %v1750_v35, %v3024_v19 }
 0x174   : > { %v1824_v6 = vrot.slane %v1812_v43, 7  ;;  %v1826_v41 = vrot.slane %v1813_v52, 6 }
 0x175   : > { %v1814_v26 = vunpack.c.l.b16 %v1806_v42 }
 0x176   : > { %v1825_v46 = vsel %vm1816_vm7, %v1824_v6, %v1811_v45 }
 0x177   : > { %v1828_v47 = vrot.slane %v1814_v26, 5  ;;  %v1827_v48 = vsel %vm1819_vm8, %v1826_v41, %v1825_v46 }
 0x179   : > { %v1829_v49 = vsel %vm1822_vm9, %v1828_v47, %v1827_v48 }
 0x17a   : > { %v1831_v22 = vpack.c.b16 %v1829_v49, %v1829_v49 }
 0x17c   : > { %2199 = vst.sshfl [vmem:[%s3071_s17 + $0x2] sm:$0x3 pattern:$0x76325410] %v1831_v22 }
 0x17d PF: > { %s15_s22 = sadd.s32 1, %s2542_s22   ;;  %s3116_s18 = smov %s2534_s20 }
 0x17e   : > { %p12_p1 = scmp.ge.s32.totalorder %s15_s22, 6   ;;  %s3117_s19 = smov %s2538_s21 }
 0x17f   : > { %s3118_s20 = smov %s3121_s23  ;;  %s3119_s21 = smov %s3125_s24 }
 0x180   :  { %14 = sbr.rel (!%p12_p1) target bundleno = 3 (0x3), region = 78 }

// kernel: feature_extractor.9
= control target key start
LH: loop header
LB: loop body
LE: loop exit
PB: predicated region body
PF: predicated region fallthrough
CT: control target
= control target key end

     0   :  { %10 = vsyncpa [#allocation3], 0  ;;  %s3411_s0 = inlined_call_operand.vmem [shape: bf16[2,4,4,128], index: 0, kind: input, shape index: {}, may-alias: {0,1,2}]   ;;  %s3412_s1 = inlined_call_operand.vmem [shape: bf16[2,4,4,128], index: 1, kind: input, shape index: {}, may-alias: {0,1,2}]   ;;  %s3413_s2 = inlined_call_operand.vmem [shape: bf16[2,4,4,128], index: 2, kind: input, shape index: {}, may-alias: {0,1,2}]   ;;  %s3414_s3 = inlined_call_operand.vmem [shape: bf16[3,384,256], index: 3, kind: input, shape index: {}]   ;;  %s3415_s4 = inlined_call_operand.vmem [shape: f32[1,256], index: 4, kind: input, shape index: {}]   ;;  %s3416_s5 = inlined_call_operand.hbm [shape: f32[2,4,4,256], index: 5, kind: output, shape index: {}]  }
   0x1   :  { %12 = vsyncpa [#allocation3 + $0x1], 0  ;;  %s2708_s18 = smov 0   ;;  %s2710_s19 = smov 0  }
   0x2   :  { %s2712_s20 = smov 0   ;;  %s2714_s21 = smov 0  }
   0x3   :  { %s2716_s22 = smov 0   ;;  %s2718_s23 = smov 0  }
   0x4 LB: > { %s2047_s24 = sadd.s32 4294967295, %s2671_s23   ;;  %s2048_s25 = sadd.s32 4294967294, %s2671_s23   ;;  %s2671_s23 = sphi %s2718_s23, %s18_s23   ;;  %s2667_s22 = sphi %s2716_s22, %s3427_s22   ;;  %s2663_s21 = sphi %s2714_s21, %s3426_s21   ;;  %s2659_s20 = sphi %s2712_s20, %s3425_s20   ;;  %s2655_s19 = sphi %s2710_s19, %s3424_s19   ;;  %s2651_s18 = sphi %s2708_s18, %s3423_s18  }
   0x5   : > { %s30_s26 = sadd.s32 1, %s2667_s22  ;;  %s181_s27 = sadd.s32 1, %s2659_s20 }
   0x6   : > { %p32_p0 = scmp.ge.s32.totalorder %s30_s26, 2  ;;  %p191_p1 = scmp.ne.s32.totalorder %s2659_s20, %s2655_s19 }
   0x7   : > { %p192_p2 = scmp.eq.s32.totalorder %s2047_s24, 1  ;;  %p197_p3 = scmp.ne.s32.totalorder %s2655_s19, %s2651_s18 }
   0x8   : > { %s3429_s26 = smov (%p32_p0, %s30_s26), 0  ;;  %p198_p5 = scmp.eq.s32.totalorder %s2048_s25, 1 }
   0x9   : > { %p2748_p4 = por %p192_p2, %p191_p1  ;;  %s176_s29 = ssub.s32 %s2667_s22, %s3429_s26 }
   0xa   : > { %p2051_p6 = scmp.ge.s32.totalorder %s2671_s23, 1  ;;  %p179_p7 = scmp.eq.s32.totalorder %s176_s29, 0 }
   0xb   : > { %p2755_p8 = por %p198_p5, %p197_p3  ;;  %p273_p9 = scmp.lt.s32.totalorder %s2671_s23, 3 }
   0xc   : > { %s2761_s6 = scalar_select %p179_p7, %s2659_s20, %s181_s27  }
   0xd   : > { %p274_p10 = pnand %p2051_p6, %p273_p9 }
   0xe   : > { %p333_p11 = scmp.lt.s32.totalorder (!%p274_p10), %s2663_s21, 1  ;;  %s326_s25 = sand.u32 (!%p274_p10), 1, %s2655_s19  }
   0xf   : > { %277 = sbr.rel (%p274_p10) target bundleno = 404 (0x194), region = 40  ;;  %s2052_s27 = sshll.u32 (!%p274_p10), %s326_s25, 5 }
  0x10   : > { %s2318_s29 = sshll.u32 (!%p274_p10), %s2663_s21, 9  ;;  %s328_s8 = scalar_lea.vmem (!%p274_p10), [#allocation2], %s2052_s27 }
  0x14   : > { %v2379_v0 = vld [vmem:[%s3414_s3 + $0x1f4] ss:$8 sps:$4 sm:$0xff]   ;;  %v2673_v2 = vmov 0   ;;  %v2383_v3 = vld [vmem:[%s3414_s3 + $0x1f0] ss:$8 sps:$4 sm:$0xff]   ;;  %v422_v21 = vlaneseq  ;;  %s334_s13 = scalar_select %p333_p11, %s2663_s21, 1 }
  0x15   : > { %v2381_v1 = vld [vmem:[%s3414_s3 + $0x2f4] ss:$8 sps:$4 sm:$0xff]   ;;  %1085 = vmatprep.mubr.bf16.mxu1 %v2673_v2  ;;  %1010 = vmatprep.subr.bf16.mxu0 %v2379_v0  ;;  %v2384_v4 = vld [vmem:[%s3414_s3 + $0x2f0] ss:$8 sps:$4 sm:$0xff]   ;;  %v2385_v5 = vld [vmem:[%s3414_s3 + $0x1e4] ss:$8 sps:$4 sm:$0xff]  }
  0x16   : > { %1053 = vmatprep.subr.bf16.mxu1 %v2381_v1  ;;  %1011 = vmatpush1.bf16.msra.mxu0 %v2383_v3  ;;  %v2387_v6 = vld [vmem:[%s3414_s3 + $0x2e4] ss:$8 sps:$4 sm:$0xff]   ;;  %v2389_v7 = vld [vmem:[%s3414_s3 + $0x1e0] ss:$8 sps:$4 sm:$0xff]   ;;  %v2391_v9 = vld [vmem:[%s3414_s3 + $0x1d4] ss:$8 sps:$4 sm:$0xff]  }
  0x17   : > { %1054 = vmatpush1.bf16.msra.mxu1 %v2384_v4  ;;  %1012 = vmatprep.subr.bf16.mxu0 %v2385_v5  ;;  %v2390_v8 = vld [vmem:[%s3414_s3 + $0x2e0] ss:$8 sps:$4 sm:$0xff]   ;;  %v2393_v10 = vld [vmem:[%s3414_s3 + $0x2d4] ss:$8 sps:$4 sm:$0xff]   ;;  %v2395_v11 = vld [vmem:[%s3414_s3 + $0x1d0] ss:$8 sps:$4 sm:$0xff]  }
  0x18   : > { %1055 = vmatprep.subr.bf16.mxu1 %v2387_v6  ;;  %v2396_v12 = vld [vmem:[%s3414_s3 + $0x2d0] ss:$8 sps:$4 sm:$0xff]   ;;  %v2397_v13 = vld [vmem:[%s3414_s3 + $0x1c4] ss:$8 sps:$4 sm:$0xff]   ;;  %v2401_v15 = vld [vmem:[%s3414_s3 + $0x1c0] ss:$8 sps:$4 sm:$0xff]  }
  0x19   : > { %v2399_v14 = vld [vmem:[%s3414_s3 + $0x2c4] ss:$8 sps:$4 sm:$0xff]   ;;  %v2402_v16 = vld [vmem:[%s3414_s3 + $0x2c0] ss:$8 sps:$4 sm:$0xff]   ;;  %v2403_v17 = vld [vmem:[%s3414_s3 + $0x1b4] ss:$8 sps:$4 sm:$0xff]  }
  0x1a   : > { %1013 = vmatpush1.bf16.msra.mxu0 %v2389_v7  ;;  %v2405_v18 = vld [vmem:[%s3414_s3 + $0x2b4] ss:$8 sps:$4 sm:$0xff]   ;;  %v2674_v19 = vmov 1983009808   ;;  %v2407_v22 = vld [vmem:[%s3414_s3 + $0x1b0] ss:$8 sps:$4 sm:$0xff]  }
  0x1b   : > { %1056 = vmatpush1.bf16.msra.mxu1 %v2390_v8  ;;  %1014 = vmatprep.subr.bf16.mxu0 %v2391_v9  ;;  %v420_v20 = vunpack.c.l.s4 %v2674_v19  ;;  %v2408_v23 = vld [vmem:[%s3414_s3 + $0x2b0] ss:$8 sps:$4 sm:$0xff]   ;;  %v2409_v24 = vld [vmem:[%s3414_s3 + $0x1a4] ss:$8 sps:$4 sm:$0xff]   ;;  %v2832_v27 = vshrl.u32 %v422_v21, 7  ;;  %s2834_s7 = sshll.u32 %s334_s13, 3 }
  0x1c   : > { %1057 = vmatprep.subr.bf16.mxu1 %v2393_v10  ;;  %v2411_v25 = vld [vmem:[%s3414_s3 + $0x2a4] ss:$8 sps:$4 sm:$0xff]   ;;  %v2413_v28 = vld [vmem:[%s3414_s3 + $0x1a0] ss:$8 sps:$4 sm:$0xff]   ;;  %v2415_v30 = vld [vmem:[%s3414_s3 + $0x194] ss:$8 sps:$4 sm:$0xff]   ;;  %s353_s24 = scalar_lea.vmem %s3412_s1, %s2834_s7  ;;  %s340_s14 = scalar_lea.vmem %s3411_s0, %s2834_s7 }
  0x1d   : > { %v421_v26 = vunpack.c.0.s8 %v420_v20  ;;  %v2414_v29 = vld [vmem:[%s3414_s3 + $0x2a0] ss:$8 sps:$4 sm:$0xff]   ;;  %v2417_v31 = vld [vmem:[%s3414_s3 + $0x294] ss:$8 sps:$4 sm:$0xff]   ;;  %vm537_vm0 = vsmask.f32 1280 }
  0x1e   : > { %1015 = vmatpush1.bf16.msra.mxu0 %v2395_v11  ;;  %v2419_v33 = vld [vmem:[%s3414_s3 + $0x190] ss:$8 sps:$4 sm:$0xff]   ;;  %v2421_v35 = vld [vmem:[%s3414_s3 + $0x184] ss:$8 sps:$4 sm:$0xff]   ;;  %v2864_v36 = vld [vmem:[%s353_s24] sm:$0x3] }
  0x1f   : > { %1058 = vmatpush1.bf16.msra.mxu1 %v2396_v12  ;;  %1016 = vmatprep.subr.bf16.mxu0 %v2397_v13  ;;  %v2853_v32 = vsub.s32 %v421_v26, %v2832_v27  ;;  %v2420_v34 = vld [vmem:[%s3414_s3 + $0x290] ss:$8 sps:$4 sm:$0xff]   ;;  %v2866_v37 = vld [vmem:[%s353_s24 + $0x2] sm:$0x3]  ;;  %v2868_v38 = vld [vmem:[%s353_s24 + $0x4] sm:$0x3] }
  0x20   : > { %1059 = vmatprep.subr.bf16.mxu1 %v2399_v14  ;;  %v2423_v39 = vld [vmem:[%s3414_s3 + $0x284] ss:$8 sps:$4 sm:$0xff]   ;;  %v2425_v44 = vld [vmem:[%s3414_s3 + $0x180] ss:$8 sps:$4 sm:$0xff]   ;;  %vm536_vm1 = vcmask 1041408   ;;  %vm509_vm2 = vcmask 1040384  }
  0x21   : > { %v2873_v40 = vld [vmem:[%s353_s24 + $0x6] sm:$0x3]  ;;  %v432_v41 = vrot.slane %v2864_v36, %v2853_v32  ;;  %v439_v42 = vrot.slane %v2866_v37, %v2853_v32  ;;  %v446_v43 = vrot.slane %v2868_v38, %v2853_v32  ;;  %v2426_v50 = vld [vmem:[%s3414_s3 + $0x280] ss:$8 sps:$4 sm:$0xff]   ;;  %v2427_v55 = vld [vmem:[%s3414_s3 + $0x274] ss:$8 sps:$4 sm:$0xff]  }
  0x22   : > { %1017 = vmatpush1.bf16.msra.mxu0 %v2401_v15  ;;  %v453_v45 = vrot.slane %v2873_v40, %v2853_v32  ;;  %v2431_v56 = vld [vmem:[%s3414_s3 + $0x74] ss:$8 sps:$4 sm:$0xff]   ;;  %vm2897_vm3 = vmand %vm536_vm1, %vm537_vm0  ;;  %vm510_vm4 = vsmask.f32 256  ;;  %v2432_v62 = vld [vmem:[%s3414_s3 + $0x270] ss:$8 sps:$4 sm:$0xff]  }
  0x23   : > { %1060 = vmatpush1.bf16.msra.mxu1 %v2402_v16  ;;  %1018 = vmatprep.subr.bf16.mxu0 %v2403_v17  ;;  %v469_v46 = vshrl.u32 %v432_v41, 16  ;;  %v472_v47 = vshll.u32 %v432_v41, 16  ;;  %v476_v48 = vshrl.u32 %v439_v42, 16  ;;  %v479_v49 = vshll.u32 %v439_v42, 16  ;;  %v2433_v5 = vld [vmem:[%s3414_s3 + $0x264] ss:$8 sps:$4 sm:$0xff]   ;;  %vm2913_vm5 = vmand %vm509_vm2, %vm510_vm4 }
  0x24   : > { %1061 = vmatprep.subr.bf16.mxu1 %v2405_v18  ;;  %v483_v51 = vshrl.u32 %v446_v43, 16  ;;  %v486_v52 = vshll.u32 %v446_v43, 16  ;;  %v490_v53 = vshrl.u32 %v453_v45, 16  ;;  %v493_v54 = vshll.u32 %v453_v45, 16  ;;  %v2438_v21 = vld [vmem:[%s3414_s3 + $0x260] ss:$8 sps:$4 sm:$0xff]  }
  0x25   : > { %v520_v57 = vrot.slane %v472_v47, 1  ;;  %v522_v58 = vrot.slane %v479_v49, 1  ;;  %v471_v1 = vrot.slane %v469_v46, 7  ;;  %v478_v6 = vrot.slane %v476_v48, 7  ;;  %v2437_v41 = vld [vmem:[%s3414_s3 + $0x64] ss:$8 sps:$4 sm:$0xff]  }
  0x26   : > { %1019 = vmatpush1.bf16.msra.mxu0 %v2407_v22  ;;  %v524_v59 = vrot.slane %v486_v52, 1  ;;  %v526_v60 = vrot.slane %v493_v54, 1  ;;  %v485_v7 = vrot.slane %v483_v51, 7  ;;  %v492_v22 = vrot.slane %v490_v53, 7  ;;  %v2444_v42 = vld [vmem:[%s3414_s3 + $0x250] ss:$8 sps:$4 sm:$0xff]  }
  0x27   : > { %1062 = vmatpush1.bf16.msra.mxu1 %v2408_v23  ;;  %1020 = vmatprep.subr.bf16.mxu0 %v2409_v24  ;;  %v521_v63 = vor.u32 %v520_v57, %v469_v46  ;;  %v523_v0 = vor.u32 %v522_v58, %v476_v48  ;;  %v474_v10 = vor.u32 %v472_v47, %v471_v1  ;;  %v2435_v47 = vld [vmem:[%s3414_s3 + $0x60] ss:$8 sps:$4 sm:$0xff]   ;;  %v2449_v57 = vld [vmem:[%s3414_s3 + $0x44] ss:$8 sps:$4 sm:$0xff]   ;;  %v2453_v1 = vld [vmem:[%s3414_s3 + $0x30] ss:$8 sps:$4 sm:$0xff]  }
  0x28   : > { %1063 = vmatprep.subr.bf16.mxu1 %v2411_v25  ;;  %v525_v3 = vor.u32 %v524_v59, %v483_v51  ;;  %v527_v4 = vor.u32 %v526_v60, %v490_v53  ;;  %v481_v18 = vor.u32 %v479_v49, %v478_v6  ;;  %v488_v19 = vor.u32 %v486_v52, %v485_v7  ;;  %v2439_v25 = vld [vmem:[%s3414_s3 + $0x254] ss:$8 sps:$4 sm:$0xff]   ;;  %v2457_v58 = vld [vmem:[%s3414_s3 + $0x224] ss:$8 sps:$4 sm:$0xff]   ;;  %v2447_v60 = vld [vmem:[%s3414_s3 + $0x40] ss:$8 sps:$4 sm:$0xff]  }
  0x29   : > { %v540_v8 = vsel %vm2897_vm3, %v521_v63, 0  ;;  %v541_v9 = vsel %vm2897_vm3, %v523_v0, 0  ;;  %v513_v23 = vsel %vm2913_vm5, 0, %v474_v10  ;;  %v2451_v51 = vld [vmem:[%s3414_s3 + $0x234] ss:$8 sps:$4 sm:$0xff]   ;;  %s2317_s16 = sadd.s32 6, %s2834_s7  ;;  %s3360_s7 = scalar_lea.hbm %s3416_s5, %s2318_s29 }
  0x2a   : > { %1021 = vmatpush1.bf16.msra.mxu0 %v2413_v28  ;;  %v542_v12 = vsel %vm2897_vm3, %v525_v3, 0  ;;  %v543_v13 = vsel %vm2897_vm3, %v527_v4, 0  ;;  %v2922_v14 = vrot.slane %v540_v8, %v2853_v32  ;;  %v2925_v15 = vrot.slane %v541_v9, %v2853_v32  ;;  %v2455_v63 = vld [vmem:[%s3414_s3 + $0x34] ss:$8 sps:$4 sm:$0xff]   ;;  %v2468_v3 = vld [vmem:[%s3414_s3 + $0x210] ss:$8 sps:$4 sm:$0xff]   ;;  %s366_s9 = scalar_lea.vmem %s3413_s2, %s2317_s16 }
  0x2b   : > { %1064 = vmatpush1.bf16.msra.mxu1 %v2414_v29  ;;  %1022 = vmatprep.subr.bf16.mxu0 %v2415_v30  ;;  %v2928_v16 = vrot.slane %v542_v12, %v2853_v32  ;;  %v2931_v17 = vrot.slane %v543_v13, %v2853_v32  ;;  %v569_v26 = vcombine.low %v513_v23, %v2864_v36  ;;  %v514_v30 = vsel %vm2913_vm5, 0, %v481_v18  ;;  %v2463_v0 = vld [vmem:[%s3414_s3 + $0x214] ss:$8 sps:$4 sm:$0xff]   ;;  %v2461_v4 = vld [vmem:[%s3414_s3 + $0x24] ss:$8 sps:$4 sm:$0xff]   ;;  %s3366_s21 = scalar_lea.sflag [#allocation3], %s326_s25 }
  0x2c   : > { %1065 = vmatprep.subr.bf16.mxu1 %v2417_v31  ;;  %v2108_v20 = vcombine.low %v2922_v14, %v2925_v15  ;;  %v495_v29 = vor.u32 %v493_v54, %v492_v22  ;;  %v515_v31 = vsel %vm2913_vm5, 0, %v488_v19  ;;  %v585_v36 = vcombine.low %v514_v30, %v2866_v37  ;;  %v2445_v37 = vld [vmem:[%s3414_s3 + $0x244] ss:$8 sps:$4 sm:$0xff]   ;;  %v2459_v6 = vld [vmem:[%s3414_s3 + $0x20] ss:$8 sps:$4 sm:$0xff]  }
  0x2d   : > { %v2110_v24 = vcombine.low %v2928_v16, %v2931_v17  ;;  %v2474_v7 = vld [vmem:[%s3414_s3 + $0x200] ss:$8 sps:$4 sm:$0xff]   ;;  %v2467_v8 = vld [vmem:[%s3414_s3 + $0x14] ss:$8 sps:$4 sm:$0xff]   ;;  %v2465_v12 = vld [vmem:[%s3414_s3 + $0x10] ss:$8 sps:$4 sm:$0xff]  }
  0x2e   : > { %1023 = vmatpush1.bf16.msra.mxu0 %v2419_v33  ;;  %v749_v28 = vrot.slane %v2108_v20, %v2853_v32  ;;  %v2429_v33 = vld [vmem:[%s3414_s3 + $0x70] ss:$8 sps:$4 sm:$0xff]   ;;  %v516_v43 = vsel %vm2913_vm5, 0, %v495_v29  ;;  %v2480_v9 = vld [vmem:[%s3414_s3 + $0x174] ss:$8 sps:$4 sm:$0xff]  }
  0x2f   : > { %1066 = vmatpush1.bf16.msra.mxu1 %v2420_v34  ;;  %1024 = vmatprep.subr.bf16.mxu0 %v2421_v35  ;;  %v763_v34 = vrot.slane %v2110_v24, %v2853_v32  ;;  %v2956_v35 = vrot.slane %v569_v26, %v2853_v32  ;;  %v667_v46 = vcombine.low %v516_v43, %v2873_v40  ;;  %v2443_v40 = vld [vmem:[%s3414_s3 + $0x54] ss:$8 sps:$4 sm:$0xff]   ;;  %v2478_v13 = vld [vmem:[%s3414_s3 + $0x170] ss:$8 sps:$4 sm:$0xff]   ;;  %v2473_v18 = vld [vmem:[%s3414_s3 + $0x4] ss:$8 sps:$4 sm:$0xff]  }
  0x30   : > { %1067 = vmatprep.subr.bf16.mxu1 %v2423_v39  ;;  %v601_v39 = vcombine.low %v515_v31, %v2868_v38  ;;  %v2972_v38 = vrot.slane %v585_v36, %v2853_v32  ;;  %v2486_v19 = vld [vmem:[%s3414_s3 + $0x164] ss:$8 sps:$4 sm:$0xff]   ;;  %v2471_v20 = vld [vmem:[%s3414_s3] ss:$8 sps:$4 sm:$0xff]   ;;  %v2477_v22 = vld [vmem:[%s3414_s3 + $0xf4] ss:$8 sps:$4 sm:$0xff]  }
  0x31   : > { %v2982_v48 = vrot.slane %v667_v46, %v2853_v32  ;;  %v2484_v23 = vld [vmem:[%s3414_s3 + $0x160] ss:$8 sps:$4 sm:$0xff]   ;;  %v2490_v29 = vld [vmem:[%s3414_s3 + $0x150] ss:$8 sps:$4 sm:$0xff]   ;;  %v2504_v46 = vld [vmem:[%s3414_s3 + $0x134] ss:$8 sps:$4 sm:$0xff]  }
  0x32   : > { %1025 = vmatpush1.bf16.msra.mxu0 %v2425_v44  ;;  %v766_v44 = vcombine.low %v749_v28, %v763_v34  ;;  %v2975_v45 = vrot.slane %v601_v39, %v2853_v32  ;;  %v2107_v49 = vcombine.low %v2956_v35, %v2972_v38  ;;  %v2475_v28 = vld [vmem:[%s3414_s3 + $0xf0] ss:$8 sps:$4 sm:$0xff]   ;;  %v2498_v34 = vld [vmem:[%s3414_s3 + $0x144] ss:$8 sps:$4 sm:$0xff]   ;;  %v2496_v43 = vld [vmem:[%s3414_s3 + $0x140] ss:$8 sps:$4 sm:$0xff]  }
  0x33   : > { %1068 = vmatpush1.bf16.msra.mxu1 %v2426_v50  ;;  %1026 = vmatprep.subr.bf16.mxu0 %v2427_v55  ;;  %v2450_v50 = vld [vmem:[%s3414_s3 + $0x240] ss:$8 sps:$4 sm:$0xff]   ;;  %v2441_v55 = vld [vmem:[%s3414_s3 + $0x50] ss:$8 sps:$4 sm:$0xff]   ;;  %v2540_v11 = vld [vmem:[%s3414_s3 + $0x324] ss:$8 sps:$4 sm:$0xff]  }
  0x34   : > { %1374 = vmatprep.subr.bf16.mxu1 %v2431_v56  ;;  %v2109_v52 = vcombine.low %v2975_v45, %v2982_v48  ;;  %v742_v53 = vrot.slane %v2107_v49, %v2853_v32  ;;  %v2456_v56 = vld [vmem:[%s3414_s3 + $0x230] ss:$8 sps:$4 sm:$0xff]   ;;  %v2161_v49 = vcombine.low %v2972_v38, %v2975_v45  ;;  %v2510_v38 = vld [vmem:[%s3414_s3 + $0x124] ss:$8 sps:$4 sm:$0xff]   ;;  %v2574_v61 = vld [vmem:[%s3414_s3 + $0x420] ss:$8 sps:$4 sm:$0xff]  }
  0x36   : > { %1027 = vmatpush2.bf16.msra.mxu0 %v2432_v62  ;;  %1086 = vmatmul.mubr.bf16.vlgmr.msra.gmra.mxu1 %v766_v44  ;;  %v756_v54 = vrot.slane %v2109_v52, %v2853_v32  ;;  %v2462_v62 = vld [vmem:[%s3414_s3 + $0x220] ss:$8 sps:$4 sm:$0xff]   ;;  %v2502_v52 = vld [vmem:[%s3414_s3 + $0x130] ss:$8 sps:$4 sm:$0xff]  }
  0x37   : > { %1028 = vmatprep.subr.bf16.mxu0 %v2433_v5  ;;  %1375 = vmatpush1.bf16.msra.mxu1 %v2429_v33  ;;  %v2469_v5 = vld [vmem:[%s3414_s3 + $0x204] ss:$8 sps:$4 sm:$0xff]  }
  0x38   : > { %1376 = vmatprep.subr.bf16.mxu1 %v2437_v41  ;;  %v765_v59 = vcombine.high %v742_v53, %v756_v54  ;;  %v764_v10 = vcombine.low %v742_v53, %v756_v54  ;;  %v2483_v33 = vld [vmem:[%s3414_s3 + $0xe4] ss:$8 sps:$4 sm:$0xff]   ;;  %v2481_v41 = vld [vmem:[%s3414_s3 + $0xe0] ss:$8 sps:$4 sm:$0xff]   ;;  %v3121_v54 = vrot.slane %v2161_v49, %v2853_v32  ;;  %v2556_v49 = vld [vmem:[%s3414_s3 + $0x450] ss:$8 sps:$4 sm:$0xff]  }
  0x3a   : > { %1029 = vmatpush2.bf16.msra.mxu0 %v2438_v21  ;;  %1042 = vmatprep.mubr.bf16.mxu0 %v765_v59  ;;  %v397_v21 = vld [vmem:[%s340_s14] sm:$0x3]  ;;  %s2675_s14 = smov [#allocation2]  }
  0x3b   : > { %1030 = vmatprep.subr.bf16.mxu0 %v2439_v25  ;;  %1377 = vmatpush1.bf16.msra.mxu1 %v2435_v47  ;;  %v402_v24 = vmul.bf16 0.0, %v397_v21  ;;  %v2492_v25 = vld [vmem:[%s3414_s3 + $0x154] ss:$8 sps:$4 sm:$0xff]   ;;  %v2508_v59 = vld [vmem:[%s3414_s3 + $0x120] ss:$8 sps:$4 sm:$0xff]   ;;  %s2599_s15 = sshll.u32 %s2675_s14, 4  ;;  %s2600_s15 = int_to_ptr.vmem [resolvable:$false] %s2599_s15 }
  0x3c   : > { %1378 = vmatprep.subr.bf16.mxu1 %v2443_v40  ;;  %v2517_v21 = vld [vmem:[%s3414_s3 + $0x80] ss:$8 sps:$4 sm:$0xff]   ;;  %s2601_s13 = scalar_lea.vmem %s2600_s15, 1024 }
  0x3d   : > { %v425_v26 = vrot.slane %v402_v24, %v2853_v32 }
  0x3e   : > { %1031 = vmatpush2.bf16.msra.mxu0 %v2444_v42  ;;  %v2489_v42 = vld [vmem:[%s3414_s3 + $0xd4] ss:$8 sps:$4 sm:$0xff]  }
  0x3f   : > { %1032 = vmatprep.subr.bf16.mxu0 %v2445_v37  ;;  %1379 = vmatpush1.bf16.msra.mxu1 %v2441_v55  ;;  %v462_v30 = vshrl.u32 %v425_v26, 16  ;;  %v465_v31 = vshll.u32 %v425_v26, 16  ;;  %v2493_v55 = vld [vmem:[%s3414_s3 + $0xc0] ss:$8 sps:$4 sm:$0xff]  }
  0x40   : > { %1380 = vmatprep.subr.bf16.mxu1 %v2449_v57 }
  0x41   : > { %v464_v36 = vrot.slane %v462_v30, 7  ;;  %v518_v39 = vrot.slane %v465_v31, 1 }
  0x42   : > { %1033 = vmatpush2.bf16.msra.mxu0 %v2450_v50  ;;  %v2487_v50 = vld [vmem:[%s3414_s3 + $0xd0] ss:$8 sps:$4 sm:$0xff]  }
  0x43   : > { %1034 = vmatprep.subr.bf16.mxu0 %v2451_v51  ;;  %1381 = vmatpush1.bf16.msra.mxu1 %v2447_v60  ;;  %v467_v44 = vor.u32 %v465_v31, %v464_v36  ;;  %v519_v37 = vor.u32 %v518_v39, %v462_v30  ;;  %v2495_v51 = vld [vmem:[%s3414_s3 + $0xc4] ss:$8 sps:$4 sm:$0xff]   ;;  %v2516_v60 = vld [vmem:[%s3414_s3 + $0x114] ss:$8 sps:$4 sm:$0xff]   ;;  %v2544_v30 = vld [vmem:[%s3414_s3 + $0x470] ss:$8 sps:$4 sm:$0xff]  }
  0x44   : > { %1382 = vmatprep.subr.bf16.mxu1 %v2455_v63  ;;  %v2534_v31 = vld [vmem:[%s3414_s3 + $0x344] ss:$8 sps:$4 sm:$0xff]  }
  0x45   : > { %v512_v47 = vsel %vm2913_vm5, 0, %v467_v44  ;;  %v539_v53 = vsel %vm2897_vm3, %v519_v37, 0  ;;  %v2558_v44 = vld [vmem:[%s3414_s3 + $0x454] ss:$8 sps:$4 sm:$0xff]  }
  0x46   : > { %1035 = vmatpush2.bf16.msra.mxu0 %v2456_v56  ;;  %v553_v40 = vcombine.low %v512_v47, %v402_v24  ;;  %v567_v57 = vrot.slane %v539_v53, %v2853_v32  ;;  %v2546_v24 = vld [vmem:[%s3414_s3 + $0x474] ss:$8 sps:$4 sm:$0xff]   ;;  %v2535_v47 = vld [vmem:[%s3414_s3 + $0x330] ss:$8 sps:$4 sm:$0xff]   ;;  %v2562_v53 = vld [vmem:[%s3414_s3 + $0x440] ss:$8 sps:$4 sm:$0xff]  }
  0x47   : > { %1036 = vmatprep.subr.bf16.mxu0 %v2457_v58  ;;  %1383 = vmatpush1.bf16.msra.mxu1 %v2453_v1  ;;  %v2501_v58 = vld [vmem:[%s3414_s3 + $0xb4] ss:$8 sps:$4 sm:$0xff]   ;;  %v2162_v1 = vcombine.low %v2925_v15, %v2928_v16  ;;  %v2505_v15 = vld [vmem:[%s3414_s3 + $0xa0] ss:$8 sps:$4 sm:$0xff]  }
  0x48   : > { %1384 = vmatprep.subr.bf16.mxu1 %v2461_v4  ;;  %v560_v45 = vrot.slane %v553_v40, %v2853_v32  ;;  %v2514_v4 = vld [vmem:[%s3414_s3 + $0x110] ss:$8 sps:$4 sm:$0xff]  }
  0x4a   : > { %1037 = vmatpush2.bf16.msra.mxu0 %v2462_v62  ;;  %v2159_v56 = vcombine.low %v560_v45, %v2956_v35  ;;  %v2499_v62 = vld [vmem:[%s3414_s3 + $0xb0] ss:$8 sps:$4 sm:$0xff]  }
  0x4b   : > { %1038 = vmatprep.subr.bf16.mxu0 %v2463_v0  ;;  %1385 = vmatpush1.bf16.msra.mxu1 %v2459_v6  ;;  %v2160_v0 = vcombine.low %v567_v57, %v2922_v14  ;;  %v2522_v14 = vld [vmem:[%s3414_s3 + $0x104] ss:$8 sps:$4 sm:$0xff]   ;;  %v2513_v6 = vld [vmem:[%s3414_s3 + $0x94] ss:$8 sps:$4 sm:$0xff]  }
  0x4c   : > { %1386 = vmatprep.subr.bf16.mxu1 %v2467_v8  ;;  %v1106_v35 = vrot.slane %v2159_v56, %v2853_v32  ;;  %v2525_v8 = vld [vmem:[%s3414_s3 + $0x374] ss:$8 sps:$4 sm:$0xff]  }
  0x4d   : > { %v1113_v16 = vrot.slane %v2160_v0, %v2853_v32  ;;  %v2547_v0 = vld [vmem:[%s3414_s3 + $0x300] ss:$8 sps:$4 sm:$0xff]  }
  0x4e   : > { %1039 = vmatpush2.bf16.msra.mxu0 %v2468_v3  ;;  %v1129_v63 = vcombine.high %v1106_v35, %v3121_v54  ;;  %v2507_v3 = vld [vmem:[%s3414_s3 + $0xa4] ss:$8 sps:$4 sm:$0xff]   ;;  %v1128_v26 = vcombine.low %v1106_v35, %v3121_v54 }
  0x4f   : > { %1040 = vmatprep.subr.bf16.mxu0 %v2469_v5  ;;  %1387 = vmatpush1.bf16.msra.mxu1 %v2465_v12  ;;  %v3159_v5 = vrot.slane %v2162_v1, %v2853_v32  ;;  %v2519_v12 = vld [vmem:[%s3414_s3 + $0x84] ss:$8 sps:$4 sm:$0xff]   ;;  %v2555_v1 = vld [vmem:[%s3414_s3 + $0x3f4] ss:$8 sps:$4 sm:$0xff]  }
  0x50   : > { %1388 = vmatprep.subr.bf16.mxu1 %v2473_v18  ;;  %1406 = vmatprep.mubr.bf16.mxu1 %v1129_v63  ;;  %v2528_v18 = vld [vmem:[%s3414_s3 + $0x364] ss:$8 sps:$4 sm:$0xff]  }
  0x51   : > { %v2549_v35 = vld [vmem:[%s3414_s3 + $0x304] ss:$8 sps:$4 sm:$0xff]  }
  0x52   : > { %1041 = vmatpush2.bf16.msra.mxu0 %v2474_v7  ;;  %v2520_v7 = vld [vmem:[%s3414_s3 + $0x100] ss:$8 sps:$4 sm:$0xff]  }
  0x53   : > { %1417 = vmatprep.subr.bf16.mxu0 %v2480_v9  ;;  %1389 = vmatpush1.bf16.msra.mxu1 %v2471_v20  ;;  %v2511_v9 = vld [vmem:[%s3414_s3 + $0x90] ss:$8 sps:$4 sm:$0xff]  }
  0x54   : > { %1390 = vmatprep.subr.bf16.mxu1 %v2477_v22  ;;  %v2526_v22 = vld [vmem:[%s3414_s3 + $0x360] ss:$8 sps:$4 sm:$0xff]  }
  0x55   : > { %1043 = vmatmul.mubr.bf16.vlgmr.msra.gmra.mxu0 %v764_v10  ;;  %v1130_v10 = vcombine.low %v1113_v16, %v3159_v5  ;;  %v2561_v16 = vld [vmem:[%s3414_s3 + $0x3e4] ss:$8 sps:$4 sm:$0xff]  }
  0x56   : > { %1418 = vmatpush1.bf16.msra.mxu0 %v2478_v13  ;;  %1449 = vmatprep.mubr.bf16.mxu0 %v2673_v2  ;;  %v2523_v13 = vld [vmem:[%s3414_s3 + $0x370] ss:$8 sps:$4 sm:$0xff]  }
  0x57   : > { %1419 = vmatprep.subr.bf16.mxu0 %v2486_v19  ;;  %1391 = vmatpush2.bf16.msra.mxu1 %v2475_v28  ;;  %v407_v19 = vld [vmem:[%s366_s9] sm:$0x3]  ;;  %s1932_s9 = sshll.u32 %s328_s8, 4  ;;  %s3362_s9 = int_to_ptr.vmem [resolvable:$true] %s1932_s9 }
  0x58   : > { %1392 = vmatprep.subr.bf16.mxu1 %v2483_v33  ;;  %v412_v20 = vmul.bf16 0.0, %v407_v19  ;;  %v2552_v33 = vld [vmem:[%s3414_s3 + $0x464] ss:$8 sps:$4 sm:$0xff]   ;;  %s2595_s12 = scalar_lea.vmem %s3362_s9, 512  ;;  %p2602_p1 = scmp.lt.s32.totalorder %s3362_s9, %s2600_s15 }
  0x59   : > { %v2585_v19 = vld [vmem:[%s3414_s3 + $0x3a4] ss:$8 sps:$4 sm:$0xff]   ;;  %p2596_p12 = scmp.ne.s32.totalorder %s3362_s9, %s2595_s12  ;;  %p2603_p2 = scmp.lt.s32.totalorder %s2601_s13, %s2595_s12 }
  0x5a   : > { %1420 = vmatpush1.bf16.msra.mxu0 %v2484_v23  ;;  %v2531_v23 = vld [vmem:[%s3414_s3 + $0x354] ss:$8 sps:$4 sm:$0xff]  }
  0x5b   : > { %1421 = vmatprep.subr.bf16.mxu0 %v2492_v25  ;;  %1393 = vmatpush2.bf16.msra.mxu1 %v2481_v41  ;;  %v460_v25 = vrot.slane %v412_v20, %v2853_v32  ;;  %v2532_v41 = vld [vmem:[%s3414_s3 + $0x340] ss:$8 sps:$4 sm:$0xff]   ;;  %p2597_p13 = pnand %p2596_p12, %p2748_p4  ;;  %p2604_p3 = por %p2603_p2, %p2602_p1 }
  0x5c   : > { %1394 = vmatprep.subr.bf16.mxu1 %v2489_v42  ;;  %v2550_v42 = vld [vmem:[%s3414_s3 + $0x460] ss:$8 sps:$4 sm:$0xff]  }
  0x5d   : > { %v497_v28 = vshrl.u32 %v460_v25, 16  ;;  %p2598_p0 = pneg %p2597_p13 }
  0x5e   : > { %1422 = vmatpush1.bf16.msra.mxu0 %v2490_v29  ;;  %v2529_v29 = vld [vmem:[%s3414_s3 + $0x350] ss:$8 sps:$4 sm:$0xff]  }
  0x5f   : > { %1423 = vmatprep.subr.bf16.mxu0 %v2498_v34  ;;  %1395 = vmatpush2.bf16.msra.mxu1 %v2487_v50  ;;  %v500_v34 = vshll.u32 %v460_v25, 16  ;;  %v499_v36 = vrot.slane %v497_v28, 7  ;;  %p2605_p5 = pnand %p2604_p3, %p2598_p0 }
  0x60   : > { %1396 = vmatprep.subr.bf16.mxu1 %v2495_v51 }
  0x61   : > { %v502_v39 = vor.u32 %v500_v34, %v499_v36  ;;  %v528_v50 = vrot.slane %v500_v34, 1 }
  0x62   : > { %1424 = vmatpush1.bf16.msra.mxu0 %v2496_v43  ;;  %v2537_v43 = vld [vmem:[%s3414_s3 + $0x334] ss:$8 sps:$4 sm:$0xff]  }
  0x63   : > { %1425 = vmatprep.subr.bf16.mxu0 %v2504_v46  ;;  %1397 = vmatpush2.bf16.msra.mxu1 %v2493_v55  ;;  %v517_v37 = vsel %vm2913_vm5, 0, %v502_v39  ;;  %v2543_v55 = vld [vmem:[%s3414_s3 + $0x314] ss:$8 sps:$4 sm:$0xff]  }
  0x64   : > { %1398 = vmatprep.subr.bf16.mxu1 %v2501_v58  ;;  %v1462_v46 = vcombine.low %v517_v37, %v412_v20  ;;  %v2541_v58 = vld [vmem:[%s3414_s3 + $0x310] ss:$8 sps:$4 sm:$0xff]   ;;  %v2583_v20 = vld [vmem:[%s3414_s3 + $0x3a0] ss:$8 sps:$4 sm:$0xff]  }
  0x66   : > { %1426 = vmatpush1.bf16.msra.mxu0 %v2502_v52  ;;  %v1469_v40 = vrot.slane %v1462_v46, %v2853_v32  ;;  %v2538_v52 = vld [vmem:[%s3414_s3 + $0x320] ss:$8 sps:$4 sm:$0xff]  }
  0x67   : > { %1427 = vmatprep.subr.bf16.mxu0 %v2510_v38  ;;  %1399 = vmatpush2.bf16.msra.mxu1 %v2499_v62  ;;  %v529_v38 = vor.u32 %v528_v50, %v497_v28  ;;  %v2576_v62 = vld [vmem:[%s3414_s3 + $0x424] ss:$8 sps:$4 sm:$0xff]  }
  0x68   : > { %1400 = vmatprep.subr.bf16.mxu1 %v2507_v3  ;;  %v2259_v51 = vcombine.low %v2982_v48, %v1469_v40  ;;  %v2570_v48 = vld [vmem:[%s3414_s3 + $0x434] ss:$8 sps:$4 sm:$0xff]   ;;  %v1879_v40 = vld [vmem:[%s3415_s4] sm:$0x3] }
  0x69   : > { %v2582_v3 = vld [vmem:[%s3414_s3 + $0x414] ss:$8 sps:$4 sm:$0xff]  }
  0x6a   : > { %1428 = vmatpush1.bf16.msra.mxu0 %v2508_v59  ;;  %v3249_v45 = vrot.slane %v2259_v51, %v2853_v32  ;;  %v2568_v59 = vld [vmem:[%s3414_s3 + $0x430] ss:$8 sps:$4 sm:$0xff]   ;;  %v1887_v51 = vsub.s32 1, %v2832_v27 }
  0x6b   : > { %1429 = vmatprep.subr.bf16.mxu0 %v2516_v60  ;;  %1401 = vmatpush2.bf16.msra.mxu1 %v2505_v15  ;;  %v544_v60 = vsel %vm2897_vm3, %v529_v38, 0  ;;  %v2580_v15 = vld [vmem:[%s3414_s3 + $0x410] ss:$8 sps:$4 sm:$0xff]  }
  0x6c   : > { %1402 = vmatprep.subr.bf16.mxu1 %v2513_v6  ;;  %v1544_v56 = vcombine.high %v3121_v54, %v3249_v45  ;;  %v1543_v57 = vcombine.low %v3121_v54, %v3249_v45  ;;  %v1476_v63 = vrot.slane %v544_v60, %v2853_v32  ;;  %v1883_v54 = vsub.s32 0, %v2832_v27 }
  0x6d   : > { %v1888_v60 = vrot.slane %v1879_v40, %v1887_v51 }
  0x6e   : > { %1430 = vmatpush1.bf16.msra.mxu0 %v2514_v4  ;;  %v2260_v4 = vcombine.low %v2931_v17, %v1476_v63  ;;  %v2588_v17 = vld [vmem:[%s3414_s3 + $0x404] ss:$8 sps:$4 sm:$0xff]   ;;  %v1884_v45 = vrot.slane %v1879_v40, %v1883_v54 }
  0x6f   : > { %1431 = vmatprep.subr.bf16.mxu0 %v2522_v14  ;;  %1403 = vmatpush2.bf16.msra.mxu1 %v2511_v9  ;;  %v2553_v14 = vld [vmem:[%s3414_s3 + $0x3f0] ss:$8 sps:$4 sm:$0xff]   ;;  %v2567_v9 = vld [vmem:[%s3414_s3 + $0x3d4] ss:$8 sps:$4 sm:$0xff]  }
  0x70   : > { %1404 = vmatprep.subr.bf16.mxu1 %v2519_v12  ;;  %v1542_v6 = vrot.slane %v2260_v4, %v2853_v32  ;;  %v2565_v32 = vld [vmem:[%s3414_s3 + $0x3d0] ss:$8 sps:$4 sm:$0xff]   ;;  %v2573_v12 = vld [vmem:[%s3414_s3 + $0x3c4] ss:$8 sps:$4 sm:$0xff]  }
  0x72   : > { %1432 = vmatpush1.bf16.msra.mxu0 %v2520_v7  ;;  %v2559_v7 = vld [vmem:[%s3414_s3 + $0x3e0] ss:$8 sps:$4 sm:$0xff]  }
  0x73   : > { %1789 = vmatprep.subr.bf16.mxu0 %v2525_v8  ;;  %1405 = vmatpush2.bf16.msra.mxu1 %v2517_v21  ;;  %v2586_v8 = vld [vmem:[%s3414_s3 + $0x400] ss:$8 sps:$4 sm:$0xff]   ;;  %v2591_v21 = vld [vmem:[%s3414_s3 + $0x394] ss:$8 sps:$4 sm:$0xff]  }
  0x74   : > { %1832 = vmatprep.subr.bf16.mxu1 %v2546_v24  ;;  %v2592_v24 = vld [vmem:[%s3414_s3 + $0x380] ss:$8 sps:$4 sm:$0xff]  }
  0x75   : > { %1450 = vmatmul.mubr.bf16.vlgmr.msra.gmra.mxu0 %v1130_v10  ;;  %v1545_v10 = vcombine.low %v3159_v5, %v1542_v6  ;;  %v2579_v5 = vld [vmem:[%s3414_s3 + $0x3b4] ss:$8 sps:$4 sm:$0xff]  }
  0x76   : > { %1790 = vmatpush1.bf16.msra.mxu0 %v2523_v13  ;;  %1407 = vmatmul.mubr.bf16.vlgmr.msra.gmra.mxu1 %v1128_v26  ;;  %v2571_v13 = vld [vmem:[%s3414_s3 + $0x3c0] ss:$8 sps:$4 sm:$0xff]  }
  0x77   : > { %1791 = vmatprep.subr.bf16.mxu0 %v2528_v18  ;;  %1833 = vmatpush1.bf16.msra.mxu1 %v2544_v30  ;;  %v2577_v18 = vld [vmem:[%s3414_s3 + $0x3b0] ss:$8 sps:$4 sm:$0xff]  }
  0x78   : > { %1834 = vmatprep.subr.bf16.mxu1 %v2552_v33  ;;  %1864 = vmatprep.mubr.bf16.mxu1 %v2673_v2  ;;  %v2564_v2 = vld [vmem:[%s3414_s3 + $0x444] ss:$8 sps:$4 sm:$0xff]  }
  0x79   : > { %1821 = vmatprep.mubr.bf16.mxu0 %v1544_v56 }
  0x7a   : > { %1792 = vmatpush1.bf16.msra.mxu0 %v2526_v22  ;;  %v2589_v22 = vld [vmem:[%s3414_s3 + $0x390] ss:$8 sps:$4 sm:$0xff]  }
  0x7b   : > { %1793 = vmatprep.subr.bf16.mxu0 %v2531_v23  ;;  %1835 = vmatpush1.bf16.msra.mxu1 %v2550_v42  ;;  %v2594_v23 = vld [vmem:[%s3414_s3 + $0x384] ss:$8 sps:$4 sm:$0xff]  }
  0x7c   : > { %1836 = vmatprep.subr.bf16.mxu1 %v2558_v44 }
  0x7e   : > { %1794 = vmatpush1.bf16.msra.mxu0 %v2529_v29 }
  0x7f   : > { %1795 = vmatprep.subr.bf16.mxu0 %v2534_v31  ;;  %1837 = vmatpush1.bf16.msra.mxu1 %v2556_v49 }
  0x80   : > { %1838 = vmatprep.subr.bf16.mxu1 %v2564_v2 }
  0x82   : > { %1796 = vmatpush1.bf16.msra.mxu0 %v2532_v41 }
  0x83   : > { %1797 = vmatprep.subr.bf16.mxu0 %v2537_v43  ;;  %1839 = vmatpush1.bf16.msra.mxu1 %v2562_v53 }
  0x84   : > { %1840 = vmatprep.subr.bf16.mxu1 %v2570_v48 }
  0x86   : > { %1798 = vmatpush1.bf16.msra.mxu0 %v2535_v47 }
  0x87   : > { %1799 = vmatprep.subr.bf16.mxu0 %v2540_v11  ;;  %1841 = vmatpush1.bf16.msra.mxu1 %v2568_v59 }
  0x88   : > { %1842 = vmatprep.subr.bf16.mxu1 %v2576_v62 }
  0x8a   : > { %1800 = vmatpush1.bf16.msra.mxu0 %v2538_v52 }
  0x8b   : > { %1801 = vmatprep.subr.bf16.mxu0 %v2543_v55  ;;  %1843 = vmatpush1.bf16.msra.mxu1 %v2574_v61 }
  0x8c   : > { %1844 = vmatprep.subr.bf16.mxu1 %v2582_v3 }
  0x8e   : > { %1802 = vmatpush1.bf16.msra.mxu0 %v2541_v58 }
  0x8f   : > { %1803 = vmatprep.subr.bf16.mxu0 %v2549_v35  ;;  %1845 = vmatpush1.bf16.msra.mxu1 %v2580_v15 }
  0x90   : > { %1846 = vmatprep.subr.bf16.mxu1 %v2588_v17 }
  0x92   : > { %1804 = vmatpush1.bf16.msra.mxu0 %v2547_v0 }
  0x93   : > { %1805 = vmatprep.subr.bf16.mxu0 %v2555_v1  ;;  %1847 = vmatpush1.bf16.msra.mxu1 %v2586_v8 }
  0x96   : > { %1806 = vmatpush2.bf16.msra.mxu0 %v2553_v14  ;;  %1865 = vmatmul.mubr.bf16.vlgmr.msra.gmra.mxu1 %v1545_v10 }
  0x97   : > { %1807 = vmatprep.subr.bf16.mxu0 %v2561_v16 }
  0x9a   : > { %1808 = vmatpush2.bf16.msra.mxu0 %v2559_v7 }
  0x9b   : > { %1809 = vmatprep.subr.bf16.mxu0 %v2567_v9 }
  0x9e   : > { %1810 = vmatpush2.bf16.msra.mxu0 %v2565_v32 }
  0x9f   : > { %1811 = vmatprep.subr.bf16.mxu0 %v2573_v12 }
  0xa2   : > { %1812 = vmatpush2.bf16.msra.mxu0 %v2571_v13 }
  0xa3   : > { %1813 = vmatprep.subr.bf16.mxu0 %v2579_v5 }
  0xa6   : > { %1814 = vmatpush2.bf16.msra.mxu0 %v2577_v18 }
  0xa7   : > { %1815 = vmatprep.subr.bf16.mxu0 %v2585_v19 }
  0xaa   : > { %1816 = vmatpush2.bf16.msra.mxu0 %v2583_v20 }
  0xab   : > { %1817 = vmatprep.subr.bf16.mxu0 %v2591_v21 }
  0xae   : > { %1818 = vmatpush2.bf16.msra.mxu0 %v2589_v22 }
  0xaf   : > { %1819 = vmatprep.subr.bf16.mxu0 %v2594_v23 }
  0xb2   : > { %1820 = vmatpush2.bf16.msra.mxu0 %v2592_v24 }
  0xb5   : > { %1822 = vmatmul.mubr.bf16.vlgmr.msra.gmra.mxu0 %v1543_v57 }
  0xf6   : > { %v1087_v25 = vpop.f32.mrf.mxu1 }
  0xf8   : > { %v1089_v26 = vpop.f32.mrf.mxu1 }
  0xfa   : > { %v1091_v29 = vpop.f32.mrf.mxu1 }
  0xfc   : > { %v1093_v31 = vpop.f32.mrf.mxu1 }
 0x115   : > { %v1044_v28 = vpop.f32.mrf.mxu0 }
 0x116   : > { %v1088_v47 = vadd.f32 %v1087_v25, %v1044_v28 }
 0x117   : > { %v1046_v30 = vpop.f32.mrf.mxu0 }
 0x118   : > { %v1090_v49 = vadd.f32 %v1089_v26, %v1046_v30 }
 0x119   : > { %v1048_v33 = vpop.f32.mrf.mxu0 }
 0x11a   : > { %v1092_v52 = vadd.f32 %v1091_v29, %v1048_v33 }
 0x11b   : > { %v1050_v36 = vpop.f32.mrf.mxu0 }
 0x11c   : > { %v1094_v55 = vadd.f32 %v1093_v31, %v1050_v36 }
 0x135   : > { %v1451_v41 = vpop.f32.mrf.mxu0 }
 0x136   : > { %v1408_v34 = vpop.f32.mrf.mxu1 }
 0x137   : > { %v1453_v43 = vpop.f32.mrf.mxu0  ;;  %v1409_v50 = vadd.f32 %v1408_v34, %v1088_v47 }
 0x138   : > { %v1410_v39 = vpop.f32.mrf.mxu1 }
 0x139   : > { %v1455_v37 = vpop.f32.mrf.mxu0  ;;  %v1411_v53 = vadd.f32 %v1410_v39, %v1090_v49  ;;  %v1452_v48 = vadd.f32 %v1451_v41, %v1409_v50 }
 0x13a   : > { %v1412_v42 = vpop.f32.mrf.mxu1 }
 0x13b   : > { %v1457_v11 = vpop.f32.mrf.mxu0  ;;  %v1413_v56 = vadd.f32 %v1412_v42, %v1092_v52  ;;  %v1454_v35 = vadd.f32 %v1453_v43, %v1411_v53 }
 0x13c   : > { %v1414_v44 = vpop.f32.mrf.mxu1 }
 0x13d   : > { %v1415_v62 = vadd.f32 %v1414_v44, %v1094_v55  ;;  %v1456_v27 = vadd.f32 %v1455_v37, %v1413_v56 }
 0x13f   : > { %v1458_v16 = vadd.f32 %v1457_v11, %v1415_v62 }
 0x156   : > { %v1866_v46 = vpop.f32.mrf.mxu1 }
 0x158   : > { %v1868_v2 = vpop.f32.mrf.mxu1 }
 0x15a   : > { %v1870_v58 = vpop.f32.mrf.mxu1 }
 0x15c   : > { %v1872_v14 = vpop.f32.mrf.mxu1 }
 0x175   : > { %v1823_v38 = vpop.f32.mrf.mxu0 }
 0x176   : > { %v1867_v57 = vadd.f32 %v1866_v46, %v1823_v38 }
 0x177   : > { %v1825_v59 = vpop.f32.mrf.mxu0 }
 0x178   : > { %v1875_v63 = vadd.f32 %v1867_v57, %v1452_v48  ;;  %v1869_v0 = vadd.f32 %v1868_v2, %v1825_v59 }
 0x179   : > { %v1827_v61 = vpop.f32.mrf.mxu0 }
 0x17a   : > { %v1891_v1 = vadd.f32 %v1884_v45, %v1875_v63  ;;  %v1876_v3 = vadd.f32 %v1869_v0, %v1454_v35  ;;  %v1871_v4 = vadd.f32 %v1870_v58, %v1827_v61 }
 0x17b   : > { %v1829_v15 = vpop.f32.mrf.mxu0 }
 0x17c   : > { %v1892_v17 = vadd.f32 %v1888_v60, %v1876_v3  ;;  %v1877_v6 = vadd.f32 %v1871_v4, %v1456_v27  ;;  %v1873_v7 = vadd.f32 %v1872_v14, %v1829_v15  ;;  %v1895_v8 = vmax.f32 %v1891_v1, 0.0 }
 0x17e   : > { %v1896_v9 = vmax.f32 %v1892_v17, 0.0  ;;  %v1893_v10 = vadd.f32 %v1884_v45, %v1877_v6  ;;  %v1878_v32 = vadd.f32 %v1873_v7, %v1458_v16 }
 0x180   : > { %v1903_v12 = vcombine.low %v1895_v8, %v1896_v9  ;;  %v1904_v13 = vcombine.high %v1895_v8, %v1896_v9  ;;  %v1894_v5 = vadd.f32 %v1888_v60, %v1878_v32  ;;  %v1897_v18 = vmax.f32 %v1893_v10, 0.0 }
 0x182   : > { %1911 = vst [vmem:[%s328_s8] sm:$0xff] %v1903_v12  ;;  %1912 = vst [vmem:[%s328_s8 + $0x8] sm:$0xff] %v1904_v13  ;;  %v1898_v19 = vmax.f32 %v1894_v5, 0.0 }
 0x184   : > { %v1905_v20 = vcombine.low %v1897_v18, %v1898_v19  ;;  %v1906_v21 = vcombine.high %v1897_v18, %v1898_v19 }
 0x186   : > { %1913 = vst [vmem:[%s328_s8 + $0x10] sm:$0xff] %v1905_v20  ;;  %1914 = vst [vmem:[%s328_s8 + $0x18] sm:$0xff] %v1906_v21 }
 0x187   : > { %2608 = shalt.err (!%p2605_p5)
}
 0x188   : > { %s2609_s16 = scalar_lea.hbm %s3360_s7, 512  ;;  %s2613_s25 = scalar_lea.hbm %s3416_s5, 1024 }
 0x189   : > { %p2610_p6 = scmp.ne.s32.totalorder %s3360_s7, %s2609_s16  ;;  %p2614_p10 = scmp.lt.s32.totalorder %s3360_s7, %s3416_s5 }
 0x18a   : > { %p2615_p11 = scmp.lt.s32.totalorder %s2613_s25, %s2609_s16 }
 0x18b   : > { %p2611_p7 = pnand %p2610_p6, %p2748_p4 }
 0x18c   : > { %p2616_p12 = por %p2615_p11, %p2614_p10 }
 0x18d   : > { %p2612_p9 = pneg %p2611_p7 }
 0x18f   : > { %p2617_p13 = pnand %p2616_p12, %p2612_p9 }
 0x191   : > { %2620 = shalt.err (!%p2617_p13)
}
 0x192   : > { %s2676_s8 = smov 128   ;;  %s2677_s10 = smov 8  }
 0x193   : > { %2320 = dma.vmem_to_hbm [thread:$0]  (%p2748_p4), %s3362_s9, 512, %s3360_s7, %s3366_s21, %s2676_s8, %s2676_s8, %s2677_s10  }
 0x194 PF: > { %p2326_p0 = scmp.ge.s32.totalorder %s2671_s23, 2  ;;  %s1947_s11 = sand.u32 1, %s2651_s18  }
 0x195   : > { %s1948_s12 = scalar_lea.sflag [#allocation3], %s1947_s11 }
 0x196   : > { %p2323_p1 = pnand %p2326_p0, %p2755_p8 }
 0x198   : > { %p2324_p2 = pneg %p2323_p1 }
 0x19a   : > { %2646 = dma.done.wait (%p2324_p2), %s1948_s12, 512  }
 0x19b   : > { %2648 = vsyncadd (%p2324_p2), %s1948_s12, 4294966784  ;;  %s18_s23 = sadd.s32 1, %s2671_s23   ;;  %s3423_s18 = smov %s2655_s19 }
 0x19c   : > { %p15_p3 = scmp.ge.s32.totalorder %s18_s23, 4   ;;  %s3424_s19 = smov %s2659_s20 }
 0x19d   : > { %s3425_s20 = smov %s2761_s6  ;;  %s3426_s21 = smov %s2667_s22 }
 0x19e   : > { %s3427_s22 = smov %s3429_s26  ;;  %17 = sbr.rel (!%p15_p3) target bundleno = 4 (0x4), region = 83 }
 0x1a3   :  { %1953 = vsyncpa [#allocation3], 1 }
 0x1a4   :  { %1955 = vsyncpa [#allocation3 + $0x1], 1 }

</bundles_post_ra>
